<compile_context>
chip_gen: v5e
topology: v5e:2x2
jax: 0.10.0
libtpu: 0.0.40
codegen_flags: <defaults>
</compile_context>

<pallas_src>
import functools

import jax
import jax.numpy as jnp
from jax import lax
from jax.experimental import pallas as pl
from jax.experimental.pallas import tpu as pltpu


# ----------------------------- Fused Pallas kernel ------------------------------ #

def _fused_lstm_kernel(x_ref, wih0_ref, b0_ref, wblk_ref, b1_ref, fcw_ref, fcb_ref,
                       out_ref, g0_ref):
    """Fused 2-layer LSTM (layer wavefront) + Linear(H,1) on the last timestep.

    x_ref   : (B*S,) f32 in SMEM (input_size==1)  OR  (S*B, F) f32 in VMEM (general F)
    wih0_ref: (1, G) f32 (F==1) or (F, G) bf16    layer-0 W_ih^T, gate-reordered+padded
    b0_ref  : (1, G) f32                          layer-0 b_ih+b_hh
    wblk_ref: (2Hp, 2G) bf16                      block weight [[whh0, wih1],[0, whh1]]
    b1_ref  : (1, G) f32                          layer-1 b_ih+b_hh
    fcw_ref : (1, Hp) f32                         fc weight row (padded)
    fcb_ref : (1, 1) f32                          fc bias
    out_ref : (B, 1) f32                          model output
    g0_ref  : (S, B, G) f32 VMEM scratch          precomputed layer-0 input projection
    """
    S, B, G = g0_ref.shape
    Hp = G // 4

    # ---- Phase A: layer-0 input projection (+ bias) for ALL timesteps, once.
    b0_row = b0_ref[...]                                     # (1, G)
    if len(x_ref.shape) == 1:
        # input_size == 1: scalar reads from SMEM, scalar-x-vector VPU multiplies.
        w_row = wih0_ref[...]                                # (1, G) f32
        for s in range(S):
            rows = [x_ref[b * S + s] * w_row + b0_row for b in range(B)]
            g0_ref[s] = jnp.concatenate(rows, axis=0)        # (B, G)
    else:
        # General input_size: one (S*B, F) @ (F, G) MXU matmul (rows are time-major).
        xp = jnp.dot(x_ref[...].astype(jnp.bfloat16), wih0_ref[...],
                     preferred_element_type=jnp.float32) + b0_row
        g0_ref[...] = xp.reshape(S, B, G)

    # Loop-invariant bias broadcast hoisted out of the recurrence.
    b1b = jnp.broadcast_to(b1_ref[...], (B, G))

    def cell(gates, c):
        # Gate order [i, f, o, g]: one sigmoid over 3*Hp + one tanh over Hp (2 EUP calls).
        sig = jax.nn.sigmoid(gates[:, :3 * Hp])
        g = jnp.tanh(gates[:, 3 * Hp:])
        i = sig[:, 0 * Hp:1 * Hp]
        f = sig[:, 1 * Hp:2 * Hp]
        o = sig[:, 2 * Hp:3 * Hp]
        c_new = f * c + i * g
        return o * jnp.tanh(c_new), c_new

    def fused_gates(h0, h1):
        # Single MXU matmul feeding BOTH layers of the wavefront.
        lhs = jnp.concatenate([h0, h1], axis=-1).astype(jnp.bfloat16)      # (B, 2Hp)
        return jnp.dot(lhs, wblk_ref[...], preferred_element_type=jnp.float32)  # (B, 2G)

    zeros = jnp.zeros((B, Hp), jnp.float32)

    # Prologue: layer-0 step 0 (h0_{-1}=0, so its recurrent matmul term vanishes).
    h0, c0 = cell(g0_ref[0], zeros)
    h1, c1 = zeros, zeros

    # Wavefront loop: iteration k does layer-0 step k AND layer-1 step k-1 with ONE matmul.
    def step(k, carry):
        h0, c0, h1, c1 = carry
        gall = fused_gates(h0, h1)                            # (B, 2G)
        h0n, c0n = cell(g0_ref[k] + gall[:, :G], c0)          # layer-0 step k
        h1n, c1n = cell(b1b + gall[:, G:], c1)                # layer-1 step k-1
        return h0n, c0n, h1n, c1n

    h0, c0, h1, c1 = lax.fori_loop(1, S, step, (h0, c0, h1, c1), unroll=True)

    # Epilogue: layer-1 step S-1 (consumes h0_{S-1} and h1_{S-2}).
    gall = fused_gates(h0, h1)
    h1, _ = cell(b1b + gall[:, G:], c1)

    # FC head Linear(H,1) on the final layer-1 hidden: VPU multiply + lane reduce.
    out_ref[...] = jnp.sum(h1 * fcw_ref[...], axis=-1, keepdims=True) + fcb_ref[...]


# --------------------------------- Wrapper --------------------------------------- #

def lstm_model_forward(x_bsf, prep):
    """x_bsf: (B, S, F) batch_first like PyTorch. Returns (B,)."""
    B, S, F = x_bsf.shape
    Hp = prep["wblk"].shape[0] // 2
    G = 4 * Hp

    if F == 1:
        # Flat batch-major scalars into SMEM; plain reshape of contiguous memory (no transpose op).
        x_arg = x_bsf.astype(jnp.float32).reshape(B * S)
        x_spec = pl.BlockSpec(memory_space=pltpu.MemorySpace.SMEM)
    else:
        x_arg = jnp.swapaxes(x_bsf, 0, 1).astype(jnp.float32).reshape(S * B, F)
        x_spec = pl.BlockSpec(memory_space=pltpu.MemorySpace.VMEM)

    vmem_spec = pl.BlockSpec(memory_space=pltpu.MemorySpace.VMEM)
    out = pl.pallas_call(
        _fused_lstm_kernel,
        out_shape=jax.ShapeDtypeStruct((B, 1), jnp.float32),
        in_specs=[x_spec] + [vmem_spec] * 6,
        out_specs=vmem_spec,
        scratch_shapes=[
            pltpu.VMEM((S, B, G), jnp.float32),        # precomputed layer-0 gates
        ],
        compiler_params=pltpu.CompilerParams(
            vmem_limit_bytes=32 * 1024 * 1024),        # safe explicit budget on v5e/v6e/v7x
    )(x_arg, prep["wih0"], prep["b0"], prep["wblk"], prep["b1"],
      prep["fcw"], prep["fcb"])
    return out.reshape(-1)                              # view(-1)


# ----------------------- One-time parameter preparation --------------------------- #

def prepare_params(params):
    """Transpose, combine biases, reorder gates to [i,f,o,g], pad to 128 lanes,
    assemble the wavefront block weight, cast MXU operands to bf16."""
    l0, l1 = params["lstm"]
    H = l0["w_hh"].shape[1]
    Hp = ((H + 127) // 128) * 128

    def reorder_pad_gates(w_t):
        # (rows, 4H) in PyTorch gate order [i|f|g|o] -> (rows, 4Hp) in order [i|f|o|g],
        # each gate zero-padded from H to Hp columns.
        gi, gf, gg, go = (w_t[:, k * H:(k + 1) * H] for k in range(4))
        pad = lambda m: jnp.pad(m, ((0, 0), (0, Hp - H)))
        return jnp.concatenate([pad(gi), pad(gf), pad(go), pad(gg)], axis=1)

    def pad_rows(m):
        return jnp.pad(m, ((0, Hp - m.shape[0]), (0, 0)))

    whh0 = pad_rows(reorder_pad_gates(l0["w_hh"].T))        # (Hp, G)
    wih1 = pad_rows(reorder_pad_gates(l1["w_ih"].T))        # (Hp, G)
    whh1 = pad_rows(reorder_pad_gates(l1["w_hh"].T))        # (Hp, G)
    top = jnp.concatenate([whh0, wih1], axis=1)             # (Hp, 2G)
    bot = jnp.concatenate([jnp.zeros_like(whh1), whh1], axis=1)
    wblk = jnp.concatenate([top, bot], axis=0).astype(jnp.bfloat16)   # (2Hp, 2G)

    F = l0["w_ih"].shape[1]
    wih0 = reorder_pad_gates(l0["w_ih"].T)                  # (F, G)
    prep = {
        # F==1 path uses wih0 on the VPU -> keep f32; general path feeds the MXU -> bf16.
        "wih0": wih0.astype(jnp.float32 if F == 1 else jnp.bfloat16),
        "b0":   reorder_pad_gates((l0["b_ih"] + l0["b_hh"])[None, :]).astype(jnp.float32),
        "wblk": wblk,
        "b1":   reorder_pad_gates((l1["b_ih"] + l1["b_hh"])[None, :]).astype(jnp.float32),
        "fcw":  jnp.pad(params["fc_w"], ((0, 0), (0, Hp - H))).astype(jnp.float32),  # (1, Hp)
        "fcb":  params["fc_b"].reshape(1, 1).astype(jnp.float32),
    }
    return prep


# ----------------------------- Pure-JAX reference --------------------------------- #

def ref_lstm_layer(x_bsf, w_ih, w_hh, b_ih, b_hh):
    B, S, _ = x_bsf.shape
    H = w_hh.shape[1]

    def step(carry, x_t):
        h, c = carry
        gates = x_t @ w_ih.T + h @ w_hh.T + b_ih + b_hh
        i, f, g, o = jnp.split(gates, 4, axis=-1)
        i, f, o = jax.nn.sigmoid(i), jax.nn.sigmoid(f), jax.nn.sigmoid(o)
        g = jnp.tanh(g)
        c = f * c + i * g
        h = o * jnp.tanh(c)
        return (h, c), h

    init = (jnp.zeros((B, H), jnp.float32), jnp.zeros((B, H), jnp.float32))
    _, hs = jax.lax.scan(step, init, jnp.swapaxes(x_bsf, 0, 1))
    return jnp.swapaxes(hs, 0, 1)


def ref_model(x_bsf, params):
    h = x_bsf.astype(jnp.float32)
    for layer in params["lstm"]:
        h = ref_lstm_layer(h, layer["w_ih"], layer["w_hh"],
                           layer["b_ih"], layer["b_hh"])
    return (h[:, -1, :] @ params["fc_w"].T + params["fc_b"]).reshape(-1)


# -------------------------------- Param init --------------------------------------- #

def init_params(key, input_size, hidden_size, num_layers):
    k = 1.0 / jnp.sqrt(hidden_size)
    params = {"lstm": []}
    for layer in range(num_layers):
        in_f = input_size if layer == 0 else hidden_size
        key, k1, k2, k3, k4 = jax.random.split(key, 5)
        params["lstm"].append({
            "w_ih": jax.random.uniform(k1, (4 * hidden_size, in_f), jnp.float32, -k, k),
            "w_hh": jax.random.uniform(k2, (4 * hidden_size, hidden_size), jnp.float32, -k, k),
            "b_ih": jax.random.uniform(k3, (4 * hidden_size,), jnp.float32, -k, k),
            "b_hh": jax.random.uniform(k4, (4 * hidden_size,), jnp.float32, -k, k),
        })
    key, k5, k6 = jax.random.split(key, 3)
    params["fc_w"] = jax.random.uniform(k5, (1, hidden_size), jnp.float32, -k, k)
    params["fc_b"] = jax.random.uniform(k6, (1,), jnp.float32, -k, k)
    return params


# ----------------------------------- Main ------------------------------------------ #

if __name__ == "__main__":
    INPUT_SIZE, HIDDEN, NUM_LAYERS = 1, 96, 2   # module defaults
    BATCH, SEQ = 2, 8

    key = jax.random.PRNGKey(0)
    key, kx = jax.random.split(key)
    x = jax.random.normal(kx, (BATCH, SEQ, INPUT_SIZE), jnp.float32)

    params = init_params(key, INPUT_SIZE, HIDDEN, NUM_LAYERS)
    prep = prepare_params(params)               # one-time weight prep (reorder/pad/bf16)

    fwd = jax.jit(functools.partial(lstm_model_forward, prep=prep))
    out = jax.block_until_ready(fwd(x))

    ref = ref_model(x, params)
    assert out.shape == (BATCH,), out.shape
    assert jnp.all(jnp.isfinite(out)), out
    # bf16 MXU operands (f32 accumulation / f32 states) -> modest tolerance.
    assert jnp.allclose(out, ref, atol=1e-2, rtol=1e-2), (out, ref)

    print("KERNEL_OK")
</pallas_src>

<mosaic_0001>
module attributes {stable_mosaic.version = 11 : i64} {
  func.func @_fused_lstm_kernel(%arg0: memref<16xf32, #tpu.memory_space<smem>>, %arg1: memref<1x512xf32, #tpu.memory_space<vmem>>, %arg2: memref<1x512xf32, #tpu.memory_space<vmem>>, %arg3: memref<256x1024xbf16, #tpu.memory_space<vmem>>, %arg4: memref<1x512xf32, #tpu.memory_space<vmem>>, %arg5: memref<1x128xf32, #tpu.memory_space<vmem>>, %arg6: memref<1x1xf32, #tpu.memory_space<vmem>>, %arg7: memref<2x1xf32, #tpu.memory_space<vmem>>, %arg8: memref<8x2x512xf32, #tpu.memory_space<vmem>>) attributes {dimension_semantics = [], scalar_prefetch = 0 : i64, scratch_operands = 1 : i64, tpu.core_type = #tpu.core_type<tc>} {
    %c0 = arith.constant 0 : index
    %c0_0 = arith.constant 0 : index
    %0 = vector.load %arg2[%c0, %c0_0] : memref<1x512xf32, #tpu.memory_space<vmem>>, vector<1x512xf32>
    %c0_1 = arith.constant 0 : index
    %c0_2 = arith.constant 0 : index
    %1 = vector.load %arg1[%c0_1, %c0_2] : memref<1x512xf32, #tpu.memory_space<vmem>>, vector<1x512xf32>
    %c0_3 = arith.constant 0 : index
    %2 = memref.load %arg0[%c0_3] : memref<16xf32, #tpu.memory_space<smem>>
    %3 = vector.broadcast %2 : f32 to vector<1x512xf32>
    %4 = arith.mulf %3, %1 : vector<1x512xf32>
    %5 = arith.addf %4, %0 : vector<1x512xf32>
    %c8 = arith.constant 8 : index
    %6 = memref.load %arg0[%c8] : memref<16xf32, #tpu.memory_space<smem>>
    %7 = vector.broadcast %6 : f32 to vector<1x512xf32>
    %8 = arith.mulf %7, %1 : vector<1x512xf32>
    %9 = arith.addf %8, %0 : vector<1x512xf32>
    %10 = tpu.concatenate %5, %9 in 0 : vector<1x512xf32>, vector<1x512xf32> -> vector<2x512xf32>
    %c0_4 = arith.constant 0 : index
    %c0_5 = arith.constant 0 : index
    %c0_6 = arith.constant 0 : index
    %11 = vector.load %arg8[%c0_4, %c0_5, %c0_6] : memref<8x2x512xf32, #tpu.memory_space<vmem>>, vector<1x2x512xf32>
    %12 = vector.shape_cast %11 : vector<1x2x512xf32> to vector<2x512xf32>
    %13 = vector.shape_cast %10 : vector<2x512xf32> to vector<1x2x512xf32>
    tpu.vector_store %arg8[%c0_4, %c0_5, %c0_6], %13 {strides = array<i32>} : memref<8x2x512xf32, #tpu.memory_space<vmem>>, vector<1x2x512xf32>,
    %c1 = arith.constant 1 : index
    %14 = memref.load %arg0[%c1] : memref<16xf32, #tpu.memory_space<smem>>
    %15 = vector.broadcast %14 : f32 to vector<1x512xf32>
    %16 = arith.mulf %15, %1 : vector<1x512xf32>
    %17 = arith.addf %16, %0 : vector<1x512xf32>
    %c9 = arith.constant 9 : index
    %18 = memref.load %arg0[%c9] : memref<16xf32, #tpu.memory_space<smem>>
    %19 = vector.broadcast %18 : f32 to vector<1x512xf32>
    %20 = arith.mulf %19, %1 : vector<1x512xf32>
    %21 = arith.addf %20, %0 : vector<1x512xf32>
    %22 = tpu.concatenate %17, %21 in 0 : vector<1x512xf32>, vector<1x512xf32> -> vector<2x512xf32>
    %c1_7 = arith.constant 1 : index
    %c0_8 = arith.constant 0 : index
    %c0_9 = arith.constant 0 : index
    %23 = vector.load %arg8[%c1_7, %c0_8, %c0_9] : memref<8x2x512xf32, #tpu.memory_space<vmem>>, vector<1x2x512xf32>
    %24 = vector.shape_cast %23 : vector<1x2x512xf32> to vector<2x512xf32>
    %25 = vector.shape_cast %22 : vector<2x512xf32> to vector<1x2x512xf32>
    tpu.vector_store %arg8[%c1_7, %c0_8, %c0_9], %25 {strides = array<i32>} : memref<8x2x512xf32, #tpu.memory_space<vmem>>, vector<1x2x512xf32>,
    %c2 = arith.constant 2 : index
    %26 = memref.load %arg0[%c2] : memref<16xf32, #tpu.memory_space<smem>>
    %27 = vector.broadcast %26 : f32 to vector<1x512xf32>
    %28 = arith.mulf %27, %1 : vector<1x512xf32>
    %29 = arith.addf %28, %0 : vector<1x512xf32>
    %c10 = arith.constant 10 : index
    %30 = memref.load %arg0[%c10] : memref<16xf32, #tpu.memory_space<smem>>
    %31 = vector.broadcast %30 : f32 to vector<1x512xf32>
    %32 = arith.mulf %31, %1 : vector<1x512xf32>
    %33 = arith.addf %32, %0 : vector<1x512xf32>
    %34 = tpu.concatenate %29, %33 in 0 : vector<1x512xf32>, vector<1x512xf32> -> vector<2x512xf32>
    %c2_10 = arith.constant 2 : index
    %c0_11 = arith.constant 0 : index
    %c0_12 = arith.constant 0 : index
    %35 = vector.load %arg8[%c2_10, %c0_11, %c0_12] : memref<8x2x512xf32, #tpu.memory_space<vmem>>, vector<1x2x512xf32>
    %36 = vector.shape_cast %35 : vector<1x2x512xf32> to vector<2x512xf32>
    %37 = vector.shape_cast %34 : vector<2x512xf32> to vector<1x2x512xf32>
    tpu.vector_store %arg8[%c2_10, %c0_11, %c0_12], %37 {strides = array<i32>} : memref<8x2x512xf32, #tpu.memory_space<vmem>>, vector<1x2x512xf32>,
    %c3 = arith.constant 3 : index
    %38 = memref.load %arg0[%c3] : memref<16xf32, #tpu.memory_space<smem>>
    %39 = vector.broadcast %38 : f32 to vector<1x512xf32>
    %40 = arith.mulf %39, %1 : vector<1x512xf32>
    %41 = arith.addf %40, %0 : vector<1x512xf32>
    %c11 = arith.constant 11 : index
    %42 = memref.load %arg0[%c11] : memref<16xf32, #tpu.memory_space<smem>>
    %43 = vector.broadcast %42 : f32 to vector<1x512xf32>
    %44 = arith.mulf %43, %1 : vector<1x512xf32>
    %45 = arith.addf %44, %0 : vector<1x512xf32>
    %46 = tpu.concatenate %41, %45 in 0 : vector<1x512xf32>, vector<1x512xf32> -> vector<2x512xf32>
    %c3_13 = arith.constant 3 : index
    %c0_14 = arith.constant 0 : index
    %c0_15 = arith.constant 0 : index
    %47 = vector.load %arg8[%c3_13, %c0_14, %c0_15] : memref<8x2x512xf32, #tpu.memory_space<vmem>>, vector<1x2x512xf32>
    %48 = vector.shape_cast %47 : vector<1x2x512xf32> to vector<2x512xf32>
    %49 = vector.shape_cast %46 : vector<2x512xf32> to vector<1x2x512xf32>
    tpu.vector_store %arg8[%c3_13, %c0_14, %c0_15], %49 {strides = array<i32>} : memref<8x2x512xf32, #tpu.memory_space<vmem>>, vector<1x2x512xf32>,
    %c4 = arith.constant 4 : index
    %50 = memref.load %arg0[%c4] : memref<16xf32, #tpu.memory_space<smem>>
    %51 = vector.broadcast %50 : f32 to vector<1x512xf32>
    %52 = arith.mulf %51, %1 : vector<1x512xf32>
    %53 = arith.addf %52, %0 : vector<1x512xf32>
    %c12 = arith.constant 12 : index
    %54 = memref.load %arg0[%c12] : memref<16xf32, #tpu.memory_space<smem>>
    %55 = vector.broadcast %54 : f32 to vector<1x512xf32>
    %56 = arith.mulf %55, %1 : vector<1x512xf32>
    %57 = arith.addf %56, %0 : vector<1x512xf32>
    %58 = tpu.concatenate %53, %57 in 0 : vector<1x512xf32>, vector<1x512xf32> -> vector<2x512xf32>
    %c4_16 = arith.constant 4 : index
    %c0_17 = arith.constant 0 : index
    %c0_18 = arith.constant 0 : index
    %59 = vector.load %arg8[%c4_16, %c0_17, %c0_18] : memref<8x2x512xf32, #tpu.memory_space<vmem>>, vector<1x2x512xf32>
    %60 = vector.shape_cast %59 : vector<1x2x512xf32> to vector<2x512xf32>
    %61 = vector.shape_cast %58 : vector<2x512xf32> to vector<1x2x512xf32>
    tpu.vector_store %arg8[%c4_16, %c0_17, %c0_18], %61 {strides = array<i32>} : memref<8x2x512xf32, #tpu.memory_space<vmem>>, vector<1x2x512xf32>,
    %c5 = arith.constant 5 : index
    %62 = memref.load %arg0[%c5] : memref<16xf32, #tpu.memory_space<smem>>
    %63 = vector.broadcast %62 : f32 to vector<1x512xf32>
    %64 = arith.mulf %63, %1 : vector<1x512xf32>
    %65 = arith.addf %64, %0 : vector<1x512xf32>
    %c13 = arith.constant 13 : index
    %66 = memref.load %arg0[%c13] : memref<16xf32, #tpu.memory_space<smem>>
    %67 = vector.broadcast %66 : f32 to vector<1x512xf32>
    %68 = arith.mulf %67, %1 : vector<1x512xf32>
    %69 = arith.addf %68, %0 : vector<1x512xf32>
    %70 = tpu.concatenate %65, %69 in 0 : vector<1x512xf32>, vector<1x512xf32> -> vector<2x512xf32>
    %c5_19 = arith.constant 5 : index
    %c0_20 = arith.constant 0 : index
    %c0_21 = arith.constant 0 : index
    %71 = vector.load %arg8[%c5_19, %c0_20, %c0_21] : memref<8x2x512xf32, #tpu.memory_space<vmem>>, vector<1x2x512xf32>
    %72 = vector.shape_cast %71 : vector<1x2x512xf32> to vector<2x512xf32>
    %73 = vector.shape_cast %70 : vector<2x512xf32> to vector<1x2x512xf32>
    tpu.vector_store %arg8[%c5_19, %c0_20, %c0_21], %73 {strides = array<i32>} : memref<8x2x512xf32, #tpu.memory_space<vmem>>, vector<1x2x512xf32>,
    %c6 = arith.constant 6 : index
    %74 = memref.load %arg0[%c6] : memref<16xf32, #tpu.memory_space<smem>>
    %75 = vector.broadcast %74 : f32 to vector<1x512xf32>
    %76 = arith.mulf %75, %1 : vector<1x512xf32>
    %77 = arith.addf %76, %0 : vector<1x512xf32>
    %c14 = arith.constant 14 : index
    %78 = memref.load %arg0[%c14] : memref<16xf32, #tpu.memory_space<smem>>
    %79 = vector.broadcast %78 : f32 to vector<1x512xf32>
    %80 = arith.mulf %79, %1 : vector<1x512xf32>
    %81 = arith.addf %80, %0 : vector<1x512xf32>
    %82 = tpu.concatenate %77, %81 in 0 : vector<1x512xf32>, vector<1x512xf32> -> vector<2x512xf32>
    %c6_22 = arith.constant 6 : index
    %c0_23 = arith.constant 0 : index
    %c0_24 = arith.constant 0 : index
    %83 = vector.load %arg8[%c6_22, %c0_23, %c0_24] : memref<8x2x512xf32, #tpu.memory_space<vmem>>, vector<1x2x512xf32>
    %84 = vector.shape_cast %83 : vector<1x2x512xf32> to vector<2x512xf32>
    %85 = vector.shape_cast %82 : vector<2x512xf32> to vector<1x2x512xf32>
    tpu.vector_store %arg8[%c6_22, %c0_23, %c0_24], %85 {strides = array<i32>} : memref<8x2x512xf32, #tpu.memory_space<vmem>>, vector<1x2x512xf32>,
    %c7 = arith.constant 7 : index
    %86 = memref.load %arg0[%c7] : memref<16xf32, #tpu.memory_space<smem>>
    %87 = vector.broadcast %86 : f32 to vector<1x512xf32>
    %88 = arith.mulf %87, %1 : vector<1x512xf32>
    %89 = arith.addf %88, %0 : vector<1x512xf32>
    %c15 = arith.constant 15 : index
    %90 = memref.load %arg0[%c15] : memref<16xf32, #tpu.memory_space<smem>>
    %91 = vector.broadcast %90 : f32 to vector<1x512xf32>
    %92 = arith.mulf %91, %1 : vector<1x512xf32>
    %93 = arith.addf %92, %0 : vector<1x512xf32>
    %94 = tpu.concatenate %89, %93 in 0 : vector<1x512xf32>, vector<1x512xf32> -> vector<2x512xf32>
    %c7_25 = arith.constant 7 : index
    %c0_26 = arith.constant 0 : index
    %c0_27 = arith.constant 0 : index
    %95 = vector.load %arg8[%c7_25, %c0_26, %c0_27] : memref<8x2x512xf32, #tpu.memory_space<vmem>>, vector<1x2x512xf32>
    %96 = vector.shape_cast %95 : vector<1x2x512xf32> to vector<2x512xf32>
    %97 = vector.shape_cast %94 : vector<2x512xf32> to vector<1x2x512xf32>
    tpu.vector_store %arg8[%c7_25, %c0_26, %c0_27], %97 {strides = array<i32>} : memref<8x2x512xf32, #tpu.memory_space<vmem>>, vector<1x2x512xf32>,
    %c0_28 = arith.constant 0 : index
    %c0_29 = arith.constant 0 : index
    %98 = vector.load %arg4[%c0_28, %c0_29] : memref<1x512xf32, #tpu.memory_space<vmem>>, vector<1x512xf32>
    %99 = vector.shape_cast %98 : vector<1x512xf32> to vector<1x512xf32>
    %100 = vector.broadcast %99 : vector<1x512xf32> to vector<2x512xf32>
    %cst = arith.constant 0.000000e+00 : f32
    %101 = vector.broadcast %cst : f32 to vector<2x128xf32>
    %c0_30 = arith.constant 0 : index
    %c0_31 = arith.constant 0 : index
    %c0_32 = arith.constant 0 : index
    %102 = vector.load %arg8[%c0_30, %c0_31, %c0_32] : memref<8x2x512xf32, #tpu.memory_space<vmem>>, vector<1x2x512xf32>
    %103 = vector.shape_cast %102 : vector<1x2x512xf32> to vector<2x512xf32>
    %104 = vector.extract_strided_slice %103 {offsets = [0, 0], sizes = [2, 384], strides = [1, 1]} : vector<2x512xf32> to vector<2x384xf32>
    %105 = arith.negf %104 : vector<2x384xf32>
    %106 = math.exp %105 : vector<2x384xf32>
    %cst_33 = arith.constant 1.000000e+00 : f32
    %107 = vector.broadcast %cst_33 : f32 to vector<2x384xf32>
    %108 = arith.addf %107, %106 : vector<2x384xf32>
    %109 = arith.divf %107, %108 : vector<2x384xf32>
    %110 = vector.extract_strided_slice %103 {offsets = [0, 384], sizes = [2, 128], strides = [1, 1]} : vector<2x512xf32> to vector<2x128xf32>
    %111 = math.tanh %110 : vector<2x128xf32>
    %112 = vector.extract_strided_slice %109 {offsets = [0, 0], sizes = [2, 128], strides = [1, 1]} : vector<2x384xf32> to vector<2x128xf32>
    %113 = vector.extract_strided_slice %109 {offsets = [0, 128], sizes = [2, 128], strides = [1, 1]} : vector<2x384xf32> to vector<2x128xf32>
    %114 = vector.extract_strided_slice %109 {offsets = [0, 256], sizes = [2, 128], strides = [1, 1]} : vector<2x384xf32> to vector<2x128xf32>
    %115 = arith.mulf %113, %101 : vector<2x128xf32>
    %116 = arith.mulf %112, %111 : vector<2x128xf32>
    %117 = arith.addf %115, %116 : vector<2x128xf32>
    %118 = math.tanh %117 : vector<2x128xf32>
    %119 = arith.mulf %114, %118 : vector<2x128xf32>
    %c1_i32 = arith.constant 1 : i32
    %120 = tpu.concatenate %119, %101 in 1 : vector<2x128xf32>, vector<2x128xf32> -> vector<2x256xf32>
    %121 = arith.truncf %120 : vector<2x256xf32> to vector<2x256xbf16>
    %c0_34 = arith.constant 0 : index
    %c0_35 = arith.constant 0 : index
    %122 = vector.load %arg3[%c0_34, %c0_35] : memref<256x1024xbf16, #tpu.memory_space<vmem>>, vector<256x1024xbf16>
    %cst_36 = arith.constant dense<0.000000e+00> : vector<2x1024xf32>
    %123 = tpu.matmul %121, %122, %cst_36 {dimension_numbers = #tpu.dot_dimension_numbers<[1], [0], [0], [1], [0, 0, 1, 1], [], []>} : vector<2x256xbf16>, vector<256x1024xbf16>, vector<2x1024xf32> -> vector<2x1024xf32>
    %124 = arith.index_cast %c1_i32 : i32 to index
    %c0_37 = arith.constant 0 : index
    %c0_38 = arith.constant 0 : index
    %125 = vector.load %arg8[%124, %c0_37, %c0_38] : memref<8x2x512xf32, #tpu.memory_space<vmem>>, vector<1x2x512xf32>
    %126 = vector.shape_cast %125 : vector<1x2x512xf32> to vector<2x512xf32>
    %127 = vector.extract_strided_slice %123 {offsets = [0, 0], sizes = [2, 512], strides = [1, 1]} : vector<2x1024xf32> to vector<2x512xf32>
    %128 = arith.addf %126, %127 : vector<2x512xf32>
    %129 = vector.extract_strided_slice %128 {offsets = [0, 0], sizes = [2, 384], strides = [1, 1]} : vector<2x512xf32> to vector<2x384xf32>
    %130 = arith.negf %129 : vector<2x384xf32>
    %131 = math.exp %130 : vector<2x384xf32>
    %cst_39 = arith.constant 1.000000e+00 : f32
    %132 = vector.broadcast %cst_39 : f32 to vector<2x384xf32>
    %133 = arith.addf %132, %131 : vector<2x384xf32>
    %134 = arith.divf %132, %133 : vector<2x384xf32>
    %135 = vector.extract_strided_slice %128 {offsets = [0, 384], sizes = [2, 128], strides = [1, 1]} : vector<2x512xf32> to vector<2x128xf32>
    %136 = math.tanh %135 : vector<2x128xf32>
    %137 = vector.extract_strided_slice %134 {offsets = [0, 0], sizes = [2, 128], strides = [1, 1]} : vector<2x384xf32> to vector<2x128xf32>
    %138 = vector.extract_strided_slice %134 {offsets = [0, 128], sizes = [2, 128], strides = [1, 1]} : vector<2x384xf32> to vector<2x128xf32>
    %139 = vector.extract_strided_slice %134 {offsets = [0, 256], sizes = [2, 128], strides = [1, 1]} : vector<2x384xf32> to vector<2x128xf32>
    %140 = arith.mulf %138, %117 : vector<2x128xf32>
    %141 = arith.mulf %137, %136 : vector<2x128xf32>
    %142 = arith.addf %140, %141 : vector<2x128xf32>
    %143 = math.tanh %142 : vector<2x128xf32>
    %144 = arith.mulf %139, %143 : vector<2x128xf32>
    %145 = vector.extract_strided_slice %123 {offsets = [0, 512], sizes = [2, 512], strides = [1, 1]} : vector<2x1024xf32> to vector<2x512xf32>
    %146 = arith.addf %100, %145 : vector<2x512xf32>
    %147 = vector.extract_strided_slice %146 {offsets = [0, 0], sizes = [2, 384], strides = [1, 1]} : vector<2x512xf32> to vector<2x384xf32>
    %148 = arith.negf %147 : vector<2x384xf32>
    %149 = math.exp %148 : vector<2x384xf32>
    %cst_40 = arith.constant 1.000000e+00 : f32
    %150 = vector.broadcast %cst_40 : f32 to vector<2x384xf32>
    %151 = arith.addf %150, %149 : vector<2x384xf32>
    %152 = arith.divf %150, %151 : vector<2x384xf32>
    %153 = vector.extract_strided_slice %146 {offsets = [0, 384], sizes = [2, 128], strides = [1, 1]} : vector<2x512xf32> to vector<2x128xf32>
    %154 = math.tanh %153 : vector<2x128xf32>
    %155 = vector.extract_strided_slice %152 {offsets = [0, 0], sizes = [2, 128], strides = [1, 1]} : vector<2x384xf32> to vector<2x128xf32>
    %156 = vector.extract_strided_slice %152 {offsets = [0, 128], sizes = [2, 128], strides = [1, 1]} : vector<2x384xf32> to vector<2x128xf32>
    %157 = vector.extract_strided_slice %152 {offsets = [0, 256], sizes = [2, 128], strides = [1, 1]} : vector<2x384xf32> to vector<2x128xf32>
    %158 = arith.mulf %156, %101 : vector<2x128xf32>
    %159 = arith.mulf %155, %154 : vector<2x128xf32>
    %160 = arith.addf %158, %159 : vector<2x128xf32>
    %161 = math.tanh %160 : vector<2x128xf32>
    %162 = arith.mulf %157, %161 : vector<2x128xf32>
    %c2_i32 = arith.constant 2 : i32
    %163 = tpu.concatenate %144, %162 in 1 : vector<2x128xf32>, vector<2x128xf32> -> vector<2x256xf32>
    %164 = arith.truncf %163 : vector<2x256xf32> to vector<2x256xbf16>
    %c0_41 = arith.constant 0 : index
    %c0_42 = arith.constant 0 : index
    %165 = vector.load %arg3[%c0_41, %c0_42] : memref<256x1024xbf16, #tpu.memory_space<vmem>>, vector<256x1024xbf16>
    %cst_43 = arith.constant dense<0.000000e+00> : vector<2x1024xf32>
    %166 = tpu.matmul %164, %165, %cst_43 {dimension_numbers = #tpu.dot_dimension_numbers<[1], [0], [0], [1], [0, 0, 1, 1], [], []>} : vector<2x256xbf16>, vector<256x1024xbf16>, vector<2x1024xf32> -> vector<2x1024xf32>
    %167 = arith.index_cast %c2_i32 : i32 to index
    %c0_44 = arith.constant 0 : index
    %c0_45 = arith.constant 0 : index
    %168 = vector.load %arg8[%167, %c0_44, %c0_45] : memref<8x2x512xf32, #tpu.memory_space<vmem>>, vector<1x2x512xf32>
    %169 = vector.shape_cast %168 : vector<1x2x512xf32> to vector<2x512xf32>
    %170 = vector.extract_strided_slice %166 {offsets = [0, 0], sizes = [2, 512], strides = [1, 1]} : vector<2x1024xf32> to vector<2x512xf32>
    %171 = arith.addf %169, %170 : vector<2x512xf32>
    %172 = vector.extract_strided_slice %171 {offsets = [0, 0], sizes = [2, 384], strides = [1, 1]} : vector<2x512xf32> to vector<2x384xf32>
    %173 = arith.negf %172 : vector<2x384xf32>
    %174 = math.exp %173 : vector<2x384xf32>
    %cst_46 = arith.constant 1.000000e+00 : f32
    %175 = vector.broadcast %cst_46 : f32 to vector<2x384xf32>
    %176 = arith.addf %175, %174 : vector<2x384xf32>
    %177 = arith.divf %175, %176 : vector<2x384xf32>
    %178 = vector.extract_strided_slice %171 {offsets = [0, 384], sizes = [2, 128], strides = [1, 1]} : vector<2x512xf32> to vector<2x128xf32>
    %179 = math.tanh %178 : vector<2x128xf32>
    %180 = vector.extract_strided_slice %177 {offsets = [0, 0], sizes = [2, 128], strides = [1, 1]} : vector<2x384xf32> to vector<2x128xf32>
    %181 = vector.extract_strided_slice %177 {offsets = [0, 128], sizes = [2, 128], strides = [1, 1]} : vector<2x384xf32> to vector<2x128xf32>
    %182 = vector.extract_strided_slice %177 {offsets = [0, 256], sizes = [2, 128], strides = [1, 1]} : vector<2x384xf32> to vector<2x128xf32>
    %183 = arith.mulf %181, %142 : vector<2x128xf32>
    %184 = arith.mulf %180, %179 : vector<2x128xf32>
    %185 = arith.addf %183, %184 : vector<2x128xf32>
    %186 = math.tanh %185 : vector<2x128xf32>
    %187 = arith.mulf %182, %186 : vector<2x128xf32>
    %188 = vector.extract_strided_slice %166 {offsets = [0, 512], sizes = [2, 512], strides = [1, 1]} : vector<2x1024xf32> to vector<2x512xf32>
    %189 = arith.addf %100, %188 : vector<2x512xf32>
    %190 = vector.extract_strided_slice %189 {offsets = [0, 0], sizes = [2, 384], strides = [1, 1]} : vector<2x512xf32> to vector<2x384xf32>
    %191 = arith.negf %190 : vector<2x384xf32>
    %192 = math.exp %191 : vector<2x384xf32>
    %cst_47 = arith.constant 1.000000e+00 : f32
    %193 = vector.broadcast %cst_47 : f32 to vector<2x384xf32>
    %194 = arith.addf %193, %192 : vector<2x384xf32>
    %195 = arith.divf %193, %194 : vector<2x384xf32>
    %196 = vector.extract_strided_slice %189 {offsets = [0, 384], sizes = [2, 128], strides = [1, 1]} : vector<2x512xf32> to vector<2x128xf32>
    %197 = math.tanh %196 : vector<2x128xf32>
    %198 = vector.extract_strided_slice %195 {offsets = [0, 0], sizes = [2, 128], strides = [1, 1]} : vector<2x384xf32> to vector<2x128xf32>
    %199 = vector.extract_strided_slice %195 {offsets = [0, 128], sizes = [2, 128], strides = [1, 1]} : vector<2x384xf32> to vector<2x128xf32>
    %200 = vector.extract_strided_slice %195 {offsets = [0, 256], sizes = [2, 128], strides = [1, 1]} : vector<2x384xf32> to vector<2x128xf32>
    %201 = arith.mulf %199, %160 : vector<2x128xf32>
    %202 = arith.mulf %198, %197 : vector<2x128xf32>
    %203 = arith.addf %201, %202 : vector<2x128xf32>
    %204 = math.tanh %203 : vector<2x128xf32>
    %205 = arith.mulf %200, %204 : vector<2x128xf32>
    %c3_i32 = arith.constant 3 : i32
    %206 = tpu.concatenate %187, %205 in 1 : vector<2x128xf32>, vector<2x128xf32> -> vector<2x256xf32>
    %207 = arith.truncf %206 : vector<2x256xf32> to vector<2x256xbf16>
    %c0_48 = arith.constant 0 : index
    %c0_49 = arith.constant 0 : index
    %208 = vector.load %arg3[%c0_48, %c0_49] : memref<256x1024xbf16, #tpu.memory_space<vmem>>, vector<256x1024xbf16>
    %cst_50 = arith.constant dense<0.000000e+00> : vector<2x1024xf32>
    %209 = tpu.matmul %207, %208, %cst_50 {dimension_numbers = #tpu.dot_dimension_numbers<[1], [0], [0], [1], [0, 0, 1, 1], [], []>} : vector<2x256xbf16>, vector<256x1024xbf16>, vector<2x1024xf32> -> vector<2x1024xf32>
    %210 = arith.index_cast %c3_i32 : i32 to index
    %c0_51 = arith.constant 0 : index
    %c0_52 = arith.constant 0 : index
    %211 = vector.load %arg8[%210, %c0_51, %c0_52] : memref<8x2x512xf32, #tpu.memory_space<vmem>>, vector<1x2x512xf32>
    %212 = vector.shape_cast %211 : vector<1x2x512xf32> to vector<2x512xf32>
    %213 = vector.extract_strided_slice %209 {offsets = [0, 0], sizes = [2, 512], strides = [1, 1]} : vector<2x1024xf32> to vector<2x512xf32>
    %214 = arith.addf %212, %213 : vector<2x512xf32>
    %215 = vector.extract_strided_slice %214 {offsets = [0, 0], sizes = [2, 384], strides = [1, 1]} : vector<2x512xf32> to vector<2x384xf32>
    %216 = arith.negf %215 : vector<2x384xf32>
    %217 = math.exp %216 : vector<2x384xf32>
    %cst_53 = arith.constant 1.000000e+00 : f32
    %218 = vector.broadcast %cst_53 : f32 to vector<2x384xf32>
    %219 = arith.addf %218, %217 : vector<2x384xf32>
    %220 = arith.divf %218, %219 : vector<2x384xf32>
    %221 = vector.extract_strided_slice %214 {offsets = [0, 384], sizes = [2, 128], strides = [1, 1]} : vector<2x512xf32> to vector<2x128xf32>
    %222 = math.tanh %221 : vector<2x128xf32>
    %223 = vector.extract_strided_slice %220 {offsets = [0, 0], sizes = [2, 128], strides = [1, 1]} : vector<2x384xf32> to vector<2x128xf32>
    %224 = vector.extract_strided_slice %220 {offsets = [0, 128], sizes = [2, 128], strides = [1, 1]} : vector<2x384xf32> to vector<2x128xf32>
    %225 = vector.extract_strided_slice %220 {offsets = [0, 256], sizes = [2, 128], strides = [1, 1]} : vector<2x384xf32> to vector<2x128xf32>
    %226 = arith.mulf %224, %185 : vector<2x128xf32>
    %227 = arith.mulf %223, %222 : vector<2x128xf32>
    %228 = arith.addf %226, %227 : vector<2x128xf32>
    %229 = math.tanh %228 : vector<2x128xf32>
    %230 = arith.mulf %225, %229 : vector<2x128xf32>
    %231 = vector.extract_strided_slice %209 {offsets = [0, 512], sizes = [2, 512], strides = [1, 1]} : vector<2x1024xf32> to vector<2x512xf32>
    %232 = arith.addf %100, %231 : vector<2x512xf32>
    %233 = vector.extract_strided_slice %232 {offsets = [0, 0], sizes = [2, 384], strides = [1, 1]} : vector<2x512xf32> to vector<2x384xf32>
    %234 = arith.negf %233 : vector<2x384xf32>
    %235 = math.exp %234 : vector<2x384xf32>
    %cst_54 = arith.constant 1.000000e+00 : f32
    %236 = vector.broadcast %cst_54 : f32 to vector<2x384xf32>
    %237 = arith.addf %236, %235 : vector<2x384xf32>
    %238 = arith.divf %236, %237 : vector<2x384xf32>
    %239 = vector.extract_strided_slice %232 {offsets = [0, 384], sizes = [2, 128], strides = [1, 1]} : vector<2x512xf32> to vector<2x128xf32>
    %240 = math.tanh %239 : vector<2x128xf32>
    %241 = vector.extract_strided_slice %238 {offsets = [0, 0], sizes = [2, 128], strides = [1, 1]} : vector<2x384xf32> to vector<2x128xf32>
    %242 = vector.extract_strided_slice %238 {offsets = [0, 128], sizes = [2, 128], strides = [1, 1]} : vector<2x384xf32> to vector<2x128xf32>
    %243 = vector.extract_strided_slice %238 {offsets = [0, 256], sizes = [2, 128], strides = [1, 1]} : vector<2x384xf32> to vector<2x128xf32>
    %244 = arith.mulf %242, %203 : vector<2x128xf32>
    %245 = arith.mulf %241, %240 : vector<2x128xf32>
    %246 = arith.addf %244, %245 : vector<2x128xf32>
    %247 = math.tanh %246 : vector<2x128xf32>
    %248 = arith.mulf %243, %247 : vector<2x128xf32>
    %c4_i32 = arith.constant 4 : i32
    %249 = tpu.concatenate %230, %248 in 1 : vector<2x128xf32>, vector<2x128xf32> -> vector<2x256xf32>
    %250 = arith.truncf %249 : vector<2x256xf32> to vector<2x256xbf16>
    %c0_55 = arith.constant 0 : index
    %c0_56 = arith.constant 0 : index
    %251 = vector.load %arg3[%c0_55, %c0_56] : memref<256x1024xbf16, #tpu.memory_space<vmem>>, vector<256x1024xbf16>
    %cst_57 = arith.constant dense<0.000000e+00> : vector<2x1024xf32>
    %252 = tpu.matmul %250, %251, %cst_57 {dimension_numbers = #tpu.dot_dimension_numbers<[1], [0], [0], [1], [0, 0, 1, 1], [], []>} : vector<2x256xbf16>, vector<256x1024xbf16>, vector<2x1024xf32> -> vector<2x1024xf32>
    %253 = arith.index_cast %c4_i32 : i32 to index
    %c0_58 = arith.constant 0 : index
    %c0_59 = arith.constant 0 : index
    %254 = vector.load %arg8[%253, %c0_58, %c0_59] : memref<8x2x512xf32, #tpu.memory_space<vmem>>, vector<1x2x512xf32>
    %255 = vector.shape_cast %254 : vector<1x2x512xf32> to vector<2x512xf32>
    %256 = vector.extract_strided_slice %252 {offsets = [0, 0], sizes = [2, 512], strides = [1, 1]} : vector<2x1024xf32> to vector<2x512xf32>
    %257 = arith.addf %255, %256 : vector<2x512xf32>
    %258 = vector.extract_strided_slice %257 {offsets = [0, 0], sizes = [2, 384], strides = [1, 1]} : vector<2x512xf32> to vector<2x384xf32>
    %259 = arith.negf %258 : vector<2x384xf32>
    %260 = math.exp %259 : vector<2x384xf32>
    %cst_60 = arith.constant 1.000000e+00 : f32
    %261 = vector.broadcast %cst_60 : f32 to vector<2x384xf32>
    %262 = arith.addf %261, %260 : vector<2x384xf32>
    %263 = arith.divf %261, %262 : vector<2x384xf32>
    %264 = vector.extract_strided_slice %257 {offsets = [0, 384], sizes = [2, 128], strides = [1, 1]} : vector<2x512xf32> to vector<2x128xf32>
    %265 = math.tanh %264 : vector<2x128xf32>
    %266 = vector.extract_strided_slice %263 {offsets = [0, 0], sizes = [2, 128], strides = [1, 1]} : vector<2x384xf32> to vector<2x128xf32>
    %267 = vector.extract_strided_slice %263 {offsets = [0, 128], sizes = [2, 128], strides = [1, 1]} : vector<2x384xf32> to vector<2x128xf32>
    %268 = vector.extract_strided_slice %263 {offsets = [0, 256], sizes = [2, 128], strides = [1, 1]} : vector<2x384xf32> to vector<2x128xf32>
    %269 = arith.mulf %267, %228 : vector<2x128xf32>
    %270 = arith.mulf %266, %265 : vector<2x128xf32>
    %271 = arith.addf %269, %270 : vector<2x128xf32>
    %272 = math.tanh %271 : vector<2x128xf32>
    %273 = arith.mulf %268, %272 : vector<2x128xf32>
    %274 = vector.extract_strided_slice %252 {offsets = [0, 512], sizes = [2, 512], strides = [1, 1]} : vector<2x1024xf32> to vector<2x512xf32>
    %275 = arith.addf %100, %274 : vector<2x512xf32>
    %276 = vector.extract_strided_slice %275 {offsets = [0, 0], sizes = [2, 384], strides = [1, 1]} : vector<2x512xf32> to vector<2x384xf32>
    %277 = arith.negf %276 : vector<2x384xf32>
    %278 = math.exp %277 : vector<2x384xf32>
    %cst_61 = arith.constant 1.000000e+00 : f32
    %279 = vector.broadcast %cst_61 : f32 to vector<2x384xf32>
    %280 = arith.addf %279, %278 : vector<2x384xf32>
    %281 = arith.divf %279, %280 : vector<2x384xf32>
    %282 = vector.extract_strided_slice %275 {offsets = [0, 384], sizes = [2, 128], strides = [1, 1]} : vector<2x512xf32> to vector<2x128xf32>
    %283 = math.tanh %282 : vector<2x128xf32>
    %284 = vector.extract_strided_slice %281 {offsets = [0, 0], sizes = [2, 128], strides = [1, 1]} : vector<2x384xf32> to vector<2x128xf32>
    %285 = vector.extract_strided_slice %281 {offsets = [0, 128], sizes = [2, 128], strides = [1, 1]} : vector<2x384xf32> to vector<2x128xf32>
    %286 = vector.extract_strided_slice %281 {offsets = [0, 256], sizes = [2, 128], strides = [1, 1]} : vector<2x384xf32> to vector<2x128xf32>
    %287 = arith.mulf %285, %246 : vector<2x128xf32>
    %288 = arith.mulf %284, %283 : vector<2x128xf32>
    %289 = arith.addf %287, %288 : vector<2x128xf32>
    %290 = math.tanh %289 : vector<2x128xf32>
    %291 = arith.mulf %286, %290 : vector<2x128xf32>
    %c5_i32 = arith.constant 5 : i32
    %292 = tpu.concatenate %273, %291 in 1 : vector<2x128xf32>, vector<2x128xf32> -> vector<2x256xf32>
    %293 = arith.truncf %292 : vector<2x256xf32> to vector<2x256xbf16>
    %c0_62 = arith.constant 0 : index
    %c0_63 = arith.constant 0 : index
    %294 = vector.load %arg3[%c0_62, %c0_63] : memref<256x1024xbf16, #tpu.memory_space<vmem>>, vector<256x1024xbf16>
    %cst_64 = arith.constant dense<0.000000e+00> : vector<2x1024xf32>
    %295 = tpu.matmul %293, %294, %cst_64 {dimension_numbers = #tpu.dot_dimension_numbers<[1], [0], [0], [1], [0, 0, 1, 1], [], []>} : vector<2x256xbf16>, vector<256x1024xbf16>, vector<2x1024xf32> -> vector<2x1024xf32>
    %296 = arith.index_cast %c5_i32 : i32 to index
    %c0_65 = arith.constant 0 : index
    %c0_66 = arith.constant 0 : index
    %297 = vector.load %arg8[%296, %c0_65, %c0_66] : memref<8x2x512xf32, #tpu.memory_space<vmem>>, vector<1x2x512xf32>
    %298 = vector.shape_cast %297 : vector<1x2x512xf32> to vector<2x512xf32>
    %299 = vector.extract_strided_slice %295 {offsets = [0, 0], sizes = [2, 512], strides = [1, 1]} : vector<2x1024xf32> to vector<2x512xf32>
    %300 = arith.addf %298, %299 : vector<2x512xf32>
    %301 = vector.extract_strided_slice %300 {offsets = [0, 0], sizes = [2, 384], strides = [1, 1]} : vector<2x512xf32> to vector<2x384xf32>
    %302 = arith.negf %301 : vector<2x384xf32>
    %303 = math.exp %302 : vector<2x384xf32>
    %cst_67 = arith.constant 1.000000e+00 : f32
    %304 = vector.broadcast %cst_67 : f32 to vector<2x384xf32>
    %305 = arith.addf %304, %303 : vector<2x384xf32>
    %306 = arith.divf %304, %305 : vector<2x384xf32>
    %307 = vector.extract_strided_slice %300 {offsets = [0, 384], sizes = [2, 128], strides = [1, 1]} : vector<2x512xf32> to vector<2x128xf32>
    %308 = math.tanh %307 : vector<2x128xf32>
    %309 = vector.extract_strided_slice %306 {offsets = [0, 0], sizes = [2, 128], strides = [1, 1]} : vector<2x384xf32> to vector<2x128xf32>
    %310 = vector.extract_strided_slice %306 {offsets = [0, 128], sizes = [2, 128], strides = [1, 1]} : vector<2x384xf32> to vector<2x128xf32>
    %311 = vector.extract_strided_slice %306 {offsets = [0, 256], sizes = [2, 128], strides = [1, 1]} : vector<2x384xf32> to vector<2x128xf32>
    %312 = arith.mulf %310, %271 : vector<2x128xf32>
    %313 = arith.mulf %309, %308 : vector<2x128xf32>
    %314 = arith.addf %312, %313 : vector<2x128xf32>
    %315 = math.tanh %314 : vector<2x128xf32>
    %316 = arith.mulf %311, %315 : vector<2x128xf32>
    %317 = vector.extract_strided_slice %295 {offsets = [0, 512], sizes = [2, 512], strides = [1, 1]} : vector<2x1024xf32> to vector<2x512xf32>
    %318 = arith.addf %100, %317 : vector<2x512xf32>
    %319 = vector.extract_strided_slice %318 {offsets = [0, 0], sizes = [2, 384], strides = [1, 1]} : vector<2x512xf32> to vector<2x384xf32>
    %320 = arith.negf %319 : vector<2x384xf32>
    %321 = math.exp %320 : vector<2x384xf32>
    %cst_68 = arith.constant 1.000000e+00 : f32
    %322 = vector.broadcast %cst_68 : f32 to vector<2x384xf32>
    %323 = arith.addf %322, %321 : vector<2x384xf32>
    %324 = arith.divf %322, %323 : vector<2x384xf32>
    %325 = vector.extract_strided_slice %318 {offsets = [0, 384], sizes = [2, 128], strides = [1, 1]} : vector<2x512xf32> to vector<2x128xf32>
    %326 = math.tanh %325 : vector<2x128xf32>
    %327 = vector.extract_strided_slice %324 {offsets = [0, 0], sizes = [2, 128], strides = [1, 1]} : vector<2x384xf32> to vector<2x128xf32>
    %328 = vector.extract_strided_slice %324 {offsets = [0, 128], sizes = [2, 128], strides = [1, 1]} : vector<2x384xf32> to vector<2x128xf32>
    %329 = vector.extract_strided_slice %324 {offsets = [0, 256], sizes = [2, 128], strides = [1, 1]} : vector<2x384xf32> to vector<2x128xf32>
    %330 = arith.mulf %328, %289 : vector<2x128xf32>
    %331 = arith.mulf %327, %326 : vector<2x128xf32>
    %332 = arith.addf %330, %331 : vector<2x128xf32>
    %333 = math.tanh %332 : vector<2x128xf32>
    %334 = arith.mulf %329, %333 : vector<2x128xf32>
    %c6_i32 = arith.constant 6 : i32
    %335 = tpu.concatenate %316, %334 in 1 : vector<2x128xf32>, vector<2x128xf32> -> vector<2x256xf32>
    %336 = arith.truncf %335 : vector<2x256xf32> to vector<2x256xbf16>
    %c0_69 = arith.constant 0 : index
    %c0_70 = arith.constant 0 : index
    %337 = vector.load %arg3[%c0_69, %c0_70] : memref<256x1024xbf16, #tpu.memory_space<vmem>>, vector<256x1024xbf16>
    %cst_71 = arith.constant dense<0.000000e+00> : vector<2x1024xf32>
    %338 = tpu.matmul %336, %337, %cst_71 {dimension_numbers = #tpu.dot_dimension_numbers<[1], [0], [0], [1], [0, 0, 1, 1], [], []>} : vector<2x256xbf16>, vector<256x1024xbf16>, vector<2x1024xf32> -> vector<2x1024xf32>
    %339 = arith.index_cast %c6_i32 : i32 to index
    %c0_72 = arith.constant 0 : index
    %c0_73 = arith.constant 0 : index
    %340 = vector.load %arg8[%339, %c0_72, %c0_73] : memref<8x2x512xf32, #tpu.memory_space<vmem>>, vector<1x2x512xf32>
    %341 = vector.shape_cast %340 : vector<1x2x512xf32> to vector<2x512xf32>
    %342 = vector.extract_strided_slice %338 {offsets = [0, 0], sizes = [2, 512], strides = [1, 1]} : vector<2x1024xf32> to vector<2x512xf32>
    %343 = arith.addf %341, %342 : vector<2x512xf32>
    %344 = vector.extract_strided_slice %343 {offsets = [0, 0], sizes = [2, 384], strides = [1, 1]} : vector<2x512xf32> to vector<2x384xf32>
    %345 = arith.negf %344 : vector<2x384xf32>
    %346 = math.exp %345 : vector<2x384xf32>
    %cst_74 = arith.constant 1.000000e+00 : f32
    %347 = vector.broadcast %cst_74 : f32 to vector<2x384xf32>
    %348 = arith.addf %347, %346 : vector<2x384xf32>
    %349 = arith.divf %347, %348 : vector<2x384xf32>
    %350 = vector.extract_strided_slice %343 {offsets = [0, 384], sizes = [2, 128], strides = [1, 1]} : vector<2x512xf32> to vector<2x128xf32>
    %351 = math.tanh %350 : vector<2x128xf32>
    %352 = vector.extract_strided_slice %349 {offsets = [0, 0], sizes = [2, 128], strides = [1, 1]} : vector<2x384xf32> to vector<2x128xf32>
    %353 = vector.extract_strided_slice %349 {offsets = [0, 128], sizes = [2, 128], strides = [1, 1]} : vector<2x384xf32> to vector<2x128xf32>
    %354 = vector.extract_strided_slice %349 {offsets = [0, 256], sizes = [2, 128], strides = [1, 1]} : vector<2x384xf32> to vector<2x128xf32>
    %355 = arith.mulf %353, %314 : vector<2x128xf32>
    %356 = arith.mulf %352, %351 : vector<2x128xf32>
    %357 = arith.addf %355, %356 : vector<2x128xf32>
    %358 = math.tanh %357 : vector<2x128xf32>
    %359 = arith.mulf %354, %358 : vector<2x128xf32>
    %360 = vector.extract_strided_slice %338 {offsets = [0, 512], sizes = [2, 512], strides = [1, 1]} : vector<2x1024xf32> to vector<2x512xf32>
    %361 = arith.addf %100, %360 : vector<2x512xf32>
    %362 = vector.extract_strided_slice %361 {offsets = [0, 0], sizes = [2, 384], strides = [1, 1]} : vector<2x512xf32> to vector<2x384xf32>
    %363 = arith.negf %362 : vector<2x384xf32>
    %364 = math.exp %363 : vector<2x384xf32>
    %cst_75 = arith.constant 1.000000e+00 : f32
    %365 = vector.broadcast %cst_75 : f32 to vector<2x384xf32>
    %366 = arith.addf %365, %364 : vector<2x384xf32>
    %367 = arith.divf %365, %366 : vector<2x384xf32>
    %368 = vector.extract_strided_slice %361 {offsets = [0, 384], sizes = [2, 128], strides = [1, 1]} : vector<2x512xf32> to vector<2x128xf32>
    %369 = math.tanh %368 : vector<2x128xf32>
    %370 = vector.extract_strided_slice %367 {offsets = [0, 0], sizes = [2, 128], strides = [1, 1]} : vector<2x384xf32> to vector<2x128xf32>
    %371 = vector.extract_strided_slice %367 {offsets = [0, 128], sizes = [2, 128], strides = [1, 1]} : vector<2x384xf32> to vector<2x128xf32>
    %372 = vector.extract_strided_slice %367 {offsets = [0, 256], sizes = [2, 128], strides = [1, 1]} : vector<2x384xf32> to vector<2x128xf32>
    %373 = arith.mulf %371, %332 : vector<2x128xf32>
    %374 = arith.mulf %370, %369 : vector<2x128xf32>
    %375 = arith.addf %373, %374 : vector<2x128xf32>
    %376 = math.tanh %375 : vector<2x128xf32>
    %377 = arith.mulf %372, %376 : vector<2x128xf32>
    %c7_i32 = arith.constant 7 : i32
    %378 = tpu.concatenate %359, %377 in 1 : vector<2x128xf32>, vector<2x128xf32> -> vector<2x256xf32>
    %379 = arith.truncf %378 : vector<2x256xf32> to vector<2x256xbf16>
    %c0_76 = arith.constant 0 : index
    %c0_77 = arith.constant 0 : index
    %380 = vector.load %arg3[%c0_76, %c0_77] : memref<256x1024xbf16, #tpu.memory_space<vmem>>, vector<256x1024xbf16>
    %cst_78 = arith.constant dense<0.000000e+00> : vector<2x1024xf32>
    %381 = tpu.matmul %379, %380, %cst_78 {dimension_numbers = #tpu.dot_dimension_numbers<[1], [0], [0], [1], [0, 0, 1, 1], [], []>} : vector<2x256xbf16>, vector<256x1024xbf16>, vector<2x1024xf32> -> vector<2x1024xf32>
    %382 = arith.index_cast %c7_i32 : i32 to index
    %c0_79 = arith.constant 0 : index
    %c0_80 = arith.constant 0 : index
    %383 = vector.load %arg8[%382, %c0_79, %c0_80] : memref<8x2x512xf32, #tpu.memory_space<vmem>>, vector<1x2x512xf32>
    %384 = vector.shape_cast %383 : vector<1x2x512xf32> to vector<2x512xf32>
    %385 = vector.extract_strided_slice %381 {offsets = [0, 0], sizes = [2, 512], strides = [1, 1]} : vector<2x1024xf32> to vector<2x512xf32>
    %386 = arith.addf %384, %385 : vector<2x512xf32>
    %387 = vector.extract_strided_slice %386 {offsets = [0, 0], sizes = [2, 384], strides = [1, 1]} : vector<2x512xf32> to vector<2x384xf32>
    %388 = arith.negf %387 : vector<2x384xf32>
    %389 = math.exp %388 : vector<2x384xf32>
    %cst_81 = arith.constant 1.000000e+00 : f32
    %390 = vector.broadcast %cst_81 : f32 to vector<2x384xf32>
    %391 = arith.addf %390, %389 : vector<2x384xf32>
    %392 = arith.divf %390, %391 : vector<2x384xf32>
    %393 = vector.extract_strided_slice %386 {offsets = [0, 384], sizes = [2, 128], strides = [1, 1]} : vector<2x512xf32> to vector<2x128xf32>
    %394 = math.tanh %393 : vector<2x128xf32>
    %395 = vector.extract_strided_slice %392 {offsets = [0, 0], sizes = [2, 128], strides = [1, 1]} : vector<2x384xf32> to vector<2x128xf32>
    %396 = vector.extract_strided_slice %392 {offsets = [0, 128], sizes = [2, 128], strides = [1, 1]} : vector<2x384xf32> to vector<2x128xf32>
    %397 = vector.extract_strided_slice %392 {offsets = [0, 256], sizes = [2, 128], strides = [1, 1]} : vector<2x384xf32> to vector<2x128xf32>
    %398 = arith.mulf %396, %357 : vector<2x128xf32>
    %399 = arith.mulf %395, %394 : vector<2x128xf32>
    %400 = arith.addf %398, %399 : vector<2x128xf32>
    %401 = math.tanh %400 : vector<2x128xf32>
    %402 = arith.mulf %397, %401 : vector<2x128xf32>
    %403 = vector.extract_strided_slice %381 {offsets = [0, 512], sizes = [2, 512], strides = [1, 1]} : vector<2x1024xf32> to vector<2x512xf32>
    %404 = arith.addf %100, %403 : vector<2x512xf32>
    %405 = vector.extract_strided_slice %404 {offsets = [0, 0], sizes = [2, 384], strides = [1, 1]} : vector<2x512xf32> to vector<2x384xf32>
    %406 = arith.negf %405 : vector<2x384xf32>
    %407 = math.exp %406 : vector<2x384xf32>
    %cst_82 = arith.constant 1.000000e+00 : f32
    %408 = vector.broadcast %cst_82 : f32 to vector<2x384xf32>
    %409 = arith.addf %408, %407 : vector<2x384xf32>
    %410 = arith.divf %408, %409 : vector<2x384xf32>
    %411 = vector.extract_strided_slice %404 {offsets = [0, 384], sizes = [2, 128], strides = [1, 1]} : vector<2x512xf32> to vector<2x128xf32>
    %412 = math.tanh %411 : vector<2x128xf32>
    %413 = vector.extract_strided_slice %410 {offsets = [0, 0], sizes = [2, 128], strides = [1, 1]} : vector<2x384xf32> to vector<2x128xf32>
    %414 = vector.extract_strided_slice %410 {offsets = [0, 128], sizes = [2, 128], strides = [1, 1]} : vector<2x384xf32> to vector<2x128xf32>
    %415 = vector.extract_strided_slice %410 {offsets = [0, 256], sizes = [2, 128], strides = [1, 1]} : vector<2x384xf32> to vector<2x128xf32>
    %416 = arith.mulf %414, %375 : vector<2x128xf32>
    %417 = arith.mulf %413, %412 : vector<2x128xf32>
    %418 = arith.addf %416, %417 : vector<2x128xf32>
    %419 = math.tanh %418 : vector<2x128xf32>
    %420 = arith.mulf %415, %419 : vector<2x128xf32>
    %c7_i32_83 = arith.constant 7 : i32
    %421 = tpu.concatenate %402, %420 in 1 : vector<2x128xf32>, vector<2x128xf32> -> vector<2x256xf32>
    %422 = arith.truncf %421 : vector<2x256xf32> to vector<2x256xbf16>
    %c0_84 = arith.constant 0 : index
    %c0_85 = arith.constant 0 : index
    %423 = vector.load %arg3[%c0_84, %c0_85] : memref<256x1024xbf16, #tpu.memory_space<vmem>>, vector<256x1024xbf16>
    %cst_86 = arith.constant dense<0.000000e+00> : vector<2x1024xf32>
    %424 = tpu.matmul %422, %423, %cst_86 {dimension_numbers = #tpu.dot_dimension_numbers<[1], [0], [0], [1], [0, 0, 1, 1], [], []>} : vector<2x256xbf16>, vector<256x1024xbf16>, vector<2x1024xf32> -> vector<2x1024xf32>
    %425 = vector.extract_strided_slice %424 {offsets = [0, 512], sizes = [2, 512], strides = [1, 1]} : vector<2x1024xf32> to vector<2x512xf32>
    %426 = arith.addf %100, %425 : vector<2x512xf32>
    %427 = vector.extract_strided_slice %426 {offsets = [0, 0], sizes = [2, 384], strides = [1, 1]} : vector<2x512xf32> to vector<2x384xf32>
    %428 = arith.negf %427 : vector<2x384xf32>
    %429 = math.exp %428 : vector<2x384xf32>
    %cst_87 = arith.constant 1.000000e+00 : f32
    %430 = vector.broadcast %cst_87 : f32 to vector<2x384xf32>
    %431 = arith.addf %430, %429 : vector<2x384xf32>
    %432 = arith.divf %430, %431 : vector<2x384xf32>
    %433 = vector.extract_strided_slice %426 {offsets = [0, 384], sizes = [2, 128], strides = [1, 1]} : vector<2x512xf32> to vector<2x128xf32>
    %434 = math.tanh %433 : vector<2x128xf32>
    %435 = vector.extract_strided_slice %432 {offsets = [0, 0], sizes = [2, 128], strides = [1, 1]} : vector<2x384xf32> to vector<2x128xf32>
    %436 = vector.extract_strided_slice %432 {offsets = [0, 128], sizes = [2, 128], strides = [1, 1]} : vector<2x384xf32> to vector<2x128xf32>
    %437 = vector.extract_strided_slice %432 {offsets = [0, 256], sizes = [2, 128], strides = [1, 1]} : vector<2x384xf32> to vector<2x128xf32>
    %438 = arith.mulf %436, %418 : vector<2x128xf32>
    %439 = arith.mulf %435, %434 : vector<2x128xf32>
    %440 = arith.addf %438, %439 : vector<2x128xf32>
    %441 = math.tanh %440 : vector<2x128xf32>
    %442 = arith.mulf %437, %441 : vector<2x128xf32>
    %c0_88 = arith.constant 0 : index
    %c0_89 = arith.constant 0 : index
    %443 = vector.load %arg5[%c0_88, %c0_89] : memref<1x128xf32, #tpu.memory_space<vmem>>, vector<1x128xf32>
    %444 = vector.broadcast %443 : vector<1x128xf32> to vector<2x128xf32>
    %445 = arith.mulf %442, %444 : vector<2x128xf32>
    %cst_90 = arith.constant dense<0.000000e+00> : vector<2xf32>
    %446 = vector.multi_reduction <add>, %445, %cst_90 [1] : vector<2x128xf32> to vector<2xf32>
    %447 = vector.shape_cast %446 : vector<2xf32> to vector<2x1xf32>
    %c0_91 = arith.constant 0 : index
    %c0_92 = arith.constant 0 : index
    %448 = vector.load %arg6[%c0_91, %c0_92] : memref<1x1xf32, #tpu.memory_space<vmem>>, vector<1x1xf32>
    %449 = vector.broadcast %448 : vector<1x1xf32> to vector<2x1xf32>
    %450 = arith.addf %447, %449 : vector<2x1xf32>
    %c0_93 = arith.constant 0 : index
    %c0_94 = arith.constant 0 : index
    %451 = vector.load %arg7[%c0_93, %c0_94] : memref<2x1xf32, #tpu.memory_space<vmem>>, vector<2x1xf32>
    tpu.vector_store %arg7[%c0_93, %c0_94], %450 {strides = array<i32>} : memref<2x1xf32, #tpu.memory_space<vmem>>, vector<2x1xf32>,
    return
  }
}

</mosaic_0001>

<bundles_post_ra>
// kernel: lstm_model_forward.1
= control target key start
LH: loop header
LB: loop body
LE: loop exit
PB: predicated region body
PF: predicated region fallthrough
CT: control target
= control target key end

     0   :  { %s6500_s0 = inlined_call_operand.vmem [shape: f32[16], index: 0, kind: input, shape index: {}]   ;;  %s6501_s1 = inlined_call_operand.hbm [shape: f32[1,512], index: 1, kind: input, shape index: {}]   ;;  %s6502_s2 = inlined_call_operand.vmem [shape: f32[1,512], index: 2, kind: input, shape index: {}]   ;;  %s6503_s3 = inlined_call_operand.hbm [shape: bf16[256,1024], index: 3, kind: input, shape index: {}]   ;;  %s6504_s4 = inlined_call_operand.vmem [shape: f32[1,512], index: 4, kind: input, shape index: {}]   ;;  %s6505_s5 = inlined_call_operand.vmem [shape: f32[1,128], index: 5, kind: input, shape index: {}]   ;;  %s6506_s6 = inlined_call_operand.<no memory space> [shape: f32[1,1], index: 6, kind: input, shape index: {}]   ;;  %s6507_s7 = inlined_call_operand.vmem [shape: f32[2,1], index: 7, kind: output, shape index: {}]  }
   0x1   :  { %v12_v0 = vstv %s6506_s6 }
   0x2   :  { %13 = vst [vmem:[#allocation3] sm:$0x1] %v12_v0 }
   0x3   :  { %14 = vsyncpa [#allocation6], 0 }
   0x4   :  { %15 = vsyncpa [#allocation5], 0  ;;  %s22_s28 = sshll.u32 %s6500_s0, 4  ;;  %s23_s28 = int_to_ptr.vmem [resolvable:$true] %s22_s28 }
   0x5   :  { %16 = vsyncpa [#allocation9], 0  ;;  %s31_s8 = sshll.u32 %s6501_s1, 4  ;;  %s4647_s9 = smov [#allocation4]   ;;  %s32_s8 = int_to_ptr.hbm [resolvable:$true] %s31_s8 }
   0x6   :  { %25 = dma.vmem_to_smem %s23_s28, 16, %s4647_s9, [#allocation6]  }
   0x7   :  { %s4648_s10 = smov [#allocation7]   ;;  %s43_s13 = sshll.u32 %s6503_s3, 4  ;;  %s44_s13 = int_to_ptr.hbm [resolvable:$true] %s43_s13 }
   0x8   :  { %s33_s11 = sshll.u32 %s4648_s10, 4  ;;  %s4649_s14 = smov [#allocation8]   ;;  %s34_s11 = int_to_ptr.vmem [resolvable:$true] %s33_s11 }
   0x9   :  { %36 = dma.hbm_to_vmem [thread:$0]  %s32_s8, 64, %s34_s11, [#allocation5]  }
   0xa   :  { %s45_s0 = sshll.u32 %s4649_s14, 4  ;;  %s4650_s15 = smov 512   ;;  %s46_s0 = int_to_ptr.vmem [resolvable:$true] %s45_s0 }
   0xb   :  { %s4651_s16 = smov 32  }
   0xc   :  { %51 = dma.hbm_to_vmem [thread:$0]  %s44_s13, 16384, %s46_s0, [#allocation9], %s4650_s15, %s4650_s15, %s4651_s16  }
   0xd   :  { %4641 = dma.done.wait [#allocation6], 16  }
   0xe   :  { %4642 = vsyncadd [#allocation6], 4294967280 }
   0xf   :  { %4643 = dma.done.wait [#allocation5], 64  }
  0x10   :  { %4644 = vsyncadd [#allocation5], 4294967232 }
  0x11   :  { %4645 = dma.done.wait [#allocation9], 16384  }
  0x12   :  { %4646 = vsyncadd [#allocation9], 4294950912 }
  0x13   :  { %70 = sfence }
  0x14   :  { %v4186_v1 = vld [vmem:[#allocation8 + $0x3c0] sm:$0xf]  ;;  %v4367_v3 = vld [vmem:[#allocation8 + $0x3c4] sm:$0xf]  ;;  %s4853_s1 = sld [smem:[#allocation4]]  ;;  %vm99_vm0 = vcmask 1040384  }
  0x15   :  { %v4371_v2 = vld [vmem:[#allocation8 + $0x3dc] sm:$0xf0]  ;;  %v4188_v5 = vld [vmem:[#allocation8 + $0x3e0] sm:$0xf0]  ;;  %s4858_s3 = sld [smem:[#allocation4 + $0x8]]  ;;  %vm111_vm1 = vcmask 1041408  }
  0x16   :  { %v4705_v4 = vor.u32 %v4371_v2, %v4186_v1  ;;  %v3930_v6 = vld [vmem:[#allocation8 + $0x1c0] sm:$0xf]  ;;  %v4707_v8 = vor.u32 %v4367_v3, %v4188_v5  ;;  %v4303_v10 = vld [vmem:[#allocation8 + $0x1c4] sm:$0xf]  ;;  %vm113_vm2 = vcmask 1045508   ;;  %vm115_vm3 = vcmask 1043456  }
  0x17   :  { %v4307_v7 = vld [vmem:[#allocation8 + $0x1dc] sm:$0xf0]  ;;  %v3932_v11 = vld [vmem:[#allocation8 + $0x1e0] sm:$0xf0]  ;;  %s3689_s19 = sld [smem:[#allocation4 + $0x1]] }
  0x18   :  { %6769 = vst [vmem:[#allocation13_spill] sm:$0xff] %v4705_v4  ;;  %v4709_v9 = vor.u32 %v4307_v7, %v3930_v6  ;;  %v4154_v12 = vld [vmem:[#allocation8 + $0x380] sm:$0xf]  ;;  %1247 = vmatpush.bf16.msra.mxu1 %v4705_v4  ;;  %v4712_v13 = vor.u32 %v4303_v10, %v3932_v11  ;;  %v4359_v15 = vld [vmem:[#allocation8 + $0x384] sm:$0xf]  ;;  %1273 = vmatpush.bf16.msra.mxu3 %v4707_v8  ;;  %s3690_s20 = sld [smem:[#allocation4 + $0x9]] }
  0x19   :  { %6770 = vst [vmem:[#allocation14_spill] sm:$0xff] %v4707_v8  ;;  %v4363_v14 = vld [vmem:[#allocation8 + $0x39c] sm:$0xf0]  ;;  %v4156_v16 = vld [vmem:[#allocation8 + $0x3a0] sm:$0xf0]  ;;  %s3692_s23 = sld [smem:[#allocation4 + $0xa]] }
  0x1a   :  { %6771 = vst [vmem:[#allocation15_spill] sm:$0xff] %v4709_v9  ;;  %1234 = vmatpush.bf16.msra.mxu0 %v4709_v9  ;;  %v4716_v17 = vor.u32 %v4363_v14, %v4154_v12  ;;  %v4718_v18 = vor.u32 %v4359_v15, %v4156_v16  ;;  %v3898_v19 = vld [vmem:[#allocation8 + $0x180] sm:$0xf]  ;;  %v4295_v21 = vld [vmem:[#allocation8 + $0x184] sm:$0xf]  ;;  %1260 = vmatpush.bf16.msra.mxu2 %v4712_v13  ;;  %s3693_s26 = sld [smem:[#allocation4 + $0x3]] }
  0x1b   :  { %6772 = vst [vmem:[#allocation16_spill] sm:$0xff] %v4712_v13  ;;  %v4299_v20 = vld [vmem:[#allocation8 + $0x19c] sm:$0xf0]  ;;  %v3900_v23 = vld [vmem:[#allocation8 + $0x1a0] sm:$0xf0]  ;;  %s3694_s27 = sld [smem:[#allocation4 + $0xb]] }
  0x1c   :  { %6773 = vst [vmem:[#allocation17_spill] sm:$0xff] %v4716_v17  ;;  %v4721_v22 = vor.u32 %v4299_v20, %v3898_v19  ;;  %v4122_v24 = vld [vmem:[#allocation8 + $0x340] sm:$0xf]  ;;  %v4723_v26 = vor.u32 %v4295_v21, %v3900_v23  ;;  %v4351_v27 = vld [vmem:[#allocation8 + $0x344] sm:$0xf]  ;;  %1248 = vmatpush.bf16.msra.mxu1 %v4716_v17  ;;  %1274 = vmatpush.bf16.msra.mxu3 %v4718_v18  ;;  %s3695_s28 = sld [smem:[#allocation4 + $0x4]] }
  0x1d   :  { %6774 = vst [vmem:[#allocation18_spill] sm:$0xff] %v4718_v18  ;;  %v4355_v25 = vld [vmem:[#allocation8 + $0x35c] sm:$0xf0]  ;;  %v4124_v28 = vld [vmem:[#allocation8 + $0x360] sm:$0xf0]  ;;  %s3696_s29 = sld [smem:[#allocation4 + $0xc]] }
  0x1e   :  { %6775 = vst [vmem:[#allocation19_spill] sm:$0xff] %v4721_v22  ;;  %v3866_v29 = vld [vmem:[#allocation8 + $0x140] sm:$0xf]  ;;  %v4726_v30 = vor.u32 %v4355_v25, %v4122_v24  ;;  %v4287_v32 = vld [vmem:[#allocation8 + $0x144] sm:$0xf]  ;;  %1235 = vmatpush.bf16.msra.mxu0 %v4721_v22  ;;  %v4730_v34 = vor.u32 %v4351_v27, %v4124_v28  ;;  %1261 = vmatpush.bf16.msra.mxu2 %v4723_v26  ;;  %s3697_s9 = sld [smem:[#allocation4 + $0x5]] }
  0x1f   :  { %6776 = vst [vmem:[#allocation20_spill] sm:$0xff] %v4723_v26  ;;  %v4291_v31 = vld [vmem:[#allocation8 + $0x15c] sm:$0xf0]  ;;  %v3868_v33 = vld [vmem:[#allocation8 + $0x160] sm:$0xf0]  ;;  %s3698_s10 = sld [smem:[#allocation4 + $0xd]] }
  0x20   :  { %6777 = vst [vmem:[#allocation21_spill] sm:$0xff] %v4726_v30  ;;  %v4732_v35 = vor.u32 %v4291_v31, %v3866_v29  ;;  %v4090_v36 = vld [vmem:[#allocation8 + $0x300] sm:$0xf]  ;;  %v4343_v38 = vld [vmem:[#allocation8 + $0x304] sm:$0xf]  ;;  %v4735_v39 = vor.u32 %v4287_v32, %v3868_v33  ;;  %1249 = vmatpush.bf16.msra.mxu1 %v4726_v30  ;;  %1275 = vmatpush.bf16.msra.mxu3 %v4730_v34  ;;  %s3699_s11 = sld [smem:[#allocation4 + $0x6]] }
  0x21   :  { %6778 = vst [vmem:[#allocation22_spill] sm:$0xff] %v4730_v34  ;;  %v4347_v37 = vld [vmem:[#allocation8 + $0x31c] sm:$0xf0]  ;;  %v4092_v40 = vld [vmem:[#allocation8 + $0x320] sm:$0xf0]  ;;  %s3700_s12 = sld [smem:[#allocation4 + $0xe]] }
  0x22   :  { %6779 = vst [vmem:[#allocation23_spill] sm:$0xff] %v4732_v35  ;;  %v3834_v41 = vld [vmem:[#allocation8 + $0x100] sm:$0xf]  ;;  %v4279_v43 = vld [vmem:[#allocation8 + $0x104] sm:$0xf]  ;;  %v4738_v45 = vor.u32 %v4347_v37, %v4090_v36  ;;  %1236 = vmatpush.bf16.msra.mxu0 %v4732_v35  ;;  %v4742_v46 = vor.u32 %v4343_v38, %v4092_v40  ;;  %1262 = vmatpush.bf16.msra.mxu2 %v4735_v39  ;;  %s3702_s14 = sld [smem:[#allocation4 + $0xf]] }
  0x23   :  { %6780 = vst [vmem:[#allocation24_spill] sm:$0xff] %v4735_v39  ;;  %v4283_v42 = vld [vmem:[#allocation8 + $0x11c] sm:$0xf0]  ;;  %v3836_v44 = vld [vmem:[#allocation8 + $0x120] sm:$0xf0] }
  0x24   :  { %6781 = vst [vmem:[#allocation25_spill] sm:$0xff] %v4738_v45  ;;  %v4744_v47 = vor.u32 %v4283_v42, %v3834_v41  ;;  %v4058_v48 = vld [vmem:[#allocation8 + $0x2c0] sm:$0xf]  ;;  %v4335_v50 = vld [vmem:[#allocation8 + $0x2c4] sm:$0xf]  ;;  %v4747_v51 = vor.u32 %v4279_v43, %v3836_v44  ;;  %1250 = vmatpush.bf16.msra.mxu1 %v4738_v45  ;;  %1276 = vmatpush.bf16.msra.mxu3 %v4742_v46 }
  0x25   :  { %6782 = vst [vmem:[#allocation26_spill] sm:$0xff] %v4742_v46  ;;  %v4339_v49 = vld [vmem:[#allocation8 + $0x2dc] sm:$0xf0]  ;;  %v4060_v52 = vld [vmem:[#allocation8 + $0x2e0] sm:$0xf0] }
  0x26   :  { %6783 = vst [vmem:[#allocation27_spill] sm:$0xff] %v4744_v47  ;;  %v3802_v53 = vld [vmem:[#allocation8 + $0xc0] sm:$0xf]  ;;  %v4271_v55 = vld [vmem:[#allocation8 + $0xc4] sm:$0xf]  ;;  %v4750_v57 = vor.u32 %v4339_v49, %v4058_v48  ;;  %1237 = vmatpush.bf16.msra.mxu0 %v4744_v47  ;;  %v4754_v58 = vor.u32 %v4335_v50, %v4060_v52  ;;  %1263 = vmatpush.bf16.msra.mxu2 %v4747_v51 }
  0x27   :  { %6784 = vst [vmem:[#allocation28_spill] sm:$0xff] %v4747_v51  ;;  %v4275_v54 = vld [vmem:[#allocation8 + $0xdc] sm:$0xf0]  ;;  %v3804_v56 = vld [vmem:[#allocation8 + $0xe0] sm:$0xf0] }
  0x28   :  { %6785 = vst [vmem:[#allocation29_spill] sm:$0xff] %v4750_v57  ;;  %v4756_v59 = vor.u32 %v4275_v54, %v3802_v53  ;;  %v4026_v60 = vld [vmem:[#allocation8 + $0x280] sm:$0xf]  ;;  %v4327_v62 = vld [vmem:[#allocation8 + $0x284] sm:$0xf]  ;;  %v4759_v63 = vor.u32 %v4271_v55, %v3804_v56  ;;  %1251 = vmatpush.bf16.msra.mxu1 %v4750_v57  ;;  %1277 = vmatpush.bf16.msra.mxu3 %v4754_v58 }
  0x29   :  { %6786 = vst [vmem:[#allocation30_spill] sm:$0xff] %v4754_v58  ;;  %v4331_v61 = vld [vmem:[#allocation8 + $0x29c] sm:$0xf0]  ;;  %v4028_v0 = vld [vmem:[#allocation8 + $0x2a0] sm:$0xf0] }
  0x2a   :  { %6787 = vst [vmem:[#allocation31_spill] sm:$0xff] %v4756_v59  ;;  %v3770_v1 = vld [vmem:[#allocation8 + $0x80] sm:$0xf]  ;;  %v4263_v3 = vld [vmem:[#allocation8 + $0x84] sm:$0xf]  ;;  %v4762_v6 = vor.u32 %v4331_v61, %v4026_v60  ;;  %1238 = vmatpush.bf16.msra.mxu0 %v4756_v59  ;;  %v4766_v7 = vor.u32 %v4327_v62, %v4028_v0  ;;  %1264 = vmatpush.bf16.msra.mxu2 %v4759_v63 }
  0x2b   :  { %6788 = vst [vmem:[#allocation32_spill] sm:$0xff] %v4759_v63  ;;  %v4267_v2 = vld [vmem:[#allocation8 + $0x9c] sm:$0xf0]  ;;  %v3772_v5 = vld [vmem:[#allocation8 + $0xa0] sm:$0xf0] }
  0x2c   :  { %6789 = vst [vmem:[#allocation33_spill] sm:$0xff] %v4762_v6  ;;  %v4768_v10 = vor.u32 %v4267_v2, %v3770_v1  ;;  %v3994_v11 = vld [vmem:[#allocation8 + $0x240] sm:$0xf]  ;;  %v4319_v14 = vld [vmem:[#allocation8 + $0x244] sm:$0xf]  ;;  %v4771_v15 = vor.u32 %v4263_v3, %v3772_v5  ;;  %1252 = vmatpush.bf16.msra.mxu1 %v4762_v6  ;;  %1278 = vmatpush.bf16.msra.mxu3 %v4766_v7 }
  0x2d   :  { %6790 = vst [vmem:[#allocation34_spill] sm:$0xff] %v4766_v7  ;;  %v4323_v12 = vld [vmem:[#allocation8 + $0x25c] sm:$0xf0]  ;;  %v3996_v16 = vld [vmem:[#allocation8 + $0x260] sm:$0xf0] }
  0x2e   :  { %6791 = vst [vmem:[#allocation35_spill] sm:$0xff] %v4768_v10  ;;  %v3738_v19 = vld [vmem:[#allocation8 + $0x40] sm:$0xf]  ;;  %v4255_v21 = vld [vmem:[#allocation8 + $0x44] sm:$0xf]  ;;  %v4774_v24 = vor.u32 %v4323_v12, %v3994_v11  ;;  %1239 = vmatpush.bf16.msra.mxu0 %v4768_v10  ;;  %v4778_v28 = vor.u32 %v4319_v14, %v3996_v16  ;;  %1265 = vmatpush.bf16.msra.mxu2 %v4771_v15 }
  0x2f   :  { %6792 = vst [vmem:[#allocation36_spill] sm:$0xff] %v4771_v15  ;;  %v4259_v20 = vld [vmem:[#allocation8 + $0x5c] sm:$0xf0]  ;;  %v3740_v23 = vld [vmem:[#allocation8 + $0x60] sm:$0xf0] }
  0x30   :  { %6793 = vst [vmem:[#allocation37_spill] sm:$0xff] %v4774_v24  ;;  %v3962_v25 = vld [vmem:[#allocation8 + $0x200] sm:$0xf]  ;;  %v4780_v29 = vor.u32 %v4259_v20, %v3738_v19  ;;  %v4311_v31 = vld [vmem:[#allocation8 + $0x204] sm:$0xf]  ;;  %v4783_v36 = vor.u32 %v4255_v21, %v3740_v23  ;;  %1253 = vmatpush.bf16.msra.mxu1 %v4774_v24  ;;  %1279 = vmatpush.bf16.msra.mxu3 %v4778_v28 }
  0x31   :  { %v4315_v27 = vld [vmem:[#allocation8 + $0x21c] sm:$0xf0]  ;;  %6794 = vst [vmem:[#allocation38_spill] sm:$0xff] %v4778_v28  ;;  %v3964_v32 = vld [vmem:[#allocation8 + $0x220] sm:$0xf0] }
  0x32   :  { %6795 = vst [vmem:[#allocation39_spill] sm:$0xff] %v4780_v29  ;;  %v4194_v33 = vld [vmem:[#allocation8 + $0x3c8] sm:$0xf]  ;;  %v4368_v38 = vld [vmem:[#allocation8 + $0x3cc] sm:$0xf]  ;;  %v4786_v44 = vor.u32 %v4315_v27, %v3962_v25  ;;  %1240 = vmatpush.bf16.msra.mxu0 %v4780_v29  ;;  %v4790_v52 = vor.u32 %v4311_v31, %v3964_v32  ;;  %1266 = vmatpush.bf16.msra.mxu2 %v4783_v36  ;;  %v74_v29 = vstv %s4853_s1 }
  0x33   :  { %6796 = vst [vmem:[#allocation40_spill] sm:$0xff] %v4783_v36  ;;  %v4372_v37 = vld [vmem:[#allocation8 + $0x3e4] sm:$0xf0]  ;;  %v4196_v40 = vld [vmem:[#allocation8 + $0x3e8] sm:$0xf0] }
  0x34   :  { %v3706_v41 = vld [vmem:[#allocation8] sm:$0xf]  ;;  %v4247_v43 = vld [vmem:[#allocation8 + $0x4] sm:$0xf]  ;;  %6797 = vst [vmem:[#allocation41_spill] sm:$0xff] %v4786_v44  ;;  %v4792_v53 = vor.u32 %v4372_v37, %v4194_v33  ;;  %v4795_v56 = vor.u32 %v4368_v38, %v4196_v40  ;;  %1254 = vmatpush.bf16.msra.mxu1 %v4786_v44  ;;  %1280 = vmatpush.bf16.msra.mxu3 %v4790_v52 }
  0x35   :  { %v4251_v42 = vld [vmem:[#allocation8 + $0x1c] sm:$0xf0]  ;;  %v3708_v48 = vld [vmem:[#allocation8 + $0x20] sm:$0xf0]  ;;  %v3938_v49 = vld [vmem:[#allocation8 + $0x1c8] sm:$0xf] }
  0x36   :  { %v4308_v50 = vld [vmem:[#allocation8 + $0x1e4] sm:$0xf0]  ;;  %6798 = vst [vmem:[#allocation42_spill] sm:$0xff] %v4790_v52  ;;  %v4304_v54 = vld [vmem:[#allocation8 + $0x1cc] sm:$0xf]  ;;  %v4797_v60 = vor.u32 %v4251_v42, %v3706_v41  ;;  %v4799_v0 = vor.u32 %v4247_v43, %v3708_v48 }
  0x37   :  { %6799 = vst [vmem:[#allocation43_spill] sm:$0xff] %v4792_v53  ;;  %v3940_v55 = vld [vmem:[#allocation8 + $0x1e8] sm:$0xf0]  ;;  %v4162_v61 = vld [vmem:[#allocation8 + $0x388] sm:$0xf]  ;;  %v4801_v1 = vor.u32 %v4308_v50, %v3938_v49 }
  0x38   :  { %6800 = vst [vmem:[#allocation44_spill] sm:$0xff] %v4795_v56  ;;  %v4364_v62 = vld [vmem:[#allocation8 + $0x3a4] sm:$0xf0]  ;;  %v4360_v2 = vld [vmem:[#allocation8 + $0x38c] sm:$0xf]  ;;  %v4804_v5 = vor.u32 %v4304_v54, %v3940_v55  ;;  %1299 = vmatpush.bf16.msrb.mxu1 %v4792_v53  ;;  %1325 = vmatpush.bf16.msrb.mxu3 %v4795_v56  ;;  %v6508_v55 = vmov 0.0|0.0  }
  0x39   :  { %6801 = vst [vmem:[#allocation45_spill] sm:$0xff] %v4797_v60  ;;  %v4164_v3 = vld [vmem:[#allocation8 + $0x3a8] sm:$0xf0]  ;;  %v3906_v11 = vld [vmem:[#allocation8 + $0x188] sm:$0xf]  ;;  %v4808_v14 = vor.u32 %v4364_v62, %v4162_v61  ;;  %1241 = vmatpush.bf16.msra.mxu0 %v4797_v60  ;;  %1267 = vmatpush.bf16.msra.mxu2 %v4799_v0 }
  0x3a   :  { %6802 = vst [vmem:[#allocation46_spill] sm:$0xff] %v4799_v0  ;;  %v4300_v12 = vld [vmem:[#allocation8 + $0x1a4] sm:$0xf0]  ;;  %v4296_v16 = vld [vmem:[#allocation8 + $0x18c] sm:$0xf]  ;;  %v4812_v20 = vor.u32 %v4360_v2, %v4164_v3  ;;  %1255 = vmatmul.bf16.vlgmr.msra.gmra.mxu1 %v6508_v55  ;;  %1281 = vmatmul.bf16.vlgmr.msra.gmra.mxu3 %v6508_v55 }
  0x3b   :  { %6803 = vst [vmem:[#allocation47_spill] sm:$0xff] %v4801_v1  ;;  %v3908_v19 = vld [vmem:[#allocation8 + $0x1a8] sm:$0xf0]  ;;  %v4130_v21 = vld [vmem:[#allocation8 + $0x348] sm:$0xf]  ;;  %v4816_v25 = vor.u32 %v4300_v12, %v3906_v11 }
  0x3c   :  { %6804 = vst [vmem:[#allocation48_spill] sm:$0xff] %v4804_v5  ;;  %v4356_v23 = vld [vmem:[#allocation8 + $0x364] sm:$0xf0]  ;;  %v4352_v27 = vld [vmem:[#allocation8 + $0x34c] sm:$0xf]  ;;  %v4819_v32 = vor.u32 %v4296_v16, %v3908_v19  ;;  %1300 = vmatpush.bf16.msrb.mxu1 %v4808_v14  ;;  %1326 = vmatpush.bf16.msrb.mxu3 %v4812_v20 }
  0x3d   :  { %6805 = vst [vmem:[#allocation49_spill] sm:$0xff] %v4808_v14  ;;  %1286 = vmatpush.bf16.msrb.mxu0 %v4801_v1  ;;  %v4132_v31 = vld [vmem:[#allocation8 + $0x368] sm:$0xf0]  ;;  %1312 = vmatpush.bf16.msrb.mxu2 %v4804_v5  ;;  %v3874_v33 = vld [vmem:[#allocation8 + $0x148] sm:$0xf]  ;;  %v4822_v38 = vor.u32 %v4356_v23, %v4130_v21 }
  0x3e   :  { %6806 = vst [vmem:[#allocation50_spill] sm:$0xff] %v4812_v20  ;;  %v4292_v37 = vld [vmem:[#allocation8 + $0x164] sm:$0xf0]  ;;  %v4288_v40 = vld [vmem:[#allocation8 + $0x14c] sm:$0xf]  ;;  %v4825_v42 = vor.u32 %v4352_v27, %v4132_v31 }
  0x3f   :  { %6807 = vst [vmem:[#allocation51_spill] sm:$0xff] %v4816_v25  ;;  %v3876_v41 = vld [vmem:[#allocation8 + $0x168] sm:$0xf0]  ;;  %v4098_v43 = vld [vmem:[#allocation8 + $0x308] sm:$0xf]  ;;  %v4828_v49 = vor.u32 %v4292_v37, %v3874_v33 }
  0x40   :  { %6808 = vst [vmem:[#allocation52_spill] sm:$0xff] %v4819_v32  ;;  %v4348_v48 = vld [vmem:[#allocation8 + $0x324] sm:$0xf0]  ;;  %v4344_v50 = vld [vmem:[#allocation8 + $0x30c] sm:$0xf]  ;;  %v4832_v61 = vor.u32 %v4288_v40, %v3876_v41  ;;  %1301 = vmatpush.bf16.msrb.mxu1 %v4822_v38  ;;  %1327 = vmatpush.bf16.msrb.mxu3 %v4825_v42 }
  0x41   :  { %6809 = vst [vmem:[#allocation53_spill] sm:$0xff] %v4822_v38  ;;  %1287 = vmatpush.bf16.msrb.mxu0 %v4816_v25  ;;  %v4100_v54 = vld [vmem:[#allocation8 + $0x328] sm:$0xf0]  ;;  %1313 = vmatpush.bf16.msrb.mxu2 %v4819_v32  ;;  %v3842_v62 = vld [vmem:[#allocation8 + $0x108] sm:$0xf]  ;;  %v4836_v3 = vor.u32 %v4348_v48, %v4098_v43 }
  0x42   :  { %6810 = vst [vmem:[#allocation54_spill] sm:$0xff] %v4825_v42  ;;  %v4284_v2 = vld [vmem:[#allocation8 + $0x124] sm:$0xf0]  ;;  %v4280_v11 = vld [vmem:[#allocation8 + $0x10c] sm:$0xf]  ;;  %v4839_v16 = vor.u32 %v4344_v50, %v4100_v54 }
  0x43   :  { %6811 = vst [vmem:[#allocation55_spill] sm:$0xff] %v4828_v49  ;;  %v3844_v12 = vld [vmem:[#allocation8 + $0x128] sm:$0xf0]  ;;  %v4066_v19 = vld [vmem:[#allocation8 + $0x2c8] sm:$0xf]  ;;  %v4842_v27 = vor.u32 %v4284_v2, %v3842_v62 }
  0x44   :  { %6812 = vst [vmem:[#allocation56_spill] sm:$0xff] %v4832_v61  ;;  %v4340_v21 = vld [vmem:[#allocation8 + $0x2e4] sm:$0xf0]  ;;  %v4336_v23 = vld [vmem:[#allocation8 + $0x2cc] sm:$0xf]  ;;  %v4845_v40 = vor.u32 %v4280_v11, %v3844_v12  ;;  %1302 = vmatpush.bf16.msrb.mxu1 %v4836_v3  ;;  %1328 = vmatpush.bf16.msrb.mxu3 %v4839_v16 }
  0x45   :  { %6813 = vst [vmem:[#allocation57_spill] sm:$0xff] %v4836_v3  ;;  %1288 = vmatpush.bf16.msrb.mxu0 %v4828_v49  ;;  %v4068_v31 = vld [vmem:[#allocation8 + $0x2e8] sm:$0xf0]  ;;  %v3810_v33 = vld [vmem:[#allocation8 + $0xc8] sm:$0xf]  ;;  %1314 = vmatpush.bf16.msrb.mxu2 %v4832_v61  ;;  %v4848_v50 = vor.u32 %v4340_v21, %v4066_v19 }
  0x46   :  { %6814 = vst [vmem:[#allocation58_spill] sm:$0xff] %v4839_v16  ;;  %v4276_v37 = vld [vmem:[#allocation8 + $0xe4] sm:$0xf0]  ;;  %v4272_v41 = vld [vmem:[#allocation8 + $0xcc] sm:$0xf]  ;;  %v4851_v62 = vor.u32 %v4336_v23, %v4068_v31 }
  0x47   :  { %6815 = vst [vmem:[#allocation59_spill] sm:$0xff] %v4842_v27  ;;  %v3812_v43 = vld [vmem:[#allocation8 + $0xe8] sm:$0xf0]  ;;  %v4034_v48 = vld [vmem:[#allocation8 + $0x288] sm:$0xf]  ;;  %v4856_v11 = vor.u32 %v4276_v37, %v3810_v33 }
  0x48   :  { %6816 = vst [vmem:[#allocation60_spill] sm:$0xff] %v4845_v40  ;;  %v4332_v54 = vld [vmem:[#allocation8 + $0x2a4] sm:$0xf0]  ;;  %v4328_v55 = vld [vmem:[#allocation8 + $0x28c] sm:$0xf]  ;;  %v4861_v12 = vor.u32 %v4272_v41, %v3812_v43  ;;  %1303 = vmatpush.bf16.msrb.mxu1 %v4848_v50  ;;  %1329 = vmatpush.bf16.msrb.mxu3 %v4851_v62 }
  0x49   :  { %6817 = vst [vmem:[#allocation61_spill] sm:$0xff] %v4848_v50  ;;  %v4036_v32 = vld [vmem:[#allocation8 + $0x2a8] sm:$0xf0]  ;;  %v3778_v2 = vld [vmem:[#allocation8 + $0x88] sm:$0xf]  ;;  %1289 = vmatpush.bf16.msrb.mxu0 %v4842_v27  ;;  %1315 = vmatpush.bf16.msrb.mxu2 %v4845_v40  ;;  %v4864_v23 = vor.u32 %v4332_v54, %v4034_v48 }
  0x4a   :  { %6818 = vst [vmem:[#allocation62_spill] sm:$0xff] %v4851_v62  ;;  %v4268_v49 = vld [vmem:[#allocation8 + $0xa4] sm:$0xf0]  ;;  %v4264_v19 = vld [vmem:[#allocation8 + $0x8c] sm:$0xf]  ;;  %v4867_v33 = vor.u32 %v4328_v55, %v4036_v32 }
  0x4b   :  { %6819 = vst [vmem:[#allocation63_spill] sm:$0xff] %v4856_v11  ;;  %v3780_v21 = vld [vmem:[#allocation8 + $0xa8] sm:$0xf0]  ;;  %v4002_v61 = vld [vmem:[#allocation8 + $0x248] sm:$0xf]  ;;  %v4872_v1 = vor.u32 %v4268_v49, %v3778_v2 }
  0x4c   :  { %6820 = vst [vmem:[#allocation64_spill] sm:$0xff] %v4861_v12  ;;  %v4324_v31 = vld [vmem:[#allocation8 + $0x264] sm:$0xf0]  ;;  %v4320_v25 = vld [vmem:[#allocation8 + $0x24c] sm:$0xf]  ;;  %v4875_v60 = vor.u32 %v4264_v19, %v3780_v21  ;;  %1304 = vmatpush.bf16.msrb.mxu1 %v4864_v23  ;;  %1330 = vmatpush.bf16.msrb.mxu3 %v4867_v33 }
  0x4d   :  { %6821 = vst [vmem:[#allocation65_spill] sm:$0xff] %v4864_v23  ;;  %v4004_v5 = vld [vmem:[#allocation8 + $0x268] sm:$0xf0]  ;;  %v3746_v37 = vld [vmem:[#allocation8 + $0x48] sm:$0xf]  ;;  %1290 = vmatpush.bf16.msrb.mxu0 %v4856_v11  ;;  %1316 = vmatpush.bf16.msrb.mxu2 %v4861_v12  ;;  %v4884_v49 = vor.u32 %v4324_v31, %v4002_v61  ;;  %v78_v12 = vstv %s4858_s3 }
  0x4e   :  { %6822 = vst [vmem:[#allocation66_spill] sm:$0xff] %v4867_v33  ;;  %v4260_v27 = vld [vmem:[#allocation8 + $0x64] sm:$0xf0]  ;;  %v4256_v40 = vld [vmem:[#allocation8 + $0x4c] sm:$0xf]  ;;  %v4889_v19 = vor.u32 %v4320_v25, %v4004_v5 }
  0x4f   :  { %v3748_v41 = vld [vmem:[#allocation8 + $0x68] sm:$0xf0]  ;;  %v4869_v43 = vld [vmem:[#allocation7] sm:$0xf]  ;;  %6824 = vst [vmem:[#allocation68_spill] sm:$0xff] %v4872_v1  ;;  %v4893_v62 = vor.u32 %v4260_v27, %v3746_v37 }
  0x50   :  { %6823 = vst [vmem:[#allocation67_spill] sm:$0xff] %v4869_v43  ;;  %v3970_v48 = vld [vmem:[#allocation8 + $0x208] sm:$0xf]  ;;  %v4312_v0 = vld [vmem:[#allocation8 + $0x20c] sm:$0xf]  ;;  %v75_v10 = vmul.f32 %v74_v29, %v4869_v43  ;;  %v79_v21 = vmul.f32 %v78_v12, %v4869_v43  ;;  %v4895_v23 = vor.u32 %v4256_v40, %v3748_v41  ;;  %1305 = vmatpush.bf16.msrb.mxu1 %v4884_v49 }
  0x51   :  { %v4316_v54 = vld [vmem:[#allocation8 + $0x224] sm:$0xf0]  ;;  %6825 = vst [vmem:[#allocation69_spill] sm:$0xff] %v4875_v60  ;;  %v3972_v32 = vld [vmem:[#allocation8 + $0x228] sm:$0xf0]  ;;  %1291 = vmatpush.bf16.msrb.mxu0 %v4872_v1  ;;  %1317 = vmatpush.bf16.msrb.mxu2 %v4875_v60 }
  0x52   :  { %v4202_v55 = vld [vmem:[#allocation8 + $0x3d0] sm:$0xf]  ;;  %v4880_v36 = vld [vmem:[%s6502_s2] sm:$0xf]  ;;  %6827 = vst [vmem:[#allocation71_spill] sm:$0xff] %v4884_v49  ;;  %v4897_v61 = vor.u32 %v4316_v54, %v3970_v48  ;;  %v4901_v29 = vor.u32 %v4312_v0, %v3972_v32  ;;  %1331 = vmatpush.bf16.msrb.mxu3 %v4889_v19 }
  0x53   :  { %6826 = vst [vmem:[#allocation70_spill] sm:$0xff] %v4880_v36  ;;  %v4373_v2 = vld [vmem:[#allocation8 + $0x3ec] sm:$0xf0]  ;;  %v4369_v11 = vld [vmem:[#allocation8 + $0x3d4] sm:$0xf]  ;;  %v76_v50 = vadd.f32 %v75_v10, %v4880_v36  ;;  %v80_v27 = vadd.f32 %v79_v21, %v4880_v36 }
  0x54   :  { %v4204_v15 = vld [vmem:[#allocation8 + $0x3f0] sm:$0xf0]  ;;  %6828 = vst [vmem:[#allocation72_spill] sm:$0xff] %v4889_v19  ;;  %v3714_v31 = vld [vmem:[#allocation8 + $0x8] sm:$0xf]  ;;  %v4903_v5 = vor.u32 %v4373_v2, %v4202_v55  ;;  %1306 = vmatpush.bf16.msrb.mxu1 %v4897_v61 }
  0x55   :  { %6829 = vst [vmem:[#allocation73_spill] sm:$0xff] %v4893_v62  ;;  %v4905_v25 = vor.u32 %v4369_v11, %v4204_v15  ;;  %v4252_v12 = vld [vmem:[#allocation8 + $0x24] sm:$0xf0]  ;;  %v4248_v43 = vld [vmem:[#allocation8 + $0xc] sm:$0xf]  ;;  %v82_v40 = vperm.slane %v76_v50, 0  ;;  %1292 = vmatpush.bf16.msrb.mxu0 %v4893_v62  ;;  %1318 = vmatpush.bf16.msrb.mxu2 %v4895_v23 }
  0x56   :  { %6830 = vst [vmem:[#allocation74_spill] sm:$0xff] %v4895_v23  ;;  %v3716_v1 = vld [vmem:[#allocation8 + $0x28] sm:$0xf0]  ;;  %v83_v37 = vperm.slane %v76_v50, 1  ;;  %v84_v41 = vperm.slane %v76_v50, 2  ;;  %v85_v48 = vperm.slane %v76_v50, 3  ;;  %v4911_v15 = vor.u32 %v4252_v12, %v3714_v31  ;;  %1332 = vmatpush.bf16.msrb.mxu3 %v4901_v29 }
  0x57   :  { %6831 = vst [vmem:[#allocation75_spill] sm:$0xff] %v4897_v61  ;;  %v91_v10 = vperm.slane %v80_v27, 0  ;;  %v92_v0 = vperm.slane %v80_v27, 1  ;;  %v93_v54 = vperm.slane %v80_v27, 2  ;;  %v94_v32 = vperm.slane %v80_v27, 3 }
  0x58   :  { %6832 = vst [vmem:[#allocation76_spill] sm:$0xff] %v4901_v29  ;;  %v4913_v11 = vor.u32 %v4248_v43, %v3716_v1  ;;  %1351 = vmatpush.bf16.msra.mxu1 %v4903_v5  ;;  %v4281_v23 = vld [vmem:[#allocation8 + $0x114] sm:$0xf]  ;;  %v3956_v62 = vld [vmem:[#allocation8 + $0x1f8] sm:$0xf0] }
  0x59   :  { %6833 = vst [vmem:[#allocation77_spill] sm:$0xff] %v4903_v5  ;;  %v100_v55 = vsel %vm99_vm0, %v82_v40, %v91_v10  ;;  %v101_v50 = vsel %vm99_vm0, %v83_v37, %v92_v0  ;;  %v102_v2 = vsel %vm99_vm0, %v84_v41, %v93_v54  ;;  %v103_v21 = vsel %vm99_vm0, %v85_v48, %v94_v32  ;;  %v4170_v10 = vld [vmem:[#allocation8 + $0x390] sm:$0xf]  ;;  %v4361_v32 = vld [vmem:[#allocation8 + $0x394] sm:$0xf] }
  0x5a   :  { %6834 = vst [vmem:[#allocation78_spill] sm:$0xff] %v4905_v25  ;;  %v108_v27 = vrot.slane %v101_v50, 6  ;;  %v109_v36 = vrot.slane %v102_v2, 4  ;;  %v110_v31 = vrot.slane %v103_v21, 2  ;;  %1377 = vmatpush.bf16.msra.mxu3 %v4905_v25  ;;  %1293 = vmatpush.bf16.msrb.mxu0 %v4911_v15  ;;  %v6837_v40 = vmov 0.0|0.0  }
  0x5b   :  { %6835 = vst [vmem:[#allocation79_spill] sm:$0xff] %v4911_v15  ;;  %1319 = vmatpush.bf16.msrb.mxu2 %v4913_v11  ;;  %1307 = vmatmul.bf16.vlgmr.msrb.gmra.mxu1 %v6837_v40  ;;  %v4365_v0 = vld [vmem:[#allocation8 + $0x3ac] sm:$0xf0] }
  0x5c   :  { %6836 = vst [vmem:[#allocation80_spill] sm:$0xff] %v4913_v11  ;;  %v112_v1 = vsel %vm111_vm1, %v100_v55, %v108_v27  ;;  %v114_v43 = vsel %vm113_vm2, %v109_v36, %v110_v31  ;;  %1333 = vmatmul.bf16.vlgmr.msrb.gmra.mxu3 %v6837_v40  ;;  %v4931_v54 = vor.u32 %v4365_v0, %v4170_v10  ;;  %v4172_v55 = vld [vmem:[#allocation8 + $0x3b0] sm:$0xf0]  ;;  %v4138_v21 = vld [vmem:[#allocation8 + $0x350] sm:$0xf] }
  0x5d   :  { %v116_v12 = vsel %vm115_vm3, %v112_v1, %v114_v43  ;;  %v4933_v50 = vor.u32 %v4361_v32, %v4172_v55  ;;  %v4357_v27 = vld [vmem:[#allocation8 + $0x36c] sm:$0xf0]  ;;  %v4353_v31 = vld [vmem:[#allocation8 + $0x354] sm:$0xf] }
  0x5e   :  { %v3703_v37 = vmul.f32 -1.442695, %v116_v12  ;;  %6838 = vst [vmem:[#allocation81_spill] sm:$0xff] %v4931_v54  ;;  %v451_v36 = vrot.slane %v116_v12, 6  ;;  %1352 = vmatpush.bf16.msra.mxu1 %v4931_v54  ;;  %v4937_v43 = vor.u32 %v4357_v27, %v4138_v21  ;;  %v4106_v32 = vld [vmem:[#allocation8 + $0x310] sm:$0xf] }
  0x5f   :  { %6839 = vst [vmem:[#allocation82_spill] sm:$0xff] %v4933_v50  ;;  %1378 = vmatpush.bf16.msra.mxu3 %v4933_v50  ;;  %v4349_v55 = vld [vmem:[#allocation8 + $0x32c] sm:$0xf0]  ;;  %v4345_v50 = vld [vmem:[#allocation8 + $0x314] sm:$0xf] }
  0x60   :  { %4383 = vpow2.f32 %v3703_v37  ;;  %6840 = vst [vmem:[#allocation83_spill] sm:$0xff] %v4937_v43  ;;  %v4140_v37 = vld [vmem:[#allocation8 + $0x370] sm:$0xf0]  ;;  %v4943_v25 = vor.u32 %v4349_v55, %v4106_v32  ;;  %v4301_v15 = vld [vmem:[#allocation8 + $0x1ac] sm:$0xf0] }
  0x61   :  { %v4939_v10 = vor.u32 %v4353_v31, %v4140_v37  ;;  %v4108_v21 = vld [vmem:[#allocation8 + $0x330] sm:$0xf0]  ;;  %v4341_v37 = vld [vmem:[#allocation8 + $0x2ec] sm:$0xf0] }
  0x62   :  { %1353 = vmatpush.bf16.msra.mxu1 %v4937_v43  ;;  %6842 = vst [vmem:[#allocation85_spill] sm:$0xff] %v4943_v25  ;;  %v4044_v11 = vld [vmem:[#allocation8 + $0x2b0] sm:$0xf0] }
  0x63   :  { %6841 = vst [vmem:[#allocation84_spill] sm:$0xff] %v4939_v10  ;;  %1379 = vmatpush.bf16.msra.mxu3 %v4939_v10  ;;  %v4337_v10 = vld [vmem:[#allocation8 + $0x2d4] sm:$0xf] }
  0x66   :  { %v4384_v41 = vpop.eup %4383  ;;  %1354 = vmatpush.bf16.msra.mxu1 %v4943_v25 }
  0x67   :  { %v434_v48 = vadd.f32 1.0, %v4384_v41 }
  0x69   :  { %4385 = vrcp.f32 %v434_v48  ;;  %v446_v41 = vand.u32 2147483648, %v434_v48  ;;  %vm440_vm4 = vweird.f32 %v434_v48  ;;  %v444_v12 = vand.u32 2147483647, %v434_v48 }
  0x6a   :  { %4387 = vtanh.f32 %v451_v36  ;;  %v4945_v36 = vor.u32 %v4345_v50, %v4108_v21  ;;  %v4329_v21 = vld [vmem:[#allocation8 + $0x294] sm:$0xf] }
  0x6b   :  { %v447_v27 = vor.u32 1.1754944e-38, %v446_v41  ;;  %vm445_vm7 = vcmp.eq.f32.partialorder %v444_v12, 8.507059e+37  ;;  %v4333_v12 = vld [vmem:[#allocation8 + $0x2ac] sm:$0xf0] }
  0x6c   :  { %6843 = vst [vmem:[#allocation86_spill] sm:$0xff] %v4945_v36  ;;  %1380 = vmatpush.bf16.msra.mxu3 %v4945_v36 }
  0x6f   :  { %v4386_v2 = vpop.eup %4385 }
  0x70   :  { %v436_v1 = vmul.f32 %v4386_v2, %v434_v48  ;;  %vm441_vm5 = vweird.f32 %v4386_v2  ;;  %v4388_v48 = vpop.eup %4387 }
  0x71   :  { %vm442_vm6 = vmor %vm440_vm4, %vm441_vm5 }
  0x72   :  { %v437_v0 = vsub.f32 1.0, %v436_v1  ;;  %v4074_v1 = vld [vmem:[#allocation8 + $0x2d0] sm:$0xf] }
  0x73   :  { %v4949_v5 = vor.u32 %v4341_v37, %v4074_v1  ;;  %v4012_v1 = vld [vmem:[#allocation8 + $0x270] sm:$0xf0] }
  0x74   :  { %v438_v54 = vmul.f32 %v4386_v2, %v437_v0  ;;  %v4076_v0 = vld [vmem:[#allocation8 + $0x2f0] sm:$0xf0] }
  0x75   :  { %6844 = vst [vmem:[#allocation87_spill] sm:$0xff] %v4949_v5  ;;  %v4951_v55 = vor.u32 %v4337_v10, %v4076_v0  ;;  %1355 = vmatpush.bf16.msra.mxu1 %v4949_v5  ;;  %v4325_v10 = vld [vmem:[#allocation8 + $0x26c] sm:$0xf0] }
  0x76   :  { %v439_v31 = vadd.f32 %v4386_v2, %v438_v54  ;;  %v4042_v54 = vld [vmem:[#allocation8 + $0x290] sm:$0xf] }
  0x77   :  { %6845 = vst [vmem:[#allocation88_spill] sm:$0xff] %v4951_v55  ;;  %1381 = vmatpush.bf16.msra.mxu3 %v4951_v55  ;;  %v4955_v25 = vor.u32 %v4333_v12, %v4042_v54  ;;  %v4317_v54 = vld [vmem:[#allocation8 + $0x22c] sm:$0xf0]  ;;  %v4313_v12 = vld [vmem:[#allocation8 + $0x214] sm:$0xf] }
  0x78   :  { %v443_v43 = vsel %vm442_vm6, %v4386_v2, %v439_v31  ;;  %v4957_v2 = vor.u32 %v4329_v21, %v4044_v11  ;;  %v3946_v11 = vld [vmem:[#allocation8 + $0x1d0] sm:$0xf] }
  0x79   :  { %v448_v32 = vsel %vm445_vm7, %v447_v27, %v443_v43  ;;  %6846 = vst [vmem:[#allocation89_spill] sm:$0xff] %v4955_v25  ;;  %1356 = vmatpush.bf16.msra.mxu1 %v4955_v25  ;;  %v4010_v43 = vld [vmem:[#allocation8 + $0x250] sm:$0xf]  ;;  %v4321_v27 = vld [vmem:[#allocation8 + $0x254] sm:$0xf] }
  0x7a   :  { %v455_v41 = vrot.slane %v448_v32, 2  ;;  %v458_v50 = vmul.f32 %v4388_v48, %v448_v32  ;;  %6847 = vst [vmem:[#allocation90_spill] sm:$0xff] %v4957_v2  ;;  %v4964_v48 = vor.u32 %v4325_v10, %v4010_v43  ;;  %v4966_v37 = vor.u32 %v4321_v27, %v4012_v1  ;;  %v4210_v25 = vld [vmem:[#allocation8 + $0x3d8] sm:$0xf]  ;;  %v3948_v10 = vld [vmem:[#allocation8 + $0x1f0] sm:$0xf0] }
  0x7b   :  { %1382 = vmatpush.bf16.msra.mxu3 %v4957_v2  ;;  %v461_v0 = vrot.slane %v448_v32, 4  ;;  %v3980_v2 = vld [vmem:[#allocation8 + $0x230] sm:$0xf0]  ;;  %v4374_v43 = vld [vmem:[#allocation8 + $0x3f4] sm:$0xf0] }
  0x7c   :  { %v457_v36 = vmul.f32 0.0, %v455_v41  ;;  %6849 = vst [vmem:[#allocation92_spill] sm:$0xff] %v4964_v48  ;;  %v4305_v41 = vld [vmem:[#allocation8 + $0x1d4] sm:$0xf]  ;;  %v4972_v55 = vor.u32 %v4313_v12, %v3980_v2  ;;  %v4974_v27 = vor.u32 %v4374_v43, %v4210_v25  ;;  %v4370_v32 = vld [vmem:[#allocation8 + $0x3dc] sm:$0xf] }
  0x7d   :  { %6850 = vst [vmem:[#allocation93_spill] sm:$0xff] %v4966_v37  ;;  %1357 = vmatpush.bf16.msra.mxu1 %v4964_v48  ;;  %v4212_v1 = vld [vmem:[#allocation8 + $0x3f8] sm:$0xf0]  ;;  %v4983_v2 = vor.u32 %v4305_v41, %v3948_v10  ;;  %v4297_v25 = vld [vmem:[#allocation8 + $0x194] sm:$0xf] }
  0x7e   :  { %v4959_v31 = vadd.f32 %v458_v50, %v457_v36  ;;  %v4309_v36 = vld [vmem:[#allocation8 + $0x1ec] sm:$0xf0]  ;;  %6852 = vst [vmem:[#allocation95_spill] sm:$0xff] %v4972_v55  ;;  %v4977_v5 = vor.u32 %v4370_v32, %v4212_v1  ;;  %v4366_v12 = vld [vmem:[#allocation8 + $0x3b4] sm:$0xf0] }
  0x7f   :  { %1383 = vmatpush.bf16.msra.mxu3 %v4966_v37  ;;  %v3978_v50 = vld [vmem:[#allocation8 + $0x210] sm:$0xf]  ;;  %6853 = vst [vmem:[#allocation96_spill] sm:$0xff] %v4974_v27  ;;  %v3916_v32 = vld [vmem:[#allocation8 + $0x1b0] sm:$0xf0] }
  0x80   :  { %6848 = vst [vmem:[#allocation91_spill] sm:$0xff] %v4959_v31  ;;  %4389 = vtanh.f32 %v4959_v31  ;;  %v4970_v21 = vor.u32 %v4317_v54, %v3978_v50  ;;  %v3914_v31 = vld [vmem:[#allocation8 + $0x190] sm:$0xf]  ;;  %v4981_v50 = vor.u32 %v4309_v36, %v3946_v11  ;;  %v4178_v54 = vld [vmem:[#allocation8 + $0x398] sm:$0xf]  ;;  %v5000_v41 = vor.u32 %v4297_v25, %v3916_v32 }
  0x81   :  { %6854 = vst [vmem:[#allocation97_spill] sm:$0xff] %v4977_v5  ;;  %v4988_v1 = vor.u32 %v4366_v12, %v4178_v54  ;;  %v3882_v11 = vld [vmem:[#allocation8 + $0x150] sm:$0xf]  ;;  %v4146_v10 = vld [vmem:[#allocation8 + $0x358] sm:$0xf] }
  0x82   :  { %6851 = vst [vmem:[#allocation94_spill] sm:$0xff] %v4970_v21  ;;  %1358 = vmatpush.bf16.msra.mxu1 %v4970_v21  ;;  %v4293_v36 = vld [vmem:[#allocation8 + $0x16c] sm:$0xf0]  ;;  %v4358_v54 = vld [vmem:[#allocation8 + $0x374] sm:$0xf0] }
  0x83   :  { %1384 = vmatpush.bf16.msra.mxu3 %v4972_v55  ;;  %6855 = vst [vmem:[#allocation98_spill] sm:$0xff] %v4981_v50  ;;  %v4354_v12 = vld [vmem:[#allocation8 + $0x35c] sm:$0xf]  ;;  %v4114_v25 = vld [vmem:[#allocation8 + $0x318] sm:$0xf] }
  0x84   :  { %6856 = vst [vmem:[#allocation99_spill] sm:$0xff] %v4983_v2  ;;  %v4350_v32 = vld [vmem:[#allocation8 + $0x334] sm:$0xf0] }
  0x85   :  { %6857 = vst [vmem:[#allocation100_spill] sm:$0xff] %v4988_v1  ;;  %1359 = vmatmul.bf16.vlgmr.msra.gmra.mxu1 %v6837_v40 }
  0x86   :  { %v4390_v48 = vpop.eup %4389  ;;  %1403 = vmatpush.bf16.msrb.mxu1 %v4974_v27  ;;  %1385 = vmatmul.bf16.vlgmr.msra.gmra.mxu3 %v6837_v40  ;;  %6860 = vst [vmem:[#allocation103_spill] sm:$0xff] %v5000_v41  ;;  %v4148_v27 = vld [vmem:[#allocation8 + $0x378] sm:$0xf0] }
  0x87   :  { %v463_v37 = vmul.f32 %v4390_v48, %v461_v0  ;;  %1429 = vmatpush.bf16.msrb.mxu3 %v4977_v5  ;;  %v4362_v48 = vld [vmem:[#allocation8 + $0x39c] sm:$0xf]  ;;  %v5004_v5 = vor.u32 %v4358_v54, %v4146_v10  ;;  %v5006_v21 = vor.u32 %v4354_v12, %v4148_v27  ;;  %v5016_v27 = vor.u32 %v4350_v32, %v4114_v25  ;;  %v3818_v12 = vld [vmem:[#allocation8 + $0xd0] sm:$0xf] }
  0x88   :  { %v4180_v0 = vld [vmem:[#allocation8 + $0x3b8] sm:$0xf0] }
  0x89   :  { %v4986_v43 = vpack.c.bf16 %v463_v37, %v463_v37  ;;  %v4991_v55 = vor.u32 %v4362_v48, %v4180_v0  ;;  %v4998_v37 = vor.u32 %v4301_v15, %v3914_v31  ;;  %v4289_v48 = vld [vmem:[#allocation8 + $0x154] sm:$0xf]  ;;  %6861 = vst [vmem:[#allocation104_spill] sm:$0xff] %v5004_v5  ;;  %v5010_v15 = vor.u32 %v4293_v36, %v3882_v11  ;;  %v4116_v10 = vld [vmem:[#allocation8 + $0x338] sm:$0xf0] }
  0x8a   :  { %v3884_v0 = vld [vmem:[#allocation8 + $0x170] sm:$0xf0]  ;;  %1404 = vmatpush.bf16.msrb.mxu1 %v4988_v1  ;;  %6862 = vst [vmem:[#allocation105_spill] sm:$0xff] %v5006_v21  ;;  %v4346_v1 = vld [vmem:[#allocation8 + $0x31c] sm:$0xf] }
  0x8b   :  { %6858 = vst [vmem:[#allocation101_spill] sm:$0xff] %v4991_v55  ;;  %1242 = vmatmul.bf16.vlgmr.msra.gmra.mxu0 %v4986_v43  ;;  %1268 = vmatmul.bf16.vlgmr.msra.gmra.mxu2 %v4986_v43  ;;  %v5012_v31 = vor.u32 %v4289_v48, %v3884_v0  ;;  %v5018_v54 = vor.u32 %v4346_v1, %v4116_v10  ;;  %v4082_v48 = vld [vmem:[#allocation8 + $0x2d8] sm:$0xf]  ;;  %v4084_v25 = vld [vmem:[#allocation8 + $0x2f8] sm:$0xf0] }
  0x8c   :  { %1338 = vmatpush.bf16.msra.mxu0 %v4981_v50  ;;  %1364 = vmatpush.bf16.msra.mxu2 %v4983_v2  ;;  %6859 = vst [vmem:[#allocation102_spill] sm:$0xff] %v4998_v37  ;;  %v3850_v50 = vld [vmem:[#allocation8 + $0x110] sm:$0xf]  ;;  %v4342_v0 = vld [vmem:[#allocation8 + $0x2f4] sm:$0xf0] }
  0x8d   :  { %1430 = vmatpush.bf16.msrb.mxu3 %v4991_v55  ;;  %v4285_v2 = vld [vmem:[#allocation8 + $0x12c] sm:$0xf0]  ;;  %6863 = vst [vmem:[#allocation106_spill] sm:$0xff] %v5010_v15  ;;  %v3852_v55 = vld [vmem:[#allocation8 + $0x130] sm:$0xf0]  ;;  %v5028_v1 = vor.u32 %v4342_v0, %v4082_v48 }
  0x8e   :  { %6864 = vst [vmem:[#allocation107_spill] sm:$0xff] %v5012_v31  ;;  %1405 = vmatpush.bf16.msrb.mxu1 %v5004_v5  ;;  %v5022_v11 = vor.u32 %v4285_v2, %v3850_v50  ;;  %v5024_v36 = vor.u32 %v4281_v23, %v3852_v55  ;;  %v4338_v5 = vld [vmem:[#allocation8 + $0x2dc] sm:$0xf]  ;;  %v3786_v10 = vld [vmem:[#allocation8 + $0x90] sm:$0xf] }
  0x8f   :  { %6865 = vst [vmem:[#allocation108_spill] sm:$0xff] %v5016_v27  ;;  %v5030_v32 = vor.u32 %v4338_v5, %v4084_v25  ;;  %v4050_v50 = vld [vmem:[#allocation8 + $0x298] sm:$0xf]  ;;  %v4052_v48 = vld [vmem:[#allocation8 + $0x2b8] sm:$0xf0] }
  0x90   :  { %1339 = vmatpush.bf16.msra.mxu0 %v4998_v37  ;;  %1365 = vmatpush.bf16.msra.mxu2 %v5000_v41  ;;  %6866 = vst [vmem:[#allocation109_spill] sm:$0xff] %v5018_v54  ;;  %v4277_v41 = vld [vmem:[#allocation8 + $0xec] sm:$0xf0]  ;;  %v4273_v37 = vld [vmem:[#allocation8 + $0xd4] sm:$0xf] }
  0x91   :  { %1431 = vmatpush.bf16.msrb.mxu3 %v5006_v21  ;;  %6867 = vst [vmem:[#allocation110_spill] sm:$0xff] %v5022_v11  ;;  %v3820_v21 = vld [vmem:[#allocation8 + $0xf0] sm:$0xf0]  ;;  %v5034_v23 = vor.u32 %v4277_v41, %v3818_v12  ;;  %v4334_v2 = vld [vmem:[#allocation8 + $0x2b4] sm:$0xf0] }
  0x92   :  { %6868 = vst [vmem:[#allocation111_spill] sm:$0xff] %v5024_v36  ;;  %1406 = vmatpush.bf16.msrb.mxu1 %v5016_v27  ;;  %v5036_v55 = vor.u32 %v4273_v37, %v3820_v21  ;;  %v4330_v27 = vld [vmem:[#allocation8 + $0x29c] sm:$0xf]  ;;  %v5040_v5 = vor.u32 %v4334_v2, %v4050_v50  ;;  %v3754_v21 = vld [vmem:[#allocation8 + $0x50] sm:$0xf] }
  0x93   :  { %6869 = vst [vmem:[#allocation112_spill] sm:$0xff] %v5028_v1  ;;  %v5042_v0 = vor.u32 %v4330_v27, %v4052_v48  ;;  %v4261_v37 = vld [vmem:[#allocation8 + $0x6c] sm:$0xf0]  ;;  %v4018_v25 = vld [vmem:[#allocation8 + $0x258] sm:$0xf] }
  0x94   :  { %1340 = vmatpush.bf16.msra.mxu0 %v5010_v15  ;;  %1366 = vmatpush.bf16.msra.mxu2 %v5012_v31  ;;  %6870 = vst [vmem:[#allocation113_spill] sm:$0xff] %v5030_v32  ;;  %v4269_v31 = vld [vmem:[#allocation8 + $0xac] sm:$0xf0]  ;;  %v4265_v15 = vld [vmem:[#allocation8 + $0x94] sm:$0xf] }
  0x95   :  { %1432 = vmatpush.bf16.msrb.mxu3 %v5018_v54  ;;  %6871 = vst [vmem:[#allocation114_spill] sm:$0xff] %v5034_v23  ;;  %v3788_v54 = vld [vmem:[#allocation8 + $0xb0] sm:$0xf0]  ;;  %v5048_v41 = vor.u32 %v4269_v31, %v3786_v10  ;;  %v4326_v50 = vld [vmem:[#allocation8 + $0x274] sm:$0xf0] }
  0x96   :  { %6872 = vst [vmem:[#allocation115_spill] sm:$0xff] %v5036_v55  ;;  %1407 = vmatpush.bf16.msrb.mxu1 %v5028_v1  ;;  %v5050_v12 = vor.u32 %v4265_v15, %v3788_v54  ;;  %v4322_v2 = vld [vmem:[#allocation8 + $0x25c] sm:$0xf]  ;;  %v3756_v27 = vld [vmem:[#allocation8 + $0x70] sm:$0xf0]  ;;  %v5054_v48 = vor.u32 %v4326_v50, %v4018_v25  ;;  %v5060_v15 = vor.u32 %v4261_v37, %v3754_v21 }
  0x97   :  { %6873 = vst [vmem:[#allocation116_spill] sm:$0xff] %v5040_v5  ;;  %v4020_v1 = vld [vmem:[#allocation8 + $0x278] sm:$0xf0]  ;;  %v4249_v31 = vld [vmem:[#allocation8 + $0x14] sm:$0xf] }
  0x98   :  { %1341 = vmatpush.bf16.msra.mxu0 %v5022_v11  ;;  %1367 = vmatpush.bf16.msra.mxu2 %v5024_v36  ;;  %6874 = vst [vmem:[#allocation117_spill] sm:$0xff] %v5042_v0  ;;  %v5056_v36 = vor.u32 %v4322_v2, %v4020_v1  ;;  %v3986_v10 = vld [vmem:[#allocation8 + $0x218] sm:$0xf]  ;;  %v4314_v11 = vld [vmem:[#allocation8 + $0x21c] sm:$0xf] }
  0x99   :  { %1433 = vmatpush.bf16.msrb.mxu3 %v5030_v32  ;;  %6875 = vst [vmem:[#allocation118_spill] sm:$0xff] %v5048_v41  ;;  %v4257_v32 = vld [vmem:[#allocation8 + $0x54] sm:$0xf]  ;;  %v3954_v25 = vld [vmem:[#allocation8 + $0x1d8] sm:$0xf] }
  0x9a   :  { %6876 = vst [vmem:[#allocation119_spill] sm:$0xff] %v5050_v12  ;;  %1408 = vmatpush.bf16.msrb.mxu1 %v5040_v5  ;;  %v5062_v54 = vor.u32 %v4257_v32, %v3756_v27  ;;  %v4318_v5 = vld [vmem:[#allocation8 + $0x234] sm:$0xf0]  ;;  %v3988_v50 = vld [vmem:[#allocation8 + $0x238] sm:$0xf0] }
  0x9b   :  { %1294 = vmatmul.bf16.vlgmr.msrb.gmra.mxu0 %v4986_v43  ;;  %1320 = vmatmul.bf16.vlgmr.msrb.gmra.mxu2 %v4986_v43  ;;  %6877 = vst [vmem:[#allocation120_spill] sm:$0xff] %v5054_v48  ;;  %v5066_v1 = vor.u32 %v4318_v5, %v3986_v10  ;;  %v4310_v2 = vld [vmem:[#allocation8 + $0x1f4] sm:$0xf0] }
  0x9c   :  { %1342 = vmatpush.bf16.msra.mxu0 %v5034_v23  ;;  %1368 = vmatpush.bf16.msra.mxu2 %v5036_v55  ;;  %6878 = vst [vmem:[#allocation121_spill] sm:$0xff] %v5056_v36  ;;  %v3722_v23 = vld [vmem:[#allocation8 + $0x10] sm:$0xf]  ;;  %v5076_v37 = vor.u32 %v4310_v2, %v3954_v25  ;;  %v3922_v5 = vld [vmem:[#allocation8 + $0x198] sm:$0xf] }
  0x9d   :  { %1434 = vmatpush.bf16.msrb.mxu3 %v5042_v0  ;;  %v4253_v55 = vld [vmem:[#allocation8 + $0x2c] sm:$0xf0]  ;;  %v3724_v0 = vld [vmem:[#allocation8 + $0x30] sm:$0xf0]  ;;  %6879 = vst [vmem:[#allocation122_spill] sm:$0xff] %v5066_v1 }
  0x9e   :  { %1409 = vmatpush.bf16.msrb.mxu1 %v5054_v48  ;;  %v5072_v32 = vor.u32 %v4253_v55, %v3722_v23  ;;  %v5074_v21 = vor.u32 %v4249_v31, %v3724_v0  ;;  %v4302_v10 = vld [vmem:[#allocation8 + $0x1b4] sm:$0xf0]  ;;  %v3892_v31 = vld [vmem:[#allocation8 + $0x178] sm:$0xf0] }
  0x9f   :  { %v3890_v55 = vld [vmem:[#allocation8 + $0x158] sm:$0xf] }
  0xa0   :  { %1343 = vmatpush.bf16.msra.mxu0 %v5048_v41  ;;  %1369 = vmatpush.bf16.msra.mxu2 %v5050_v12  ;;  %v4306_v41 = vld [vmem:[#allocation8 + $0x1dc] sm:$0xf]  ;;  %v5068_v12 = vor.u32 %v4314_v11, %v3988_v50  ;;  %v4294_v0 = vld [vmem:[#allocation8 + $0x174] sm:$0xf0] }
  0xa1   :  { %1435 = vmatpush.bf16.msrb.mxu3 %v5056_v36  ;;  %v5078_v27 = vor.u32 %v4306_v41, %v3956_v62  ;;  %v4298_v11 = vld [vmem:[#allocation8 + $0x19c] sm:$0xf]  ;;  %v5088_v62 = vor.u32 %v4302_v10, %v3922_v5  ;;  %v5100_v25 = vor.u32 %v4294_v0, %v3890_v55  ;;  %v3858_v5 = vld [vmem:[#allocation8 + $0x118] sm:$0xf] }
  0xa2   :  { %6880 = vst [vmem:[#allocation123_spill] sm:$0xff] %v5068_v12  ;;  %1410 = vmatpush.bf16.msrb.mxu1 %v5066_v1  ;;  %v3924_v50 = vld [vmem:[#allocation8 + $0x1b8] sm:$0xf0]  ;;  %v4286_v10 = vld [vmem:[#allocation8 + $0x134] sm:$0xf0] }
  0xa3   :  { %6881 = vst [vmem:[#allocation124_spill] sm:$0xff] %v5088_v62  ;;  %v5090_v23 = vor.u32 %v4298_v11, %v3924_v50  ;;  %v4290_v41 = vld [vmem:[#allocation8 + $0x15c] sm:$0xf]  ;;  %v5108_v50 = vor.u32 %v4286_v10, %v3858_v5  ;;  %v3826_v55 = vld [vmem:[#allocation8 + $0xd8] sm:$0xf] }
  0xa4   :  { %1344 = vmatpush.bf16.msra.mxu0 %v5060_v15  ;;  %1370 = vmatpush.bf16.msra.mxu2 %v5062_v54  ;;  %6882 = vst [vmem:[#allocation125_spill] sm:$0xff] %v5100_v25  ;;  %v5102_v2 = vor.u32 %v4290_v41, %v3892_v31  ;;  %v4282_v11 = vld [vmem:[#allocation8 + $0x11c] sm:$0xf]  ;;  %v4278_v0 = vld [vmem:[#allocation8 + $0xf4] sm:$0xf0] }
  0xa5   :  { %1436 = vmatpush.bf16.msrb.mxu3 %v5068_v12  ;;  %1411 = vmatmul.bf16.vlgmr.msrb.gmra.mxu1 %v6837_v40  ;;  %6884 = vst [vmem:[#allocation127_spill] sm:$0xff] %v5108_v50  ;;  %v4274_v41 = vld [vmem:[#allocation8 + $0xdc] sm:$0xf]  ;;  %v3794_v5 = vld [vmem:[#allocation8 + $0x98] sm:$0xf] }
  0xa6   :  { %1570 = vmatpush.bf16.msra.mxu1 %v4705_v4  ;;  %6883 = vst [vmem:[#allocation126_spill] sm:$0xff] %v5102_v2  ;;  %v3828_v31 = vld [vmem:[#allocation8 + $0xf8] sm:$0xf0]  ;;  %v4270_v10 = vld [vmem:[#allocation8 + $0xb4] sm:$0xf0] }
  0xa8   :  { %1345 = vmatpush.bf16.msra.mxu0 %v5072_v32  ;;  %1371 = vmatpush.bf16.msra.mxu2 %v5074_v21 }
  0xa9   :  { %1596 = vmatpush.bf16.msra.mxu3 %v4707_v8 }
  0xaa   :  { %1437 = vmatmul.bf16.vlgmr.msrb.gmra.mxu3 %v6837_v40  ;;  %1571 = vmatpush.bf16.msra.mxu1 %v4716_v17  ;;  %v3860_v40 = vld [vmem:[#allocation8 + $0x138] sm:$0xf0] }
  0xab   :  { %1346 = vmatmul.bf16.vlgmr.msra.gmra.mxu0 %v4986_v43  ;;  %1372 = vmatmul.bf16.vlgmr.msra.gmra.mxu2 %v4986_v43 }
  0xac   :  { %1390 = vmatpush.bf16.msrb.mxu0 %v5076_v37  ;;  %1416 = vmatpush.bf16.msrb.mxu2 %v5078_v27 }
  0xad   :  { %1597 = vmatpush.bf16.msra.mxu3 %v4718_v18  ;;  %v5110_v18 = vor.u32 %v4282_v11, %v3860_v40  ;;  %v4266_v11 = vld [vmem:[#allocation8 + $0x9c] sm:$0xf] }
  0xae   :  { %1572 = vmatpush.bf16.msra.mxu1 %v4726_v30  ;;  %v5118_v30 = vor.u32 %v4274_v41, %v3828_v31  ;;  %v3796_v40 = vld [vmem:[#allocation8 + $0xb8] sm:$0xf0] }
  0xaf   :  { %6885 = vst [vmem:[#allocation128_spill] sm:$0xff] %v5110_v18  ;;  %v4258_v41 = vld [vmem:[#allocation8 + $0x5c] sm:$0xf] }
  0xb0   :  { %1391 = vmatpush.bf16.msrb.mxu0 %v5088_v62  ;;  %1417 = vmatpush.bf16.msrb.mxu2 %v5090_v23  ;;  %6887 = vst [vmem:[#allocation130_spill] sm:$0xff] %v5118_v30  ;;  %v3764_v31 = vld [vmem:[#allocation8 + $0x78] sm:$0xf0] }
  0xb1   :  { %1598 = vmatpush.bf16.msra.mxu3 %v4730_v34  ;;  %v5116_v34 = vor.u32 %v4278_v0, %v3826_v55  ;;  %v3762_v55 = vld [vmem:[#allocation8 + $0x58] sm:$0xf] }
  0xb2   :  { %1573 = vmatpush.bf16.msra.mxu1 %v4738_v45  ;;  %v5126_v45 = vor.u32 %v4266_v11, %v3796_v40  ;;  %v4262_v0 = vld [vmem:[#allocation8 + $0x74] sm:$0xf0]  ;;  %v4250_v11 = vld [vmem:[#allocation8 + $0x1c] sm:$0xf] }
  0xb3   :  { %6886 = vst [vmem:[#allocation129_spill] sm:$0xff] %v5116_v34  ;;  %v3732_v40 = vld [vmem:[#allocation8 + $0x38] sm:$0xf0] }
  0xb4   :  { %1392 = vmatpush.bf16.msrb.mxu0 %v5100_v25  ;;  %1418 = vmatpush.bf16.msrb.mxu2 %v5102_v2  ;;  %6889 = vst [vmem:[#allocation132_spill] sm:$0xff] %v5126_v45 }
  0xb5   :  { %1599 = vmatpush.bf16.msra.mxu3 %v4742_v46  ;;  %v5124_v46 = vor.u32 %v4270_v10, %v3794_v5  ;;  %v3730_v5 = vld [vmem:[#allocation8 + $0x18] sm:$0xf] }
  0xb6   :  { %1574 = vmatpush.bf16.msra.mxu1 %v4750_v57  ;;  %v5134_v57 = vor.u32 %v4258_v41, %v3764_v31  ;;  %v4254_v10 = vld [vmem:[#allocation8 + $0x34] sm:$0xf0]  ;;  %v6895_v41 = vld [vmem:[#allocation62_spill] sm:$0xff]  ;;  %v6896_v31 = vld [vmem:[#allocation35_spill] sm:$0xff] }
  0xb7   :  { %6888 = vst [vmem:[#allocation131_spill] sm:$0xff] %v5124_v46 }
  0xb8   :  { %1393 = vmatpush.bf16.msrb.mxu0 %v5108_v50  ;;  %1419 = vmatpush.bf16.msrb.mxu2 %v5110_v18  ;;  %6891 = vst [vmem:[#allocation134_spill] sm:$0xff] %v5134_v57 }
  0xb9   :  { %1600 = vmatpush.bf16.msra.mxu3 %v4754_v58  ;;  %v5132_v58 = vor.u32 %v4262_v0, %v3762_v55  ;;  %v5144_v55 = vpop.f32.mrf.mxu1 }
  0xba   :  { %1575 = vmatpush.bf16.msra.mxu1 %v4762_v6  ;;  %v5142_v6 = vor.u32 %v4250_v11, %v3732_v40  ;;  %v6899_v11 = vld [vmem:[#allocation39_spill] sm:$0xff]  ;;  %v6900_v40 = vld [vmem:[#allocation40_spill] sm:$0xff] }
  0xbb   :  { %6890 = vst [vmem:[#allocation133_spill] sm:$0xff] %v5132_v58 }
  0xbc   :  { %1394 = vmatpush.bf16.msrb.mxu0 %v5116_v34  ;;  %1420 = vmatpush.bf16.msrb.mxu2 %v5118_v30  ;;  %6893 = vst [vmem:[#allocation136_spill] sm:$0xff] %v5142_v6 }
  0xbd   :  { %1601 = vmatpush.bf16.msra.mxu3 %v4766_v7  ;;  %v5140_v7 = vor.u32 %v4254_v10, %v3730_v5  ;;  %v6897_v5 = vld [vmem:[#allocation36_spill] sm:$0xff]  ;;  %v6898_v10 = vld [vmem:[#allocation65_spill] sm:$0xff] }
  0xbe   :  { %1576 = vmatpush.bf16.msra.mxu1 %v4774_v24  ;;  %v6917_v24 = vld [vmem:[#allocation80_spill] sm:$0xff] }
  0xbf   :  { %6892 = vst [vmem:[#allocation135_spill] sm:$0xff] %v5140_v7 }
  0xc0   :  { %1395 = vmatpush.bf16.msrb.mxu0 %v5124_v46  ;;  %1421 = vmatpush.bf16.msrb.mxu2 %v5126_v45 }
  0xc1   :  { %1602 = vmatpush.bf16.msra.mxu3 %v4778_v28  ;;  %v1258_v0 = vpop.f32.mrf.mxu1  ;;  %v6916_v28 = vld [vmem:[#allocation79_spill] sm:$0xff] }
  0xc2   :  { %1577 = vmatpush.bf16.msra.mxu1 %v4786_v44  ;;  %v6901_v0 = vld [vmem:[#allocation45_spill] sm:$0xff] }
  0xc4   :  { %1396 = vmatpush.bf16.msrb.mxu0 %v5132_v58  ;;  %1422 = vmatpush.bf16.msrb.mxu2 %v5134_v57 }
  0xc5   :  { %1603 = vmatpush.bf16.msra.mxu3 %v4790_v52  ;;  %v6915_v52 = vld [vmem:[#allocation74_spill] sm:$0xff] }
  0xc6   :  { %1622 = vmatpush.bf16.msrb.mxu1 %v4792_v53  ;;  %v6914_v53 = vld [vmem:[#allocation73_spill] sm:$0xff] }
  0xc8   :  { %1397 = vmatpush.bf16.msrb.mxu0 %v5140_v7  ;;  %1423 = vmatpush.bf16.msrb.mxu2 %v5142_v6 }
  0xc9   :  { %1648 = vmatpush.bf16.msrb.mxu3 %v4795_v56  ;;  %v6912_v56 = vld [vmem:[#allocation64_spill] sm:$0xff] }
  0xca   :  { %1623 = vmatpush.bf16.msrb.mxu1 %v4808_v14  ;;  %v6911_v14 = vld [vmem:[#allocation63_spill] sm:$0xff] }
  0xcb   :  { %1398 = vmatmul.bf16.vlgmr.msrb.gmra.mxu0 %v4986_v43  ;;  %1424 = vmatmul.bf16.vlgmr.msrb.gmra.mxu2 %v4986_v43  ;;  %v6894_v43 = vld [vmem:[#allocation61_spill] sm:$0xff] }
  0xcc   :  { %1557 = vmatpush.bf16.msra.mxu0 %v4709_v9  ;;  %1583 = vmatpush.bf16.msra.mxu2 %v4712_v13 }
  0xcd   :  { %1649 = vmatpush.bf16.msrb.mxu3 %v4812_v20 }
  0xce   :  { %1624 = vmatpush.bf16.msrb.mxu1 %v4822_v38  ;;  %v6910_v38 = vld [vmem:[#allocation60_spill] sm:$0xff] }
  0xd0   :  { %1558 = vmatpush.bf16.msra.mxu0 %v4721_v22  ;;  %1584 = vmatpush.bf16.msra.mxu2 %v4723_v26 }
  0xd1   :  { %1650 = vmatpush.bf16.msrb.mxu3 %v4825_v42  ;;  %v6909_v42 = vld [vmem:[#allocation59_spill] sm:$0xff] }
  0xd2   :  { %1625 = vmatpush.bf16.msrb.mxu1 %v4836_v3  ;;  %v1282_v3 = vpop.f32.mrf.mxu3 }
  0xd4   :  { %1559 = vmatpush.bf16.msra.mxu0 %v4732_v35  ;;  %1585 = vmatpush.bf16.msra.mxu2 %v4735_v39 }
  0xd5   :  { %1651 = vmatpush.bf16.msrb.mxu3 %v4839_v16  ;;  %v6904_v16 = vld [vmem:[#allocation48_spill] sm:$0xff] }
  0xd6   :  { %1626 = vmatpush.bf16.msrb.mxu1 %v6894_v43  ;;  %v6902_v43 = vld [vmem:[#allocation46_spill] sm:$0xff] }
  0xd8   :  { %1560 = vmatpush.bf16.msra.mxu0 %v4744_v47  ;;  %1586 = vmatpush.bf16.msra.mxu2 %v4747_v51 }
  0xd9   :  { %1652 = vmatpush.bf16.msrb.mxu3 %v6895_v41  ;;  %v6903_v41 = vld [vmem:[#allocation47_spill] sm:$0xff] }
  0xda   :  { %1627 = vmatpush.bf16.msrb.mxu1 %v6898_v10  ;;  %v6906_v10 = vld [vmem:[#allocation52_spill] sm:$0xff]  ;;  %v1284_v20 = vpop.f32.mrf.mxu3 }
  0xdc   :  { %1561 = vmatpush.bf16.msra.mxu0 %v4756_v59  ;;  %1587 = vmatpush.bf16.msra.mxu2 %v4759_v63 }
  0xdd   :  { %1653 = vmatpush.bf16.msrb.mxu3 %v4867_v33  ;;  %v6905_v33 = vld [vmem:[#allocation51_spill] sm:$0xff] }
  0xde   :  { %1628 = vmatpush.bf16.msrb.mxu1 %v4884_v49  ;;  %v6907_v49 = vld [vmem:[#allocation55_spill] sm:$0xff] }
  0xe0   :  { %1562 = vmatpush.bf16.msra.mxu0 %v6896_v31  ;;  %1588 = vmatpush.bf16.msra.mxu2 %v6897_v5 }
  0xe1   :  { %1654 = vmatpush.bf16.msrb.mxu3 %v4889_v19  ;;  %v6908_v19 = vld [vmem:[#allocation56_spill] sm:$0xff] }
  0xe2   :  { %1629 = vmatpush.bf16.msrb.mxu1 %v4897_v61  ;;  %v6913_v61 = vld [vmem:[#allocation68_spill] sm:$0xff]  ;;  %v1334_v44 = vpop.f32.mrf.mxu3 }
  0xe4   :  { %1563 = vmatpush.bf16.msra.mxu0 %v6899_v11  ;;  %1589 = vmatpush.bf16.msra.mxu2 %v6900_v40 }
  0xe5   :  { %1655 = vmatpush.bf16.msrb.mxu3 %v4901_v29  ;;  %v1308_v29 = vpop.f32.mrf.mxu1 }
  0xe8   :  { %1564 = vmatpush.bf16.msra.mxu0 %v6901_v0  ;;  %1590 = vmatpush.bf16.msra.mxu2 %v6902_v43 }
  0xec   :  { %1609 = vmatpush.bf16.msrb.mxu0 %v6903_v41  ;;  %1635 = vmatpush.bf16.msrb.mxu2 %v6904_v16 }
  0xed   :  { %v1310_v20 = vpop.f32.mrf.mxu1 }
  0xf0   :  { %1610 = vmatpush.bf16.msrb.mxu0 %v6905_v33  ;;  %1636 = vmatpush.bf16.msrb.mxu2 %v6906_v10  ;;  %v6919_v10 = vld [vmem:[#allocation70_spill] sm:$0xff] }
  0xf4   :  { %1611 = vmatpush.bf16.msrb.mxu0 %v6907_v49  ;;  %1637 = vmatpush.bf16.msrb.mxu2 %v6908_v19  ;;  %v6918_v19 = vld [vmem:[#allocation67_spill] sm:$0xff] }
  0xf8   :  { %1612 = vmatpush.bf16.msrb.mxu0 %v6909_v42  ;;  %1638 = vmatpush.bf16.msrb.mxu2 %v6910_v38  ;;  %v124_v42 = vstv %s3690_s20 }
  0xf9   :  { %v125_v49 = vmul.f32 %v124_v42, %v6918_v19 }
  0xfb   :  { %v126_v33 = vadd.f32 %v125_v49, %v6919_v10 }
  0xfc   :  { %1613 = vmatpush.bf16.msrb.mxu0 %v6911_v14  ;;  %1639 = vmatpush.bf16.msrb.mxu2 %v6912_v56  ;;  %v1336_v14 = vpop.f32.mrf.mxu3  ;;  %v120_v56 = vstv %s3689_s19 }
  0xfd   :  { %v138_v43 = vperm.slane %v126_v33, 1  ;;  %v139_v0 = vperm.slane %v126_v33, 2  ;;  %v140_v17 = vperm.slane %v126_v33, 3  ;;  %v137_v8 = vperm.slane %v126_v33, 0 }
 0x100   :  { %1614 = vmatpush.bf16.msrb.mxu0 %v6913_v61  ;;  %1640 = vmatpush.bf16.msrb.mxu2 %v4875_v60  ;;  %v121_v60 = vmul.f32 %v120_v56, %v6918_v19 }
 0x102   :  { %v1360_v61 = vpop.f32.mrf.mxu1 }
 0x104   :  { %1615 = vmatpush.bf16.msrb.mxu0 %v6914_v53  ;;  %1641 = vmatpush.bf16.msrb.mxu2 %v6915_v52  ;;  %v122_v52 = vadd.f32 %v121_v60, %v6919_v10 }
 0x106   :  { %v130_v20 = vperm.slane %v122_v52, 2  ;;  %v131_v14 = vperm.slane %v122_v52, 3  ;;  %v128_v11 = vperm.slane %v122_v52, 0 }
 0x108   :  { %1616 = vmatpush.bf16.msrb.mxu0 %v6916_v28  ;;  %1642 = vmatpush.bf16.msrb.mxu2 %v6917_v24  ;;  %v1243_v38 = vpop.f32.mrf.mxu0  ;;  %v129_v24 = vperm.slane %v122_v52, 1  ;;  %v147_v60 = vsel %vm99_vm0, %v130_v20, %v139_v0  ;;  %v148_v49 = vsel %vm99_vm0, %v131_v14, %v140_v17 }
 0x109   :  { %v1386_v16 = vpop.f32.mrf.mxu3  ;;  %v154_v5 = vrot.slane %v147_v60, 4  ;;  %v155_v31 = vrot.slane %v148_v49, 2  ;;  %v1257_v0 = vadd.f32 %v5144_v55, %v1243_v38 }
 0x10a   :  { %v1362_v41 = vpop.f32.mrf.mxu1  ;;  %v146_v56 = vsel %vm99_vm0, %v129_v24, %v138_v43 }
 0x10b   :  { %v153_v41 = vrot.slane %v146_v56, 6  ;;  %v157_v24 = vsel %vm113_vm2, %v154_v5, %v155_v31 }
 0x10e   :  { %v1269_v53 = vpop.f32.mrf.mxu2 }
 0x10f   :  { %v1283_v10 = vadd.f32 %v1282_v3, %v1269_v53 }
 0x110   :  { %v1245_v28 = vpop.f32.mrf.mxu0 }
 0x111   :  { %v1388_v42 = vpop.f32.mrf.mxu3  ;;  %v145_v28 = vsel %vm99_vm0, %v128_v11, %v137_v8  ;;  %v1447_v52 = vrot.slane %v1283_v10, 6 }
 0x113   :  { %v1450_v8 = vsel %vm111_vm1, %v1257_v0, %v1447_v52 }
 0x116   :  { %v1271_v40 = vpop.f32.mrf.mxu2 }
 0x117   :  { %v156_v40 = vsel %vm111_vm1, %v145_v28, %v153_v41 }
 0x118   :  { %v1295_v19 = vpop.f32.mrf.mxu0  ;;  %v158_v17 = vsel %vm115_vm3, %v156_v40, %v157_v24 }
 0x119   :  { %v1309_v4 = vadd.f32 %v1308_v29, %v1295_v19  ;;  %v5218_v29 = vld [vmem:[%s6504_s4] sm:$0xf]  ;;  %s3691_s4 = sld [smem:[#allocation4 + $0x2]] }
 0x11a   :  { %v5225_v56 = vperm.slane %v5218_v29, 1 }
 0x11b   :  { %v1448_v33 = vrot.slane %v1309_v4, 4 }
 0x11e   :  { %v1321_v12 = vpop.f32.mrf.mxu2 }
 0x11f   :  { %v1335_v43 = vadd.f32 %v1334_v44, %v1321_v12  ;;  %v5221_v12 = vperm.slane %v5218_v29, 0 }
 0x120   :  { %v1297_v42 = vpop.f32.mrf.mxu0 }
 0x121   :  { %v1449_v20 = vrot.slane %v1335_v43, 2 }
 0x122   :  { %v1412_v38 = vpop.f32.mrf.mxu1 }
 0x123   :  { %v1451_v53 = vsel %vm113_vm2, %v1448_v33, %v1449_v20 }
 0x124   :  { %v1452_v3 = vsel %vm115_vm3, %v1450_v8, %v1451_v53 }
 0x125   :  { %v1454_v4 = vadd.f32 %v1452_v3, %v158_v17 }
 0x126   :  { %v1323_v31 = vpop.f32.mrf.mxu2 }
 0x127   :  { %v4216_v44 = vmul.f32 -1.442695, %v1454_v4  ;;  %v1475_v17 = vrot.slane %v1454_v4, 6 }
 0x128   :  { %v1347_v55 = vpop.f32.mrf.mxu0 }
 0x129   :  { %4391 = vpow2.f32 %v4216_v44  ;;  %v1361_v5 = vadd.f32 %v1360_v61, %v1347_v55 }
 0x12a   :  { %v1414_v41 = vpop.f32.mrf.mxu1 }
 0x12b   :  { %v1488_v11 = vadd.f32 %v1361_v5, %v5221_v12 }
 0x12d   :  { %v4217_v14 = vmul.f32 -1.442695, %v1488_v11  ;;  %v1438_v19 = vpop.f32.mrf.mxu3 }
 0x12e   :  { %v1373_v60 = vpop.f32.mrf.mxu2 }
 0x12f   :  { %v4392_v49 = vpop.eup %4391  ;;  %4393 = vpow2.f32 %v4217_v14  ;;  %v1387_v28 = vadd.f32 %v1386_v16, %v1373_v60 }
 0x130   :  { %v1458_v10 = vadd.f32 1.0, %v4392_v49  ;;  %v1349_v40 = vpop.f32.mrf.mxu0 }
 0x131   :  { %v1489_v52 = vadd.f32 %v1387_v28, %v5225_v56  ;;  %v5239_v40 = vperm.slane %v5218_v29, 2 }
 0x132   :  { %4395 = vrcp.f32 %v1458_v10  ;;  %v1470_v53 = vand.u32 2147483648, %v1458_v10  ;;  %v1468_v44 = vand.u32 2147483647, %v1458_v10  ;;  %vm1464_vm9 = vweird.f32 %v1458_v10 }
 0x133   :  { %v4218_v33 = vmul.f32 -1.442695, %v1489_v52  ;;  %v6920_v52 = vld [vmem:[#allocation91_spill] sm:$0xff] }
 0x134   :  { %v1471_v11 = vor.u32 1.1754944e-38, %v1470_v53  ;;  %vm1469_vm11 = vcmp.eq.f32.partialorder %v1468_v44, 8.507059e+37  ;;  %v5248_v53 = vperm.slane %v5218_v29, 3 }
 0x135   :  { %v4394_v24 = vpop.eup %4393  ;;  %4397 = vpow2.f32 %v4218_v33  ;;  %v1440_v61 = vpop.f32.mrf.mxu3 }
 0x136   :  { %v5228_v43 = vadd.f32 1.0, %v4394_v24  ;;  %v1375_v42 = vpop.f32.mrf.mxu2 }
 0x138   :  { %v4396_v0 = vpop.eup %4395  ;;  %4399 = vrcp.f32 %v5228_v43  ;;  %vm1509_vm12 = vweird.f32 %v5228_v43  ;;  %v1515_v29 = vand.u32 2147483648, %v5228_v43 }
 0x139   :  { %v1460_v20 = vmul.f32 %v4396_v0, %v1458_v10  ;;  %vm1465_vm8 = vweird.f32 %v4396_v0  ;;  %4401 = vtanh.f32 %v1475_v17 }
 0x13a   :  { %vm1466_vm10 = vmor %vm1464_vm9, %vm1465_vm8 }
 0x13b   :  { %v4398_v8 = vpop.eup %4397  ;;  %v1461_v16 = vsub.f32 1.0, %v1460_v20 }
 0x13c   :  { %v5231_v3 = vadd.f32 1.0, %v4398_v8 }
 0x13d   :  { %v1462_v31 = vmul.f32 %v4396_v0, %v1461_v16 }
 0x13e   :  { %4403 = vrcp.f32 %v5231_v3  ;;  %v5234_v5 = vpop.eup %4399  ;;  %vm1524_vm14 = vweird.f32 %v5231_v3 }
 0x13f   :  { %v1463_v55 = vadd.f32 %v4396_v0, %v1462_v31  ;;  %v4402_v60 = vpop.eup %4401  ;;  %v1505_v28 = vmul.f32 %v5234_v5, %v5228_v43  ;;  %vm1510_vm13 = vweird.f32 %v5234_v5 }
 0x140   :  { %vm5259_vm4 = vmor %vm1509_vm12, %vm1510_vm13 }
 0x141   :  { %v1467_v4 = vsel %vm1466_vm10, %v4396_v0, %v1463_v55  ;;  %v1506_v0 = vsub.f32 1.0, %v1505_v28 }
 0x142   :  { %v1472_v14 = vsel %vm1469_vm11, %v1471_v11, %v1467_v4 }
 0x143   :  { %v1479_v49 = vrot.slane %v1472_v14, 2  ;;  %v1482_v24 = vmul.f32 %v4402_v60, %v1472_v14  ;;  %v1507_v55 = vmul.f32 %v5234_v5, %v1506_v0  ;;  %v1485_v60 = vrot.slane %v1472_v14, 4 }
 0x144   :  { %v4404_v41 = vpop.eup %4403  ;;  %v1528_v14 = vand.u32 2147483647, %v5231_v3 }
 0x145   :  { %v1481_v33 = vmul.f32 %v1479_v49, %v6920_v52  ;;  %v1520_v10 = vmul.f32 %v4404_v41, %v5231_v3  ;;  %v1530_v49 = vand.u32 2147483648, %v5231_v3  ;;  %vm1525_vm15 = vweird.f32 %v4404_v41  ;;  %v6923_v3 = vld [vmem:[#allocation98_spill] sm:$0xff] }
 0x146   :  { %vm1526_vm5 = vmor %vm1524_vm14, %vm1525_vm15  ;;  %vm1529_vm7 = vcmp.eq.f32.partialorder %v1528_v14, 8.507059e+37 }
 0x147   :  { %v5243_v20 = vadd.f32 %v1482_v24, %v1481_v33  ;;  %v1521_v17 = vsub.f32 1.0, %v1520_v10  ;;  %v1508_v33 = vadd.f32 %v5234_v5, %v1507_v55  ;;  %v1531_v0 = vor.u32 1.1754944e-38, %v1530_v49 }
 0x148   :  { %v1399_v61 = vpop.f32.mrf.mxu0 }
 0x149   :  { %v1413_v42 = vadd.f32 %v1412_v38, %v1399_v61  ;;  %4405 = vtanh.f32 %v5243_v20  ;;  %v1522_v31 = vmul.f32 %v4404_v41, %v1521_v17  ;;  %v1513_v38 = vand.u32 2147483647, %v5228_v43 }
 0x14a   :  { %v1516_v43 = vor.u32 1.1754944e-38, %v1515_v29 }
 0x14b   :  { %v1490_v8 = vadd.f32 %v1413_v42, %v5239_v40  ;;  %vm1514_vm6 = vcmp.eq.f32.partialorder %v1513_v38, 8.507059e+37 }
 0x14d   :  { %v4219_v16 = vmul.f32 -1.442695, %v1490_v8  ;;  %v1512_v8 = vsel %vm5259_vm4, %v5234_v5, %v1508_v33  ;;  %v6926_v5 = vld [vmem:[#allocation103_spill] sm:$0xff] }
 0x14e   :  { %v1425_v44 = vpop.f32.mrf.mxu2  ;;  %v6928_v33 = vld [vmem:[#allocation107_spill] sm:$0xff] }
 0x14f   :  { %4407 = vpow2.f32 %v4219_v16  ;;  %v1439_v11 = vadd.f32 %v1438_v19, %v1425_v44  ;;  %v4406_v52 = vpop.eup %4405  ;;  %v1523_v19 = vadd.f32 %v4404_v41, %v1522_v31  ;;  %v6924_v44 = vld [vmem:[#allocation99_spill] sm:$0xff] }
 0x150   :  { %v1401_v4 = vpop.f32.mrf.mxu0  ;;  %v1487_v24 = vmul.f32 %v4406_v52, %v1485_v60  ;;  %v6927_v52 = vld [vmem:[#allocation106_spill] sm:$0xff] }
 0x151   :  { %v1491_v28 = vadd.f32 %v1439_v11, %v5248_v53  ;;  %v1527_v16 = vsel %vm1526_vm5, %v4404_v41, %v1523_v19  ;;  %v1517_v11 = vsel %vm1514_vm6, %v1516_v43, %v1512_v8 }
 0x152   :  { %v5264_v42 = vpack.c.bf16 %v1487_v24, %v1487_v24  ;;  %v1532_v4 = vsel %vm1529_vm7, %v1531_v0, %v1527_v16  ;;  %v6930_v0 = vld [vmem:[#allocation111_spill] sm:$0xff] }
 0x153   :  { %4409 = vtanh.f32 %v1491_v28  ;;  %v1550_v49 = vmul.f32 0.0, %v1532_v4  ;;  %v6925_v28 = vld [vmem:[#allocation102_spill] sm:$0xff]  ;;  %v6932_v4 = vld [vmem:[#allocation115_spill] sm:$0xff] }
 0x154   :  { %1565 = vmatmul.bf16.vlgmr.msra.gmra.mxu0 %v5264_v42  ;;  %1591 = vmatmul.bf16.vlgmr.msra.gmra.mxu2 %v5264_v42 }
 0x155   :  { %v4408_v61 = vpop.eup %4407  ;;  %1661 = vmatpush.bf16.msra.mxu0 %v6923_v3  ;;  %1687 = vmatpush.bf16.msra.mxu2 %v6924_v44 }
 0x156   :  { %v1503_v17 = vadd.f32 1.0, %v4408_v61  ;;  %v1427_v31 = vpop.f32.mrf.mxu2  ;;  %v6929_v61 = vld [vmem:[#allocation110_spill] sm:$0xff] }
 0x158   :  { %4411 = vrcp.f32 %v1503_v17  ;;  %v1545_v24 = vand.u32 2147483648, %v1503_v17  ;;  %v1543_v14 = vand.u32 2147483647, %v1503_v17  ;;  %vm1539_vm9 = vweird.f32 %v1503_v17 }
 0x159   :  { %v4410_v55 = vpop.eup %4409  ;;  %1662 = vmatpush.bf16.msra.mxu0 %v6925_v28  ;;  %1688 = vmatpush.bf16.msra.mxu2 %v6926_v5 }
 0x15a   :  { %v1551_v60 = vmul.f32 %v4410_v55, %v1517_v11  ;;  %v1546_v8 = vor.u32 1.1754944e-38, %v1545_v24  ;;  %vm1544_vm11 = vcmp.eq.f32.partialorder %v1543_v14, 8.507059e+37  ;;  %v6931_v11 = vld [vmem:[#allocation114_spill] sm:$0xff]  ;;  %v6937_v24 = vld [vmem:[#allocation81_spill] sm:$0xff]  ;;  %v6939_v14 = vld [vmem:[#allocation83_spill] sm:$0xff] }
 0x15c   :  { %v5275_v38 = vadd.f32 %v1551_v60, %v1550_v49 }
 0x15d   :  { %1663 = vmatpush.bf16.msra.mxu0 %v6927_v52  ;;  %1689 = vmatpush.bf16.msra.mxu2 %v6928_v33 }
 0x15e   :  { %v4412_v41 = vpop.eup %4411  ;;  %4413 = vtanh.f32 %v5275_v38 }
 0x15f   :  { %v1535_v29 = vmul.f32 %v4412_v41, %v1503_v17  ;;  %vm1540_vm8 = vweird.f32 %v4412_v41  ;;  %v6934_v17 = vld [vmem:[#allocation119_spill] sm:$0xff] }
 0x160   :  { %vm1541_vm10 = vmor %vm1539_vm9, %vm1540_vm8 }
 0x161   :  { %v1536_v19 = vsub.f32 1.0, %v1535_v29  ;;  %1664 = vmatpush.bf16.msra.mxu0 %v6929_v61  ;;  %1690 = vmatpush.bf16.msra.mxu2 %v6930_v0  ;;  %v6933_v29 = vld [vmem:[#allocation118_spill] sm:$0xff] }
 0x163   :  { %v1537_v10 = vmul.f32 %v4412_v41, %v1536_v19  ;;  %v6936_v19 = vld [vmem:[#allocation78_spill] sm:$0xff] }
 0x164   :  { %1617 = vmatmul.bf16.vlgmr.msrb.gmra.mxu0 %v5264_v42  ;;  %1643 = vmatmul.bf16.vlgmr.msrb.gmra.mxu2 %v5264_v42  ;;  %v4414_v31 = vpop.eup %4413 }
 0x165   :  { %v1538_v43 = vadd.f32 %v4412_v41, %v1537_v10  ;;  %1665 = vmatpush.bf16.msra.mxu0 %v6931_v11  ;;  %1691 = vmatpush.bf16.msra.mxu2 %v6932_v4  ;;  %v6938_v10 = vld [vmem:[#allocation82_spill] sm:$0xff] }
 0x167   :  { %v1542_v16 = vsel %vm1541_vm10, %v4412_v41, %v1538_v43  ;;  %v6935_v41 = vld [vmem:[#allocation77_spill] sm:$0xff]  ;;  %v6940_v43 = vld [vmem:[#allocation84_spill] sm:$0xff] }
 0x168   :  { %v1547_v55 = vsel %vm1544_vm11, %v1546_v8, %v1542_v16  ;;  %v6941_v8 = vld [vmem:[#allocation85_spill] sm:$0xff]  ;;  %v6942_v16 = vld [vmem:[#allocation86_spill] sm:$0xff] }
 0x169   :  { %v1554_v60 = vmul.f32 %v4414_v31, %v1547_v55  ;;  %1666 = vmatpush.bf16.msra.mxu0 %v6933_v29  ;;  %1692 = vmatpush.bf16.msra.mxu2 %v6934_v17  ;;  %v6943_v31 = vld [vmem:[#allocation87_spill] sm:$0xff]  ;;  %v6944_v55 = vld [vmem:[#allocation88_spill] sm:$0xff] }
 0x16b   :  { %v5286_v49 = vpack.c.bf16 %v1554_v60, %v1554_v60  ;;  %v6945_v60 = vld [vmem:[#allocation89_spill] sm:$0xff] }
 0x16d   :  { %1578 = vmatmul.bf16.vlgmr.msra.gmra.mxu1 %v5286_v49  ;;  %1604 = vmatmul.bf16.vlgmr.msra.gmra.mxu3 %v5286_v49 }
 0x16e   :  { %1674 = vmatpush.bf16.msra.mxu1 %v6935_v41  ;;  %1700 = vmatpush.bf16.msra.mxu3 %v6936_v19 }
 0x16f   :  { %1667 = vmatpush.bf16.msra.mxu0 %v5060_v15  ;;  %1693 = vmatpush.bf16.msra.mxu2 %v5062_v54 }
 0x172   :  { %1675 = vmatpush.bf16.msra.mxu1 %v6937_v24  ;;  %1701 = vmatpush.bf16.msra.mxu3 %v6938_v10 }
 0x173   :  { %1668 = vmatpush.bf16.msra.mxu0 %v5072_v32  ;;  %1694 = vmatpush.bf16.msra.mxu2 %v5074_v21 }
 0x176   :  { %1676 = vmatpush.bf16.msra.mxu1 %v6939_v14  ;;  %1702 = vmatpush.bf16.msra.mxu3 %v6940_v43 }
 0x177   :  { %1713 = vmatpush.bf16.msrb.mxu0 %v5076_v37  ;;  %1739 = vmatpush.bf16.msrb.mxu2 %v5078_v27 }
 0x178   :  { %1669 = vmatmul.bf16.vlgmr.msra.gmra.mxu0 %v5264_v42  ;;  %1695 = vmatmul.bf16.vlgmr.msra.gmra.mxu2 %v5264_v42 }
 0x17a   :  { %1677 = vmatpush.bf16.msra.mxu1 %v6941_v8  ;;  %1703 = vmatpush.bf16.msra.mxu3 %v6942_v16  ;;  %v6947_v16 = vld [vmem:[#allocation92_spill] sm:$0xff]  ;;  %v6948_v8 = vld [vmem:[#allocation93_spill] sm:$0xff] }
 0x17b   :  { %1714 = vmatpush.bf16.msrb.mxu0 %v5088_v62  ;;  %1740 = vmatpush.bf16.msrb.mxu2 %v5090_v23  ;;  %v6946_v62 = vld [vmem:[#allocation90_spill] sm:$0xff] }
 0x17d   :  { %1630 = vmatmul.bf16.vlgmr.msrb.gmra.mxu1 %v5286_v49  ;;  %1656 = vmatmul.bf16.vlgmr.msrb.gmra.mxu3 %v5286_v49 }
 0x17e   :  { %1678 = vmatpush.bf16.msra.mxu1 %v6943_v31  ;;  %1704 = vmatpush.bf16.msra.mxu3 %v6944_v55  ;;  %v6949_v55 = vld [vmem:[#allocation94_spill] sm:$0xff]  ;;  %v6950_v31 = vld [vmem:[#allocation95_spill] sm:$0xff] }
 0x17f   :  { %1715 = vmatpush.bf16.msrb.mxu0 %v5100_v25  ;;  %1741 = vmatpush.bf16.msrb.mxu2 %v5102_v2 }
 0x182   :  { %1679 = vmatpush.bf16.msra.mxu1 %v6945_v60  ;;  %1705 = vmatpush.bf16.msra.mxu3 %v6946_v62  ;;  %v6951_v62 = vld [vmem:[#allocation96_spill] sm:$0xff]  ;;  %v6952_v60 = vld [vmem:[#allocation97_spill] sm:$0xff] }
 0x183   :  { %1716 = vmatpush.bf16.msrb.mxu0 %v5108_v50  ;;  %1742 = vmatpush.bf16.msrb.mxu2 %v5110_v18 }
 0x186   :  { %1680 = vmatpush.bf16.msra.mxu1 %v6947_v16  ;;  %1706 = vmatpush.bf16.msra.mxu3 %v6948_v8  ;;  %v6953_v8 = vld [vmem:[#allocation100_spill] sm:$0xff] }
 0x187   :  { %1717 = vmatpush.bf16.msrb.mxu0 %v5116_v34  ;;  %1743 = vmatpush.bf16.msrb.mxu2 %v5118_v30 }
 0x18a   :  { %1681 = vmatpush.bf16.msra.mxu1 %v6949_v55  ;;  %1707 = vmatpush.bf16.msra.mxu3 %v6950_v31  ;;  %v6954_v55 = vld [vmem:[#allocation101_spill] sm:$0xff]  ;;  %v6955_v31 = vld [vmem:[#allocation104_spill] sm:$0xff] }
 0x18b   :  { %1718 = vmatpush.bf16.msrb.mxu0 %v5124_v46  ;;  %1744 = vmatpush.bf16.msrb.mxu2 %v5126_v45 }
 0x18d   :  { %1682 = vmatmul.bf16.vlgmr.msra.gmra.mxu1 %v5286_v49  ;;  %1708 = vmatmul.bf16.vlgmr.msra.gmra.mxu3 %v5286_v49 }
 0x18e   :  { %1726 = vmatpush.bf16.msrb.mxu1 %v6951_v62  ;;  %1752 = vmatpush.bf16.msrb.mxu3 %v6952_v60  ;;  %v6956_v62 = vld [vmem:[#allocation105_spill] sm:$0xff] }
 0x18f   :  { %1719 = vmatpush.bf16.msrb.mxu0 %v5132_v58  ;;  %1745 = vmatpush.bf16.msrb.mxu2 %v5134_v57  ;;  %v6957_v57 = vld [vmem:[#allocation108_spill] sm:$0xff] }
 0x192   :  { %1727 = vmatpush.bf16.msrb.mxu1 %v6953_v8  ;;  %1753 = vmatpush.bf16.msrb.mxu3 %v6954_v55  ;;  %v6958_v8 = vld [vmem:[#allocation109_spill] sm:$0xff] }
 0x193   :  { %1720 = vmatpush.bf16.msrb.mxu0 %v5140_v7  ;;  %1746 = vmatpush.bf16.msrb.mxu2 %v5142_v6  ;;  %v6959_v6 = vld [vmem:[#allocation112_spill] sm:$0xff] }
 0x196   :  { %1728 = vmatpush.bf16.msrb.mxu1 %v6955_v31  ;;  %1754 = vmatpush.bf16.msrb.mxu3 %v6956_v62  ;;  %v6960_v31 = vld [vmem:[#allocation113_spill] sm:$0xff]  ;;  %v6961_v62 = vld [vmem:[#allocation116_spill] sm:$0xff] }
 0x197   :  { %1880 = vmatpush.bf16.msra.mxu0 %v4709_v9  ;;  %1906 = vmatpush.bf16.msra.mxu2 %v4712_v13  ;;  %v6962_v13 = vld [vmem:[#allocation117_spill] sm:$0xff] }
 0x198   :  { %1721 = vmatmul.bf16.vlgmr.msrb.gmra.mxu0 %v5264_v42  ;;  %1747 = vmatmul.bf16.vlgmr.msrb.gmra.mxu2 %v5264_v42  ;;  %v6963_v42 = vld [vmem:[#allocation123_spill] sm:$0xff] }
 0x19a   :  { %1729 = vmatpush.bf16.msrb.mxu1 %v6957_v57  ;;  %1755 = vmatpush.bf16.msrb.mxu3 %v6958_v8 }
 0x19b   :  { %1881 = vmatpush.bf16.msra.mxu0 %v4721_v22  ;;  %1907 = vmatpush.bf16.msra.mxu2 %v4723_v26 }
 0x19e   :  { %1730 = vmatpush.bf16.msrb.mxu1 %v6959_v6  ;;  %1756 = vmatpush.bf16.msrb.mxu3 %v6960_v31  ;;  %v6964_v31 = vld [vmem:[#allocation35_spill] sm:$0xff] }
 0x19f   :  { %1882 = vmatpush.bf16.msra.mxu0 %v4732_v35  ;;  %1908 = vmatpush.bf16.msra.mxu2 %v4735_v39  ;;  %v7016_v6 = vld [vmem:[#allocation75_spill] sm:$0xff]  ;;  %v163_v39 = vstv %s3691_s4 }
 0x1a2   :  { %1731 = vmatpush.bf16.msrb.mxu1 %v6961_v62  ;;  %1757 = vmatpush.bf16.msrb.mxu3 %v6962_v13  ;;  %v6965_v62 = vld [vmem:[#allocation36_spill] sm:$0xff]  ;;  %v6966_v13 = vld [vmem:[#allocation13_spill] sm:$0xff] }
 0x1a3   :  { %1883 = vmatpush.bf16.msra.mxu0 %v4744_v47  ;;  %1909 = vmatpush.bf16.msra.mxu2 %v4747_v51  ;;  %v6967_v47 = vld [vmem:[#allocation14_spill] sm:$0xff] }
 0x1a6   :  { %1732 = vmatpush.bf16.msrb.mxu1 %v5054_v48  ;;  %1758 = vmatpush.bf16.msrb.mxu3 %v5056_v36  ;;  %v6968_v36 = vld [vmem:[#allocation39_spill] sm:$0xff]  ;;  %v6969_v48 = vld [vmem:[#allocation40_spill] sm:$0xff] }
 0x1a7   :  { %1884 = vmatpush.bf16.msra.mxu0 %v4756_v59  ;;  %1910 = vmatpush.bf16.msra.mxu2 %v4759_v63  ;;  %v6970_v63 = vld [vmem:[#allocation17_spill] sm:$0xff]  ;;  %v6977_v59 = vld [vmem:[#allocation48_spill] sm:$0xff] }
 0x1aa   :  { %1733 = vmatpush.bf16.msrb.mxu1 %v5066_v1  ;;  %1759 = vmatpush.bf16.msrb.mxu3 %v6963_v42  ;;  %v6971_v1 = vld [vmem:[#allocation18_spill] sm:$0xff]  ;;  %v6972_v42 = vld [vmem:[#allocation45_spill] sm:$0xff] }
 0x1ab   :  { %1885 = vmatpush.bf16.msra.mxu0 %v6964_v31  ;;  %1911 = vmatpush.bf16.msra.mxu2 %v6965_v62  ;;  %v6973_v31 = vld [vmem:[#allocation46_spill] sm:$0xff]  ;;  %v6974_v62 = vld [vmem:[#allocation21_spill] sm:$0xff] }
 0x1ad   :  { %1734 = vmatmul.bf16.vlgmr.msrb.gmra.mxu1 %v5286_v49  ;;  %1760 = vmatmul.bf16.vlgmr.msrb.gmra.mxu3 %v5286_v49  ;;  %v6978_v49 = vld [vmem:[#allocation25_spill] sm:$0xff] }
 0x1ae   :  { %1893 = vmatpush.bf16.msra.mxu1 %v6966_v13  ;;  %1919 = vmatpush.bf16.msra.mxu3 %v6967_v47  ;;  %v6975_v13 = vld [vmem:[#allocation22_spill] sm:$0xff]  ;;  %v6976_v47 = vld [vmem:[#allocation47_spill] sm:$0xff] }
 0x1af   :  { %1886 = vmatpush.bf16.msra.mxu0 %v6968_v36  ;;  %1912 = vmatpush.bf16.msra.mxu2 %v6969_v48  ;;  %v6979_v36 = vld [vmem:[#allocation26_spill] sm:$0xff]  ;;  %v6980_v48 = vld [vmem:[#allocation51_spill] sm:$0xff] }
 0x1b2   :  { %1894 = vmatpush.bf16.msra.mxu1 %v6970_v63  ;;  %1920 = vmatpush.bf16.msra.mxu3 %v6971_v1  ;;  %v6981_v63 = vld [vmem:[#allocation52_spill] sm:$0xff]  ;;  %v6982_v1 = vld [vmem:[#allocation29_spill] sm:$0xff] }
 0x1b3   :  { %1887 = vmatpush.bf16.msra.mxu0 %v6972_v42  ;;  %1913 = vmatpush.bf16.msra.mxu2 %v6973_v31  ;;  %v6983_v42 = vld [vmem:[#allocation30_spill] sm:$0xff]  ;;  %v6984_v31 = vld [vmem:[#allocation55_spill] sm:$0xff] }
 0x1b6   :  { %1895 = vmatpush.bf16.msra.mxu1 %v6974_v62  ;;  %1921 = vmatpush.bf16.msra.mxu3 %v6975_v13  ;;  %v6985_v62 = vld [vmem:[#allocation56_spill] sm:$0xff]  ;;  %v6986_v13 = vld [vmem:[#allocation33_spill] sm:$0xff] }
 0x1b7   :  { %1932 = vmatpush.bf16.msrb.mxu0 %v6976_v47  ;;  %1958 = vmatpush.bf16.msrb.mxu2 %v6977_v59  ;;  %v6987_v47 = vld [vmem:[#allocation34_spill] sm:$0xff]  ;;  %v6988_v59 = vld [vmem:[#allocation59_spill] sm:$0xff] }
 0x1ba   :  { %1896 = vmatpush.bf16.msra.mxu1 %v6978_v49  ;;  %1922 = vmatpush.bf16.msra.mxu3 %v6979_v36  ;;  %v6989_v49 = vld [vmem:[#allocation60_spill] sm:$0xff]  ;;  %v6990_v36 = vld [vmem:[#allocation37_spill] sm:$0xff] }
 0x1bb   :  { %1933 = vmatpush.bf16.msrb.mxu0 %v6980_v48  ;;  %1959 = vmatpush.bf16.msrb.mxu2 %v6981_v63  ;;  %v6991_v48 = vld [vmem:[#allocation38_spill] sm:$0xff]  ;;  %v6992_v63 = vld [vmem:[#allocation63_spill] sm:$0xff] }
 0x1be   :  { %1897 = vmatpush.bf16.msra.mxu1 %v6982_v1  ;;  %1923 = vmatpush.bf16.msra.mxu3 %v6983_v42  ;;  %v6993_v1 = vld [vmem:[#allocation64_spill] sm:$0xff]  ;;  %v6994_v42 = vld [vmem:[#allocation41_spill] sm:$0xff] }
 0x1bf   :  { %1934 = vmatpush.bf16.msrb.mxu0 %v6984_v31  ;;  %1960 = vmatpush.bf16.msrb.mxu2 %v6985_v62  ;;  %v6995_v31 = vld [vmem:[#allocation42_spill] sm:$0xff]  ;;  %v6996_v62 = vld [vmem:[#allocation68_spill] sm:$0xff] }
 0x1c2   :  { %1898 = vmatpush.bf16.msra.mxu1 %v6986_v13  ;;  %1924 = vmatpush.bf16.msra.mxu3 %v6987_v47  ;;  %v6997_v13 = vld [vmem:[#allocation69_spill] sm:$0xff]  ;;  %v6998_v47 = vld [vmem:[#allocation43_spill] sm:$0xff] }
 0x1c3   :  { %1935 = vmatpush.bf16.msrb.mxu0 %v6988_v59  ;;  %1961 = vmatpush.bf16.msrb.mxu2 %v6989_v49  ;;  %v6999_v59 = vld [vmem:[#allocation44_spill] sm:$0xff]  ;;  %v7000_v49 = vld [vmem:[#allocation73_spill] sm:$0xff] }
 0x1c6   :  { %1899 = vmatpush.bf16.msra.mxu1 %v6990_v36  ;;  %1925 = vmatpush.bf16.msra.mxu3 %v6991_v48  ;;  %v7001_v36 = vld [vmem:[#allocation74_spill] sm:$0xff]  ;;  %v7002_v48 = vld [vmem:[#allocation49_spill] sm:$0xff] }
 0x1c7   :  { %1936 = vmatpush.bf16.msrb.mxu0 %v6992_v63  ;;  %1962 = vmatpush.bf16.msrb.mxu2 %v6993_v1  ;;  %v7003_v63 = vld [vmem:[#allocation50_spill] sm:$0xff]  ;;  %v7004_v1 = vld [vmem:[#allocation79_spill] sm:$0xff] }
 0x1ca   :  { %1900 = vmatpush.bf16.msra.mxu1 %v6994_v42  ;;  %1926 = vmatpush.bf16.msra.mxu3 %v6995_v31  ;;  %v7005_v42 = vld [vmem:[#allocation80_spill] sm:$0xff]  ;;  %v7006_v31 = vld [vmem:[#allocation53_spill] sm:$0xff] }
 0x1cb   :  { %1937 = vmatpush.bf16.msrb.mxu0 %v6996_v62  ;;  %1963 = vmatpush.bf16.msrb.mxu2 %v6997_v13  ;;  %v7007_v62 = vld [vmem:[#allocation54_spill] sm:$0xff] }
 0x1ce   :  { %1945 = vmatpush.bf16.msrb.mxu1 %v6998_v47  ;;  %1971 = vmatpush.bf16.msrb.mxu3 %v6999_v59  ;;  %v7008_v47 = vld [vmem:[#allocation57_spill] sm:$0xff]  ;;  %v7009_v59 = vld [vmem:[#allocation58_spill] sm:$0xff] }
 0x1cf   :  { %1938 = vmatpush.bf16.msrb.mxu0 %v7000_v49  ;;  %1964 = vmatpush.bf16.msrb.mxu2 %v7001_v36  ;;  %v7010_v49 = vld [vmem:[#allocation61_spill] sm:$0xff]  ;;  %v7011_v36 = vld [vmem:[#allocation62_spill] sm:$0xff] }
 0x1d1   :  { %v1566_v13 = vpop.f32.mrf.mxu0 }
 0x1d2   :  { %1946 = vmatpush.bf16.msrb.mxu1 %v7002_v48  ;;  %1972 = vmatpush.bf16.msrb.mxu3 %v7003_v63  ;;  %v7012_v63 = vld [vmem:[#allocation65_spill] sm:$0xff] }
 0x1d3   :  { %1939 = vmatpush.bf16.msrb.mxu0 %v7004_v1  ;;  %1965 = vmatpush.bf16.msrb.mxu2 %v7005_v42  ;;  %v7013_v1 = vld [vmem:[#allocation66_spill] sm:$0xff]  ;;  %v7014_v42 = vld [vmem:[#allocation71_spill] sm:$0xff] }
 0x1d6   :  { %1947 = vmatpush.bf16.msrb.mxu1 %v7006_v31  ;;  %1973 = vmatpush.bf16.msrb.mxu3 %v7007_v62  ;;  %v7015_v31 = vld [vmem:[#allocation72_spill] sm:$0xff] }
 0x1d7   :  { %v1592_v48 = vpop.f32.mrf.mxu2 }
 0x1d9   :  { %v1568_v51 = vpop.f32.mrf.mxu0 }
 0x1da   :  { %1948 = vmatpush.bf16.msrb.mxu1 %v7008_v47  ;;  %1974 = vmatpush.bf16.msrb.mxu3 %v7009_v59  ;;  %v7017_v59 = vld [vmem:[#allocation76_spill] sm:$0xff]  ;;  %v167_v51 = vstv %s3692_s23 }
 0x1de   :  { %1949 = vmatpush.bf16.msrb.mxu1 %v7010_v49  ;;  %1975 = vmatpush.bf16.msrb.mxu3 %v7011_v36 }
 0x1df   :  { %v1594_v62 = vpop.f32.mrf.mxu2 }
 0x1e0   :  { %v5425_v62 = vld [vmem:[%s6502_s2] sm:$0xf] }
 0x1e1   :  { %v1618_v47 = vpop.f32.mrf.mxu0  ;;  %7019 = vst [vmem:[#allocation70_spill] sm:$0xff] %v5425_v62 }
 0x1e2   :  { %1950 = vmatpush.bf16.msrb.mxu1 %v7012_v63  ;;  %1976 = vmatpush.bf16.msrb.mxu3 %v7013_v1  ;;  %v5418_v63 = vld [vmem:[#allocation7] sm:$0xf] }
 0x1e3   :  { %7018 = vst [vmem:[#allocation67_spill] sm:$0xff] %v5418_v63  ;;  %v164_v1 = vmul.f32 %v5418_v63, %v163_v39 }
 0x1e6   :  { %1951 = vmatpush.bf16.msrb.mxu1 %v7014_v42  ;;  %1977 = vmatpush.bf16.msrb.mxu3 %v7015_v31  ;;  %v168_v42 = vmul.f32 %v5418_v63, %v167_v51 }
 0x1e7   :  { %v1644_v36 = vpop.f32.mrf.mxu2 }
 0x1e8   :  { %v169_v57 = vadd.f32 %v5425_v62, %v168_v42 }
 0x1e9   :  { %v1620_v35 = vpop.f32.mrf.mxu0 }
 0x1ea   :  { %1952 = vmatpush.bf16.msrb.mxu1 %v7016_v6  ;;  %1978 = vmatpush.bf16.msrb.mxu3 %v7017_v59  ;;  %v1579_v49 = vpop.f32.mrf.mxu1  ;;  %v165_v6 = vadd.f32 %v5425_v62, %v164_v1  ;;  %v181_v7 = vperm.slane %v169_v57, 1  ;;  %v182_v39 = vperm.slane %v169_v57, 2  ;;  %v183_v55 = vperm.slane %v169_v57, 3 }
 0x1eb   :  { %v180_v45 = vperm.slane %v169_v57, 0 }
 0x1ec   :  { %v172_v35 = vperm.slane %v165_v6, 1  ;;  %v173_v22 = vperm.slane %v165_v6, 2  ;;  %v174_v9 = vperm.slane %v165_v6, 3  ;;  %v171_v63 = vperm.slane %v165_v6, 0 }
 0x1ee   :  { %v189_v46 = vsel %vm99_vm0, %v172_v35, %v181_v7  ;;  %v190_v1 = vsel %vm99_vm0, %v173_v22, %v182_v39  ;;  %v188_v34 = vsel %vm99_vm0, %v171_v63, %v180_v45  ;;  %v1580_v22 = vadd.f32 %v1579_v49, %v1566_v13 }
 0x1ef   :  { %v1646_v8 = vpop.f32.mrf.mxu2  ;;  %v196_v62 = vrot.slane %v189_v46, 6  ;;  %v197_v16 = vrot.slane %v190_v1, 4 }
 0x1f0   :  { %v1605_v31 = vpop.f32.mrf.mxu3 }
 0x1f1   :  { %v1606_v42 = vadd.f32 %v1605_v31, %v1592_v48  ;;  %v199_v6 = vsel %vm111_vm1, %v188_v34, %v196_v62 }
 0x1f2   :  { %v1581_v59 = vpop.f32.mrf.mxu1 }
 0x1f3   :  { %v191_v59 = vsel %vm99_vm0, %v174_v9, %v183_v55 }
 0x1f4   :  { %v198_v30 = vrot.slane %v191_v59, 2 }
 0x1f5   :  { %v1670_v26 = vpop.f32.mrf.mxu0 }
 0x1f6   :  { %v200_v57 = vsel %vm113_vm2, %v197_v16, %v198_v30 }
 0x1f7   :  { %v201_v48 = vsel %vm115_vm3, %v199_v6, %v200_v57 }
 0x1f8   :  { %v1607_v51 = vpop.f32.mrf.mxu3 }
 0x1f9   :  { %v1770_v51 = vrot.slane %v1606_v42, 6 }
 0x1fa   :  { %v1631_v58 = vpop.f32.mrf.mxu1 }
 0x1fb   :  { %v1696_v60 = vpop.f32.mrf.mxu2  ;;  %v1632_v18 = vadd.f32 %v1631_v58, %v1618_v47  ;;  %v1773_v46 = vsel %vm111_vm1, %v1580_v22, %v1770_v51 }
 0x1fd   :  { %v1672_v8 = vpop.f32.mrf.mxu0  ;;  %v1771_v39 = vrot.slane %v1632_v18, 4 }
 0x200   :  { %v1657_v50 = vpop.f32.mrf.mxu3 }
 0x201   :  { %v1658_v2 = vadd.f32 %v1657_v50, %v1644_v36 }
 0x202   :  { %v1633_v7 = vpop.f32.mrf.mxu1 }
 0x203   :  { %v1698_v35 = vpop.f32.mrf.mxu2  ;;  %v1772_v9 = vrot.slane %v1658_v2, 2 }
 0x205   :  { %v1774_v31 = vsel %vm113_vm2, %v1771_v39, %v1772_v9 }
 0x206   :  { %v1775_v45 = vsel %vm115_vm3, %v1773_v46, %v1774_v31 }
 0x207   :  { %v1777_v47 = vadd.f32 %v1775_v45, %v201_v48 }
 0x208   :  { %v1659_v58 = vpop.f32.mrf.mxu3 }
 0x209   :  { %v4220_v63 = vmul.f32 -1.442695, %v1777_v47  ;;  %v1798_v57 = vrot.slane %v1777_v47, 6 }
 0x20a   :  { %v1683_v34 = vpop.f32.mrf.mxu1 }
 0x20b   :  { %4415 = vpow2.f32 %v4220_v63  ;;  %v1684_v30 = vadd.f32 %v1683_v34, %v1670_v26 }
 0x20d   :  { %v1811_v36 = vadd.f32 %v1684_v30, %v5221_v12 }
 0x20f   :  { %v4221_v50 = vmul.f32 -1.442695, %v1811_v36 }
 0x210   :  { %v1709_v13 = vpop.f32.mrf.mxu3 }
 0x211   :  { %v4416_v18 = vpop.eup %4415  ;;  %4417 = vpow2.f32 %v4221_v50  ;;  %v1710_v2 = vadd.f32 %v1709_v13, %v1696_v60 }
 0x212   :  { %v1781_v16 = vadd.f32 1.0, %v4416_v18  ;;  %v1685_v55 = vpop.f32.mrf.mxu1 }
 0x213   :  { %v1812_v49 = vadd.f32 %v1710_v2, %v5225_v56 }
 0x214   :  { %4419 = vrcp.f32 %v1781_v16  ;;  %v1793_v60 = vand.u32 2147483648, %v1781_v16  ;;  %v1791_v48 = vand.u32 2147483647, %v1781_v16  ;;  %vm1787_vm13 = vweird.f32 %v1781_v16 }
 0x215   :  { %v1722_v62 = vpop.f32.mrf.mxu0  ;;  %v4222_v1 = vmul.f32 -1.442695, %v1812_v49 }
 0x216   :  { %v1794_v45 = vor.u32 1.1754944e-38, %v1793_v60  ;;  %vm1792_vm15 = vcmp.eq.f32.partialorder %v1791_v48, 8.507059e+37 }
 0x217   :  { %v4418_v59 = vpop.eup %4417  ;;  %4421 = vpow2.f32 %v4222_v1 }
 0x218   :  { %v1711_v8 = vpop.f32.mrf.mxu3  ;;  %v5441_v42 = vadd.f32 1.0, %v4418_v59 }
 0x21a   :  { %v4420_v51 = vpop.eup %4419  ;;  %4423 = vrcp.f32 %v5441_v42  ;;  %vm1832_vm6 = vweird.f32 %v5441_v42 }
 0x21b   :  { %v1748_v26 = vpop.f32.mrf.mxu2  ;;  %v1783_v6 = vmul.f32 %v4420_v51, %v1781_v16  ;;  %vm1788_vm12 = vweird.f32 %v4420_v51  ;;  %4425 = vtanh.f32 %v1798_v57 }
 0x21c   :  { %vm1789_vm14 = vmor %vm1787_vm13, %vm1788_vm12 }
 0x21d   :  { %v1724_v7 = vpop.f32.mrf.mxu0  ;;  %v4422_v35 = vpop.eup %4421  ;;  %v1784_v22 = vsub.f32 1.0, %v1783_v6 }
 0x21e   :  { %v5444_v39 = vadd.f32 1.0, %v4422_v35 }
 0x21f   :  { %v1785_v9 = vmul.f32 %v4420_v51, %v1784_v22 }
 0x220   :  { %4427 = vrcp.f32 %v5444_v39  ;;  %v4424_v47 = vpop.eup %4423  ;;  %vm1847_vm7 = vweird.f32 %v5444_v39 }
 0x221   :  { %v1786_v46 = vadd.f32 %v4420_v51, %v1785_v9  ;;  %v4426_v34 = vpop.eup %4425  ;;  %v1828_v50 = vmul.f32 %v4424_v47, %v5441_v42  ;;  %vm1833_vm4 = vweird.f32 %v4424_v47 }
 0x222   :  { %vm5461_vm8 = vmor %vm1832_vm6, %vm1833_vm4 }
 0x223   :  { %v1750_v31 = vpop.f32.mrf.mxu2  ;;  %v1790_v58 = vsel %vm1789_vm14, %v4420_v51, %v1786_v46  ;;  %v1829_v1 = vsub.f32 1.0, %v1828_v50  ;;  %v7030_v50 = vld [vmem:[#allocation127_spill] sm:$0xff] }
 0x224   :  { %v1795_v63 = vsel %vm1792_vm15, %v1794_v45, %v1790_v58  ;;  %v1853_v31 = vand.u32 2147483648, %v5444_v39  ;;  %v1838_v45 = vand.u32 2147483648, %v5441_v42 }
 0x225   :  { %v1802_v30 = vrot.slane %v1795_v63, 2  ;;  %v1805_v18 = vmul.f32 %v4426_v34, %v1795_v63  ;;  %v1830_v7 = vmul.f32 %v4424_v47, %v1829_v1  ;;  %v1851_v34 = vand.u32 2147483647, %v5444_v39 }
 0x226   :  { %v4428_v36 = vpop.eup %4427 }
 0x227   :  { %v1804_v13 = vmul.f32 %v1802_v30, %v5243_v20  ;;  %v1843_v2 = vmul.f32 %v4428_v36, %v5444_v39  ;;  %v1808_v20 = vrot.slane %v1795_v63, 4  ;;  %vm1848_vm5 = vweird.f32 %v4428_v36 }
 0x228   :  { %v1836_v63 = vand.u32 2147483647, %v5441_v42  ;;  %vm5467_vm9 = vmor %vm1847_vm7, %vm1848_vm5  ;;  %v1854_v42 = vor.u32 1.1754944e-38, %v1853_v31  ;;  %vm1852_vm11 = vcmp.eq.f32.partialorder %v1851_v34, 8.507059e+37  ;;  %v7024_v31 = vld [vmem:[#allocation124_spill] sm:$0xff]  ;;  %v7028_v34 = vld [vmem:[#allocation87_spill] sm:$0xff] }
 0x229   :  { %v5450_v49 = vadd.f32 %v1805_v18, %v1804_v13  ;;  %v1844_v59 = vsub.f32 1.0, %v1843_v2 }
 0x22a   :  { %v1735_v55 = vpop.f32.mrf.mxu1  ;;  %vm1837_vm10 = vcmp.eq.f32.partialorder %v1836_v63, 8.507059e+37  ;;  %v7027_v63 = vld [vmem:[#allocation126_spill] sm:$0xff] }
 0x22b   :  { %v1736_v16 = vadd.f32 %v1735_v55, %v1722_v62  ;;  %4429 = vtanh.f32 %v5450_v49  ;;  %v1845_v6 = vmul.f32 %v4428_v36, %v1844_v59  ;;  %v1831_v62 = vadd.f32 %v4424_v47, %v1830_v7 }
 0x22d   :  { %v1813_v8 = vadd.f32 %v1736_v16, %v5239_v40  ;;  %v1846_v46 = vadd.f32 %v4428_v36, %v1845_v6  ;;  %v1835_v18 = vsel %vm5461_vm8, %v4424_v47, %v1831_v62  ;;  %v1839_v16 = vor.u32 1.1754944e-38, %v1838_v45  ;;  %v7025_v45 = vld [vmem:[#allocation85_spill] sm:$0xff] }
 0x22f   :  { %v4223_v51 = vmul.f32 -1.442695, %v1813_v8  ;;  %v1850_v2 = vsel %vm5467_vm9, %v4428_v36, %v1846_v46  ;;  %v1840_v1 = vsel %vm1837_vm10, %v1839_v16, %v1835_v18  ;;  %v7032_v18 = vld [vmem:[#allocation89_spill] sm:$0xff]  ;;  %v7036_v16 = vld [vmem:[#allocation92_spill] sm:$0xff] }
 0x230   :  { %v1761_v57 = vpop.f32.mrf.mxu3  ;;  %v1855_v47 = vsel %vm1852_vm11, %v1854_v42, %v1850_v2  ;;  %v7033_v2 = vld [vmem:[#allocation90_spill] sm:$0xff] }
 0x231   :  { %4431 = vpow2.f32 %v4223_v51  ;;  %v1762_v35 = vadd.f32 %v1761_v57, %v1748_v26  ;;  %v4430_v60 = vpop.eup %4429  ;;  %v1873_v36 = vmul.f32 %v1855_v47, %v5275_v38  ;;  %v7026_v26 = vld [vmem:[#allocation86_spill] sm:$0xff]  ;;  %v7039_v47 = vld [vmem:[#allocation132_spill] sm:$0xff] }
 0x232   :  { %v1737_v22 = vpop.f32.mrf.mxu1  ;;  %v1810_v48 = vmul.f32 %v4430_v60, %v1808_v20  ;;  %v7035_v42 = vld [vmem:[#allocation130_spill] sm:$0xff] }
 0x233   :  { %v1814_v9 = vadd.f32 %v1762_v35, %v5248_v53 }
 0x234   :  { %v5458_v58 = vpack.c.bf16 %v1810_v48, %v1810_v48 }
 0x235   :  { %4433 = vtanh.f32 %v1814_v9 }
 0x236   :  { %1888 = vmatmul.bf16.vlgmr.msra.gmra.mxu0 %v5458_v58  ;;  %1914 = vmatmul.bf16.vlgmr.msra.gmra.mxu2 %v5458_v58 }
 0x237   :  { %v4432_v30 = vpop.eup %4431  ;;  %1984 = vmatpush.bf16.msra.mxu0 %v6923_v3  ;;  %2010 = vmatpush.bf16.msra.mxu2 %v6924_v44 }
 0x238   :  { %v1826_v13 = vadd.f32 1.0, %v4432_v30  ;;  %v1763_v55 = vpop.f32.mrf.mxu3  ;;  %v7029_v30 = vld [vmem:[#allocation88_spill] sm:$0xff] }
 0x239   :  { %v7034_v55 = vld [vmem:[#allocation129_spill] sm:$0xff] }
 0x23a   :  { %4435 = vrcp.f32 %v1826_v13  ;;  %v1868_v7 = vand.u32 2147483648, %v1826_v13  ;;  %v1866_v20 = vand.u32 2147483647, %v1826_v13  ;;  %vm1862_vm13 = vweird.f32 %v1826_v13 }
 0x23b   :  { %v4434_v39 = vpop.eup %4433  ;;  %1985 = vmatpush.bf16.msra.mxu0 %v6925_v28  ;;  %2011 = vmatpush.bf16.msra.mxu2 %v6926_v5 }
 0x23c   :  { %v1874_v59 = vmul.f32 %v4434_v39, %v1840_v1  ;;  %v1869_v22 = vor.u32 1.1754944e-38, %v1868_v7  ;;  %vm1867_vm15 = vcmp.eq.f32.partialorder %v1866_v20, 8.507059e+37  ;;  %v7037_v39 = vld [vmem:[#allocation93_spill] sm:$0xff]  ;;  %v7038_v1 = vld [vmem:[#allocation131_spill] sm:$0xff]  ;;  %v7045_v7 = vld [vmem:[#allocation134_spill] sm:$0xff] }
 0x23d   :  { %v7047_v20 = vld [vmem:[#allocation101_spill] sm:$0xff] }
 0x23e   :  { %v5482_v51 = vadd.f32 %v1874_v59, %v1873_v36  ;;  %v7040_v59 = vld [vmem:[#allocation94_spill] sm:$0xff]  ;;  %v7041_v36 = vld [vmem:[#allocation95_spill] sm:$0xff] }
 0x23f   :  { %1986 = vmatpush.bf16.msra.mxu0 %v6927_v52  ;;  %2012 = vmatpush.bf16.msra.mxu2 %v6928_v33 }
 0x240   :  { %v4436_v8 = vpop.eup %4435  ;;  %4437 = vtanh.f32 %v5482_v51 }
 0x241   :  { %v1858_v6 = vmul.f32 %v4436_v8, %v1826_v13  ;;  %vm1863_vm12 = vweird.f32 %v4436_v8  ;;  %v7031_v13 = vld [vmem:[#allocation128_spill] sm:$0xff] }
 0x242   :  { %vm1864_vm14 = vmor %vm1862_vm13, %vm1863_vm12 }
 0x243   :  { %v1859_v57 = vsub.f32 1.0, %v1858_v6  ;;  %1987 = vmatpush.bf16.msra.mxu0 %v6929_v61  ;;  %2013 = vmatpush.bf16.msra.mxu2 %v6930_v0  ;;  %v7043_v6 = vld [vmem:[#allocation97_spill] sm:$0xff] }
 0x245   :  { %v1860_v35 = vmul.f32 %v4436_v8, %v1859_v57  ;;  %v7044_v57 = vld [vmem:[#allocation133_spill] sm:$0xff] }
 0x246   :  { %1940 = vmatmul.bf16.vlgmr.msrb.gmra.mxu0 %v5458_v58  ;;  %1966 = vmatmul.bf16.vlgmr.msrb.gmra.mxu2 %v5458_v58  ;;  %v4438_v9 = vpop.eup %4437 }
 0x247   :  { %v1861_v38 = vadd.f32 %v4436_v8, %v1860_v35  ;;  %1988 = vmatpush.bf16.msra.mxu0 %v6931_v11  ;;  %2014 = vmatpush.bf16.msra.mxu2 %v6932_v4  ;;  %v7046_v35 = vld [vmem:[#allocation100_spill] sm:$0xff] }
 0x249   :  { %v1865_v60 = vsel %vm1864_vm14, %v4436_v8, %v1861_v38  ;;  %v7042_v8 = vld [vmem:[#allocation96_spill] sm:$0xff]  ;;  %v7048_v38 = vld [vmem:[#allocation135_spill] sm:$0xff] }
 0x24a   :  { %v1870_v48 = vsel %vm1867_vm15, %v1869_v22, %v1865_v60  ;;  %v7049_v22 = vld [vmem:[#allocation136_spill] sm:$0xff]  ;;  %v7050_v60 = vld [vmem:[#allocation15_spill] sm:$0xff] }
 0x24b   :  { %v1877_v62 = vmul.f32 %v4438_v9, %v1870_v48  ;;  %1989 = vmatpush.bf16.msra.mxu0 %v6933_v29  ;;  %2015 = vmatpush.bf16.msra.mxu2 %v6934_v17  ;;  %v7051_v9 = vld [vmem:[#allocation16_spill] sm:$0xff] }
 0x24c   :  { %v7052_v48 = vld [vmem:[#allocation104_spill] sm:$0xff] }
 0x24d   :  { %v5493_v46 = vpack.c.bf16 %v1877_v62, %v1877_v62  ;;  %v7053_v62 = vld [vmem:[#allocation105_spill] sm:$0xff] }
 0x24f   :  { %1901 = vmatmul.bf16.vlgmr.msra.gmra.mxu1 %v5493_v46  ;;  %1927 = vmatmul.bf16.vlgmr.msra.gmra.mxu3 %v5493_v46 }
 0x250   :  { %1997 = vmatpush.bf16.msra.mxu1 %v6935_v41  ;;  %2023 = vmatpush.bf16.msra.mxu3 %v6936_v19 }
 0x251   :  { %1990 = vmatpush.bf16.msra.mxu0 %v5060_v15  ;;  %2016 = vmatpush.bf16.msra.mxu2 %v5062_v54 }
 0x254   :  { %1998 = vmatpush.bf16.msra.mxu1 %v6937_v24  ;;  %2024 = vmatpush.bf16.msra.mxu3 %v6938_v10 }
 0x255   :  { %1991 = vmatpush.bf16.msra.mxu0 %v5072_v32  ;;  %2017 = vmatpush.bf16.msra.mxu2 %v5074_v21 }
 0x258   :  { %1999 = vmatpush.bf16.msra.mxu1 %v6939_v14  ;;  %2025 = vmatpush.bf16.msra.mxu3 %v6940_v43 }
 0x259   :  { %2036 = vmatpush.bf16.msrb.mxu0 %v5076_v37  ;;  %2062 = vmatpush.bf16.msrb.mxu2 %v5078_v27 }
 0x25a   :  { %1992 = vmatmul.bf16.vlgmr.msra.gmra.mxu0 %v5458_v58  ;;  %2018 = vmatmul.bf16.vlgmr.msra.gmra.mxu2 %v5458_v58 }
 0x25c   :  { %2000 = vmatpush.bf16.msra.mxu1 %v7025_v45  ;;  %2026 = vmatpush.bf16.msra.mxu3 %v7026_v26 }
 0x25d   :  { %2037 = vmatpush.bf16.msrb.mxu0 %v7024_v31  ;;  %2063 = vmatpush.bf16.msrb.mxu2 %v5090_v23 }
 0x25f   :  { %1953 = vmatmul.bf16.vlgmr.msrb.gmra.mxu1 %v5493_v46  ;;  %1979 = vmatmul.bf16.vlgmr.msrb.gmra.mxu3 %v5493_v46 }
 0x260   :  { %2001 = vmatpush.bf16.msra.mxu1 %v7028_v34  ;;  %2027 = vmatpush.bf16.msra.mxu3 %v7029_v30 }
 0x261   :  { %2038 = vmatpush.bf16.msrb.mxu0 %v5100_v25  ;;  %2064 = vmatpush.bf16.msrb.mxu2 %v7027_v63 }
 0x264   :  { %2002 = vmatpush.bf16.msra.mxu1 %v7032_v18  ;;  %2028 = vmatpush.bf16.msra.mxu3 %v7033_v2 }
 0x265   :  { %2039 = vmatpush.bf16.msrb.mxu0 %v7030_v50  ;;  %2065 = vmatpush.bf16.msrb.mxu2 %v7031_v13 }
 0x268   :  { %2003 = vmatpush.bf16.msra.mxu1 %v7036_v16  ;;  %2029 = vmatpush.bf16.msra.mxu3 %v7037_v39 }
 0x269   :  { %2040 = vmatpush.bf16.msrb.mxu0 %v7034_v55  ;;  %2066 = vmatpush.bf16.msrb.mxu2 %v7035_v42 }
 0x26c   :  { %2004 = vmatpush.bf16.msra.mxu1 %v7040_v59  ;;  %2030 = vmatpush.bf16.msra.mxu3 %v7041_v36 }
 0x26d   :  { %2041 = vmatpush.bf16.msrb.mxu0 %v7038_v1  ;;  %2067 = vmatpush.bf16.msrb.mxu2 %v7039_v47  ;;  %v7126_v1 = vld [vmem:[#allocation67_spill] sm:$0xff] }
 0x26f   :  { %2005 = vmatmul.bf16.vlgmr.msra.gmra.mxu1 %v5493_v46  ;;  %2031 = vmatmul.bf16.vlgmr.msra.gmra.mxu3 %v5493_v46 }
 0x270   :  { %2049 = vmatpush.bf16.msrb.mxu1 %v7042_v8  ;;  %2075 = vmatpush.bf16.msrb.mxu3 %v7043_v6  ;;  %v7124_v6 = vld [vmem:[#allocation75_spill] sm:$0xff]  ;;  %v206_v8 = vstv %s3693_s26 }
 0x271   :  { %2042 = vmatpush.bf16.msrb.mxu0 %v7044_v57  ;;  %2068 = vmatpush.bf16.msrb.mxu2 %v7045_v7  ;;  %v7054_v7 = vld [vmem:[#allocation19_spill] sm:$0xff]  ;;  %v7063_v57 = vld [vmem:[#allocation28_spill] sm:$0xff] }
 0x274   :  { %2050 = vmatpush.bf16.msrb.mxu1 %v7046_v35  ;;  %2076 = vmatpush.bf16.msrb.mxu3 %v7047_v20  ;;  %v7055_v35 = vld [vmem:[#allocation20_spill] sm:$0xff] }
 0x275   :  { %2043 = vmatpush.bf16.msrb.mxu0 %v7048_v38  ;;  %2069 = vmatpush.bf16.msrb.mxu2 %v7049_v22  ;;  %v7056_v20 = vld [vmem:[#allocation108_spill] sm:$0xff]  ;;  %v7057_v38 = vld [vmem:[#allocation109_spill] sm:$0xff]  ;;  %v7058_v22 = vld [vmem:[#allocation23_spill] sm:$0xff] }
 0x278   :  { %2051 = vmatpush.bf16.msrb.mxu1 %v7052_v48  ;;  %2077 = vmatpush.bf16.msrb.mxu3 %v7053_v62  ;;  %v7061_v48 = vld [vmem:[#allocation113_spill] sm:$0xff]  ;;  %v7062_v62 = vld [vmem:[#allocation27_spill] sm:$0xff] }
 0x279   :  { %2203 = vmatpush.bf16.msra.mxu0 %v7050_v60  ;;  %2229 = vmatpush.bf16.msra.mxu2 %v7051_v9  ;;  %v7059_v60 = vld [vmem:[#allocation24_spill] sm:$0xff] }
 0x27a   :  { %2044 = vmatmul.bf16.vlgmr.msrb.gmra.mxu0 %v5458_v58  ;;  %2070 = vmatmul.bf16.vlgmr.msrb.gmra.mxu2 %v5458_v58  ;;  %v7060_v9 = vld [vmem:[#allocation112_spill] sm:$0xff] }
 0x27b   :  { %v7064_v58 = vld [vmem:[#allocation116_spill] sm:$0xff] }
 0x27c   :  { %2052 = vmatpush.bf16.msrb.mxu1 %v7056_v20  ;;  %2078 = vmatpush.bf16.msrb.mxu3 %v7057_v38  ;;  %v7067_v20 = vld [vmem:[#allocation32_spill] sm:$0xff] }
 0x27d   :  { %2204 = vmatpush.bf16.msra.mxu0 %v7054_v7  ;;  %2230 = vmatpush.bf16.msra.mxu2 %v7055_v35  ;;  %v7065_v7 = vld [vmem:[#allocation117_spill] sm:$0xff]  ;;  %v7066_v35 = vld [vmem:[#allocation31_spill] sm:$0xff]  ;;  %v7068_v38 = vld [vmem:[#allocation120_spill] sm:$0xff] }
 0x280   :  { %2053 = vmatpush.bf16.msrb.mxu1 %v7060_v9  ;;  %2079 = vmatpush.bf16.msrb.mxu3 %v7061_v48  ;;  %v7071_v9 = vld [vmem:[#allocation36_spill] sm:$0xff]  ;;  %v7072_v48 = vld [vmem:[#allocation122_spill] sm:$0xff] }
 0x281   :  { %2205 = vmatpush.bf16.msra.mxu0 %v7058_v22  ;;  %2231 = vmatpush.bf16.msra.mxu2 %v7059_v60  ;;  %v7069_v22 = vld [vmem:[#allocation121_spill] sm:$0xff]  ;;  %v7070_v60 = vld [vmem:[#allocation35_spill] sm:$0xff] }
 0x284   :  { %2054 = vmatpush.bf16.msrb.mxu1 %v7064_v58  ;;  %2080 = vmatpush.bf16.msrb.mxu3 %v7065_v7  ;;  %v7075_v58 = vld [vmem:[#allocation14_spill] sm:$0xff]  ;;  %v7076_v7 = vld [vmem:[#allocation39_spill] sm:$0xff] }
 0x285   :  { %2206 = vmatpush.bf16.msra.mxu0 %v7062_v62  ;;  %2232 = vmatpush.bf16.msra.mxu2 %v7063_v57  ;;  %v7073_v62 = vld [vmem:[#allocation123_spill] sm:$0xff]  ;;  %v7074_v57 = vld [vmem:[#allocation13_spill] sm:$0xff] }
 0x288   :  { %2055 = vmatpush.bf16.msrb.mxu1 %v7068_v38  ;;  %2081 = vmatpush.bf16.msrb.mxu3 %v7069_v22  ;;  %v7087_v22 = vld [vmem:[#allocation52_spill] sm:$0xff]  ;;  %v7120_v38 = vld [vmem:[#allocation65_spill] sm:$0xff] }
 0x289   :  { %2207 = vmatpush.bf16.msra.mxu0 %v7066_v35  ;;  %2233 = vmatpush.bf16.msra.mxu2 %v7067_v20  ;;  %v7077_v35 = vld [vmem:[#allocation40_spill] sm:$0xff]  ;;  %v7078_v20 = vld [vmem:[#allocation17_spill] sm:$0xff] }
 0x28c   :  { %2056 = vmatpush.bf16.msrb.mxu1 %v7072_v48  ;;  %2082 = vmatpush.bf16.msrb.mxu3 %v7073_v62  ;;  %v7081_v48 = vld [vmem:[#allocation46_spill] sm:$0xff]  ;;  %v7082_v62 = vld [vmem:[#allocation47_spill] sm:$0xff] }
 0x28d   :  { %2208 = vmatpush.bf16.msra.mxu0 %v7070_v60  ;;  %2234 = vmatpush.bf16.msra.mxu2 %v7071_v9  ;;  %v7079_v60 = vld [vmem:[#allocation18_spill] sm:$0xff]  ;;  %v7080_v9 = vld [vmem:[#allocation45_spill] sm:$0xff] }
 0x28f   :  { %2057 = vmatmul.bf16.vlgmr.msrb.gmra.mxu1 %v5493_v46  ;;  %2083 = vmatmul.bf16.vlgmr.msrb.gmra.mxu3 %v5493_v46  ;;  %v7088_v46 = vld [vmem:[#allocation25_spill] sm:$0xff] }
 0x290   :  { %2216 = vmatpush.bf16.msra.mxu1 %v7074_v57  ;;  %2242 = vmatpush.bf16.msra.mxu3 %v7075_v58  ;;  %v7083_v57 = vld [vmem:[#allocation48_spill] sm:$0xff]  ;;  %v7084_v58 = vld [vmem:[#allocation21_spill] sm:$0xff] }
 0x291   :  { %2209 = vmatpush.bf16.msra.mxu0 %v7076_v7  ;;  %2235 = vmatpush.bf16.msra.mxu2 %v7077_v35  ;;  %v7085_v7 = vld [vmem:[#allocation22_spill] sm:$0xff]  ;;  %v7086_v35 = vld [vmem:[#allocation51_spill] sm:$0xff] }
 0x294   :  { %2217 = vmatpush.bf16.msra.mxu1 %v7078_v20  ;;  %2243 = vmatpush.bf16.msra.mxu3 %v7079_v60  ;;  %v7089_v20 = vld [vmem:[#allocation26_spill] sm:$0xff]  ;;  %v7090_v60 = vld [vmem:[#allocation55_spill] sm:$0xff] }
 0x295   :  { %2210 = vmatpush.bf16.msra.mxu0 %v7080_v9  ;;  %2236 = vmatpush.bf16.msra.mxu2 %v7081_v48  ;;  %v7091_v9 = vld [vmem:[#allocation56_spill] sm:$0xff]  ;;  %v7092_v48 = vld [vmem:[#allocation29_spill] sm:$0xff] }
 0x298   :  { %2218 = vmatpush.bf16.msra.mxu1 %v7084_v58  ;;  %2244 = vmatpush.bf16.msra.mxu3 %v7085_v7  ;;  %v7095_v58 = vld [vmem:[#allocation60_spill] sm:$0xff]  ;;  %v7096_v7 = vld [vmem:[#allocation33_spill] sm:$0xff] }
 0x299   :  { %2255 = vmatpush.bf16.msrb.mxu0 %v7082_v62  ;;  %2281 = vmatpush.bf16.msrb.mxu2 %v7083_v57  ;;  %v7093_v62 = vld [vmem:[#allocation30_spill] sm:$0xff]  ;;  %v7094_v57 = vld [vmem:[#allocation59_spill] sm:$0xff] }
 0x29c   :  { %2219 = vmatpush.bf16.msra.mxu1 %v7088_v46  ;;  %2245 = vmatpush.bf16.msra.mxu3 %v7089_v20  ;;  %v7099_v46 = vld [vmem:[#allocation64_spill] sm:$0xff]  ;;  %v7100_v20 = vld [vmem:[#allocation37_spill] sm:$0xff] }
 0x29d   :  { %2256 = vmatpush.bf16.msrb.mxu0 %v7086_v35  ;;  %2282 = vmatpush.bf16.msrb.mxu2 %v7087_v22  ;;  %v7097_v35 = vld [vmem:[#allocation34_spill] sm:$0xff]  ;;  %v7098_v22 = vld [vmem:[#allocation63_spill] sm:$0xff] }
 0x2a0   :  { %2220 = vmatpush.bf16.msra.mxu1 %v7092_v48  ;;  %2246 = vmatpush.bf16.msra.mxu3 %v7093_v62  ;;  %v7103_v48 = vld [vmem:[#allocation69_spill] sm:$0xff] }
 0x2a1   :  { %2257 = vmatpush.bf16.msrb.mxu0 %v7090_v60  ;;  %2283 = vmatpush.bf16.msrb.mxu2 %v7091_v9  ;;  %v7101_v60 = vld [vmem:[#allocation38_spill] sm:$0xff]  ;;  %v7102_v9 = vld [vmem:[#allocation68_spill] sm:$0xff]  ;;  %v7104_v62 = vld [vmem:[#allocation41_spill] sm:$0xff] }
 0x2a4   :  { %2221 = vmatpush.bf16.msra.mxu1 %v7096_v7  ;;  %2247 = vmatpush.bf16.msra.mxu3 %v7097_v35  ;;  %v7107_v7 = vld [vmem:[#allocation44_spill] sm:$0xff]  ;;  %v7108_v35 = vld [vmem:[#allocation73_spill] sm:$0xff] }
 0x2a5   :  { %2258 = vmatpush.bf16.msrb.mxu0 %v7094_v57  ;;  %2284 = vmatpush.bf16.msrb.mxu2 %v7095_v58  ;;  %v7105_v57 = vld [vmem:[#allocation42_spill] sm:$0xff]  ;;  %v7106_v58 = vld [vmem:[#allocation43_spill] sm:$0xff] }
 0x2a8   :  { %2222 = vmatpush.bf16.msra.mxu1 %v7100_v20  ;;  %2248 = vmatpush.bf16.msra.mxu3 %v7101_v60  ;;  %v7111_v20 = vld [vmem:[#allocation50_spill] sm:$0xff]  ;;  %v7112_v60 = vld [vmem:[#allocation79_spill] sm:$0xff] }
 0x2a9   :  { %2259 = vmatpush.bf16.msrb.mxu0 %v7098_v22  ;;  %2285 = vmatpush.bf16.msrb.mxu2 %v7099_v46  ;;  %v7109_v22 = vld [vmem:[#allocation74_spill] sm:$0xff]  ;;  %v7110_v46 = vld [vmem:[#allocation49_spill] sm:$0xff] }
 0x2ac   :  { %2223 = vmatpush.bf16.msra.mxu1 %v7104_v62  ;;  %2249 = vmatpush.bf16.msra.mxu3 %v7105_v57  ;;  %v7115_v62 = vld [vmem:[#allocation54_spill] sm:$0xff]  ;;  %v7116_v57 = vld [vmem:[#allocation57_spill] sm:$0xff] }
 0x2ad   :  { %2260 = vmatpush.bf16.msrb.mxu0 %v7102_v9  ;;  %2286 = vmatpush.bf16.msrb.mxu2 %v7103_v48  ;;  %v7113_v9 = vld [vmem:[#allocation80_spill] sm:$0xff]  ;;  %v7114_v48 = vld [vmem:[#allocation53_spill] sm:$0xff] }
 0x2b0   :  { %2268 = vmatpush.bf16.msrb.mxu1 %v7106_v58  ;;  %2294 = vmatpush.bf16.msrb.mxu3 %v7107_v7  ;;  %v7117_v58 = vld [vmem:[#allocation58_spill] sm:$0xff] }
 0x2b1   :  { %2261 = vmatpush.bf16.msrb.mxu0 %v7108_v35  ;;  %2287 = vmatpush.bf16.msrb.mxu2 %v7109_v22  ;;  %v7118_v35 = vld [vmem:[#allocation61_spill] sm:$0xff]  ;;  %v7119_v22 = vld [vmem:[#allocation62_spill] sm:$0xff] }
 0x2b3   :  { %v1889_v7 = vpop.f32.mrf.mxu0 }
 0x2b4   :  { %2269 = vmatpush.bf16.msrb.mxu1 %v7110_v46  ;;  %2295 = vmatpush.bf16.msrb.mxu3 %v7111_v20  ;;  %v7121_v20 = vld [vmem:[#allocation66_spill] sm:$0xff] }
 0x2b5   :  { %2262 = vmatpush.bf16.msrb.mxu0 %v7112_v60  ;;  %2288 = vmatpush.bf16.msrb.mxu2 %v7113_v9  ;;  %v7122_v9 = vld [vmem:[#allocation71_spill] sm:$0xff] }
 0x2b8   :  { %2270 = vmatpush.bf16.msrb.mxu1 %v7114_v48  ;;  %2296 = vmatpush.bf16.msrb.mxu3 %v7115_v62  ;;  %v7123_v48 = vld [vmem:[#allocation72_spill] sm:$0xff] }
 0x2b9   :  { %v1915_v46 = vpop.f32.mrf.mxu2 }
 0x2bb   :  { %v1891_v60 = vpop.f32.mrf.mxu0 }
 0x2bc   :  { %2271 = vmatpush.bf16.msrb.mxu1 %v7116_v57  ;;  %2297 = vmatpush.bf16.msrb.mxu3 %v7117_v58  ;;  %v7125_v57 = vld [vmem:[#allocation76_spill] sm:$0xff] }
 0x2c0   :  { %2272 = vmatpush.bf16.msrb.mxu1 %v7118_v35  ;;  %2298 = vmatpush.bf16.msrb.mxu3 %v7119_v22 }
 0x2c1   :  { %v1917_v62 = vpop.f32.mrf.mxu2 }
 0x2c3   :  { %v1941_v58 = vpop.f32.mrf.mxu0 }
 0x2c4   :  { %2273 = vmatpush.bf16.msrb.mxu1 %v7120_v38  ;;  %2299 = vmatpush.bf16.msrb.mxu3 %v7121_v20  ;;  %v210_v38 = vstv %s3694_s27  ;;  %v207_v20 = vmul.f32 %v7126_v1, %v206_v8 }
 0x2c5   :  { %v211_v60 = vmul.f32 %v7126_v1, %v210_v38 }
 0x2c8   :  { %2274 = vmatpush.bf16.msrb.mxu1 %v7122_v9  ;;  %2300 = vmatpush.bf16.msrb.mxu3 %v7123_v48  ;;  %v7127_v48 = vld [vmem:[#allocation70_spill] sm:$0xff] }
 0x2c9   :  { %v1967_v35 = vpop.f32.mrf.mxu2  ;;  %v208_v62 = vadd.f32 %v7127_v48, %v207_v20 }
 0x2cb   :  { %v1943_v47 = vpop.f32.mrf.mxu0  ;;  %v215_v42 = vperm.slane %v208_v62, 1  ;;  %v216_v55 = vperm.slane %v208_v62, 2  ;;  %v217_v39 = vperm.slane %v208_v62, 3  ;;  %v214_v2 = vperm.slane %v208_v62, 0 }
 0x2cc   :  { %2275 = vmatpush.bf16.msrb.mxu1 %v7124_v6  ;;  %2301 = vmatpush.bf16.msrb.mxu3 %v7125_v57  ;;  %v1902_v22 = vpop.f32.mrf.mxu1  ;;  %v212_v6 = vadd.f32 %v7127_v48, %v211_v60 }
 0x2ce   :  { %v224_v16 = vperm.slane %v212_v6, 1  ;;  %v225_v13 = vperm.slane %v212_v6, 2  ;;  %v226_v50 = vperm.slane %v212_v6, 3  ;;  %v223_v63 = vperm.slane %v212_v6, 0 }
 0x2d0   :  { %v232_v1 = vsel %vm99_vm0, %v215_v42, %v224_v16  ;;  %v231_v30 = vsel %vm99_vm0, %v214_v2, %v223_v63 }
 0x2d1   :  { %v1969_v36 = vpop.f32.mrf.mxu2  ;;  %v239_v48 = vrot.slane %v232_v1, 6 }
 0x2d2   :  { %v1928_v9 = vpop.f32.mrf.mxu3  ;;  %v233_v36 = vsel %vm99_vm0, %v216_v55, %v225_v13  ;;  %v1903_v13 = vadd.f32 %v1902_v22, %v1889_v7 }
 0x2d3   :  { %v1929_v38 = vadd.f32 %v1928_v9, %v1915_v46  ;;  %v240_v60 = vrot.slane %v233_v36, 4  ;;  %v242_v62 = vsel %vm111_vm1, %v231_v30, %v239_v48 }
 0x2d4   :  { %v1904_v59 = vpop.f32.mrf.mxu1 }
 0x2d5   :  { %v234_v59 = vsel %vm99_vm0, %v217_v39, %v226_v50 }
 0x2d6   :  { %v241_v25 = vrot.slane %v234_v59, 2 }
 0x2d7   :  { %v1993_v57 = vpop.f32.mrf.mxu0 }
 0x2d8   :  { %v243_v6 = vsel %vm113_vm2, %v240_v60, %v241_v25 }
 0x2d9   :  { %v244_v39 = vsel %vm115_vm3, %v242_v62, %v243_v6 }
 0x2da   :  { %v1930_v47 = vpop.f32.mrf.mxu3 }
 0x2db   :  { %v2093_v47 = vrot.slane %v1929_v38, 6 }
 0x2dc   :  { %v1954_v18 = vpop.f32.mrf.mxu1 }
 0x2dd   :  { %v2019_v8 = vpop.f32.mrf.mxu2  ;;  %v1955_v34 = vadd.f32 %v1954_v18, %v1941_v58  ;;  %v2096_v9 = vsel %vm111_vm1, %v1903_v13, %v2093_v47 }
 0x2df   :  { %v1995_v20 = vpop.f32.mrf.mxu0  ;;  %v2094_v55 = vrot.slane %v1955_v34, 4 }
 0x2e2   :  { %v1980_v26 = vpop.f32.mrf.mxu3 }
 0x2e3   :  { %v1981_v45 = vadd.f32 %v1980_v26, %v1967_v35 }
 0x2e4   :  { %v1956_v42 = vpop.f32.mrf.mxu1 }
 0x2e5   :  { %v2021_v16 = vpop.f32.mrf.mxu2  ;;  %v2095_v50 = vrot.slane %v1981_v45, 2 }
 0x2e7   :  { %v2097_v46 = vsel %vm113_vm2, %v2094_v55, %v2095_v50 }
 0x2e8   :  { %v2098_v63 = vsel %vm115_vm3, %v2096_v9, %v2097_v46 }
 0x2e9   :  { %v2100_v18 = vadd.f32 %v2098_v63, %v244_v39 }
 0x2ea   :  { %v1982_v2 = vpop.f32.mrf.mxu3 }
 0x2eb   :  { %v4224_v58 = vmul.f32 -1.442695, %v2100_v18  ;;  %v2121_v42 = vrot.slane %v2100_v18, 6 }
 0x2ec   :  { %v2006_v30 = vpop.f32.mrf.mxu1 }
 0x2ed   :  { %4439 = vpow2.f32 %v4224_v58  ;;  %v2007_v25 = vadd.f32 %v2006_v30, %v1993_v57 }
 0x2ef   :  { %v2134_v26 = vadd.f32 %v2007_v25, %v5221_v12 }
 0x2f1   :  { %v4225_v35 = vmul.f32 -1.442695, %v2134_v26 }
 0x2f2   :  { %v2032_v7 = vpop.f32.mrf.mxu3 }
 0x2f3   :  { %v4440_v34 = vpop.eup %4439  ;;  %4441 = vpow2.f32 %v4225_v35  ;;  %v2033_v45 = vadd.f32 %v2032_v7, %v2019_v8 }
 0x2f4   :  { %v2104_v1 = vadd.f32 1.0, %v4440_v34  ;;  %v2008_v36 = vpop.f32.mrf.mxu1 }
 0x2f5   :  { %v2135_v59 = vadd.f32 %v2033_v45, %v5225_v56 }
 0x2f6   :  { %4443 = vrcp.f32 %v2104_v1  ;;  %v2116_v13 = vand.u32 2147483648, %v2104_v1  ;;  %v2114_v39 = vand.u32 2147483647, %v2104_v1  ;;  %vm2110_vm5 = vweird.f32 %v2104_v1 }
 0x2f7   :  { %v2045_v22 = vpop.f32.mrf.mxu0  ;;  %v4226_v20 = vmul.f32 -1.442695, %v2135_v59 }
 0x2f8   :  { %v2117_v2 = vor.u32 1.1754944e-38, %v2116_v13  ;;  %vm2115_vm7 = vcmp.eq.f32.partialorder %v2114_v39, 8.507059e+37 }
 0x2f9   :  { %v4442_v38 = vpop.eup %4441  ;;  %4445 = vpow2.f32 %v4226_v20 }
 0x2fa   :  { %v5641_v60 = vadd.f32 1.0, %v4442_v38  ;;  %v2034_v57 = vpop.f32.mrf.mxu3 }
 0x2fc   :  { %v4444_v62 = vpop.eup %4443  ;;  %4447 = vrcp.f32 %v5641_v60  ;;  %vm2155_vm10 = vweird.f32 %v5641_v60 }
 0x2fd   :  { %v2071_v48 = vpop.f32.mrf.mxu2  ;;  %v2106_v6 = vmul.f32 %v4444_v62, %v2104_v1  ;;  %vm2111_vm4 = vweird.f32 %v4444_v62  ;;  %4449 = vtanh.f32 %v2121_v42 }
 0x2fe   :  { %vm2112_vm6 = vmor %vm2110_vm5, %vm2111_vm4 }
 0x2ff   :  { %v2047_v47 = vpop.f32.mrf.mxu0  ;;  %v4446_v8 = vpop.eup %4445  ;;  %v2107_v16 = vsub.f32 1.0, %v2106_v6 }
 0x300   :  { %v5644_v55 = vadd.f32 1.0, %v4446_v8 }
 0x301   :  { %v2108_v50 = vmul.f32 %v4444_v62, %v2107_v16 }
 0x302   :  { %4451 = vrcp.f32 %v5644_v55  ;;  %v4448_v63 = vpop.eup %4447  ;;  %vm2170_vm11 = vweird.f32 %v5644_v55 }
 0x303   :  { %v2109_v46 = vadd.f32 %v4444_v62, %v2108_v50  ;;  %v4450_v30 = vpop.eup %4449  ;;  %v2151_v26 = vmul.f32 %v4448_v63, %v5641_v60  ;;  %vm2156_vm8 = vweird.f32 %v4448_v63 }
 0x304   :  { %vm5659_vm12 = vmor %vm2155_vm10, %vm2156_vm8 }
 0x305   :  { %v2073_v9 = vpop.f32.mrf.mxu2  ;;  %v2113_v18 = vsel %vm2112_vm6, %v4444_v62, %v2109_v46  ;;  %v2152_v1 = vsub.f32 1.0, %v2151_v26  ;;  %v2176_v46 = vand.u32 2147483648, %v5644_v55  ;;  %v7138_v26 = vld [vmem:[#allocation89_spill] sm:$0xff] }
 0x306   :  { %v2118_v58 = vsel %vm2115_vm7, %v2117_v2, %v2113_v18  ;;  %v2161_v2 = vand.u32 2147483648, %v5641_v60  ;;  %v2159_v18 = vand.u32 2147483647, %v5641_v60 }
 0x307   :  { %v2125_v25 = vrot.slane %v2118_v58, 2  ;;  %v2128_v34 = vmul.f32 %v4450_v30, %v2118_v58  ;;  %v2153_v42 = vmul.f32 %v4448_v63, %v2152_v1  ;;  %v2131_v16 = vrot.slane %v2118_v58, 4 }
 0x308   :  { %v4452_v35 = vpop.eup %4451  ;;  %v2174_v58 = vand.u32 2147483647, %v5644_v55  ;;  %v2162_v1 = vor.u32 1.1754944e-38, %v2161_v2  ;;  %vm2160_vm14 = vcmp.eq.f32.partialorder %v2159_v18, 8.507059e+37  ;;  %v7133_v2 = vld [vmem:[#allocation86_spill] sm:$0xff]  ;;  %v7135_v18 = vld [vmem:[#allocation88_spill] sm:$0xff] }
 0x309   :  { %v2127_v7 = vmul.f32 %v2125_v25, %v5450_v49  ;;  %v2166_v45 = vmul.f32 %v4452_v35, %v5644_v55  ;;  %vm2171_vm9 = vweird.f32 %v4452_v35  ;;  %v2154_v50 = vadd.f32 %v4448_v63, %v2153_v42 }
 0x30a   :  { %vm5667_vm13 = vmor %vm2170_vm11, %vm2171_vm9  ;;  %vm2175_vm15 = vcmp.eq.f32.partialorder %v2174_v58, 8.507059e+37  ;;  %v7136_v58 = vld [vmem:[#allocation125_spill] sm:$0xff] }
 0x30b   :  { %v5650_v20 = vadd.f32 %v2128_v34, %v2127_v7  ;;  %v2167_v38 = vsub.f32 1.0, %v2166_v45  ;;  %v2158_v34 = vsel %vm5659_vm12, %v4448_v63, %v2154_v50 }
 0x30c   :  { %v2058_v36 = vpop.f32.mrf.mxu1  ;;  %v2163_v55 = vsel %vm2160_vm14, %v2162_v1, %v2158_v34  ;;  %v7140_v34 = vld [vmem:[#allocation127_spill] sm:$0xff]  ;;  %v7144_v1 = vld [vmem:[#allocation129_spill] sm:$0xff] }
 0x30d   :  { %v2059_v59 = vadd.f32 %v2058_v36, %v2045_v22  ;;  %4453 = vtanh.f32 %v5650_v20  ;;  %v2168_v62 = vmul.f32 %v4452_v35, %v2167_v38 }
 0x30f   :  { %v2136_v57 = vadd.f32 %v2059_v59, %v5239_v40  ;;  %v2169_v39 = vadd.f32 %v4452_v35, %v2168_v62  ;;  %v2177_v59 = vor.u32 1.1754944e-38, %v2176_v46  ;;  %v7132_v46 = vld [vmem:[#allocation85_spill] sm:$0xff] }
 0x311   :  { %v4227_v47 = vmul.f32 -1.442695, %v2136_v57  ;;  %v2173_v45 = vsel %vm5667_vm13, %v4452_v35, %v2169_v39 }
 0x312   :  { %v2084_v6 = vpop.f32.mrf.mxu3  ;;  %v2178_v63 = vsel %vm2175_vm15, %v2177_v59, %v2173_v45  ;;  %v7141_v45 = vld [vmem:[#allocation128_spill] sm:$0xff]  ;;  %v7143_v59 = vld [vmem:[#allocation93_spill] sm:$0xff] }
 0x313   :  { %4455 = vpow2.f32 %v4227_v47  ;;  %v2085_v8 = vadd.f32 %v2084_v6, %v2071_v48  ;;  %v4454_v22 = vpop.eup %4453  ;;  %v2196_v35 = vmul.f32 %v2178_v63, %v5482_v51  ;;  %v7134_v48 = vld [vmem:[#allocation87_spill] sm:$0xff] }
 0x314   :  { %v2060_v49 = vpop.f32.mrf.mxu1  ;;  %v2133_v9 = vmul.f32 %v4454_v22, %v2131_v16  ;;  %v7147_v63 = vld [vmem:[#allocation95_spill] sm:$0xff] }
 0x315   :  { %v2137_v13 = vadd.f32 %v2085_v8, %v5248_v53 }
 0x316   :  { %v5665_v25 = vpack.c.bf16 %v2133_v9, %v2133_v9 }
 0x317   :  { %4457 = vtanh.f32 %v2137_v13 }
 0x318   :  { %2211 = vmatmul.bf16.vlgmr.msra.gmra.mxu0 %v5665_v25  ;;  %2237 = vmatmul.bf16.vlgmr.msra.gmra.mxu2 %v5665_v25 }
 0x319   :  { %v4456_v30 = vpop.eup %4455  ;;  %2307 = vmatpush.bf16.msra.mxu0 %v6923_v3  ;;  %2333 = vmatpush.bf16.msra.mxu2 %v6924_v44 }
 0x31a   :  { %v2149_v7 = vadd.f32 1.0, %v4456_v30  ;;  %v2086_v36 = vpop.f32.mrf.mxu3  ;;  %v7137_v30 = vld [vmem:[#allocation126_spill] sm:$0xff] }
 0x31b   :  { %v7142_v36 = vld [vmem:[#allocation92_spill] sm:$0xff] }
 0x31c   :  { %4459 = vrcp.f32 %v2149_v7  ;;  %v2191_v42 = vand.u32 2147483648, %v2149_v7  ;;  %v2189_v49 = vand.u32 2147483647, %v2149_v7  ;;  %vm2185_vm5 = vweird.f32 %v2149_v7 }
 0x31d   :  { %v4458_v60 = vpop.eup %4457  ;;  %2308 = vmatpush.bf16.msra.mxu0 %v6925_v28  ;;  %2334 = vmatpush.bf16.msra.mxu2 %v6926_v5 }
 0x31e   :  { %v2197_v38 = vmul.f32 %v4458_v60, %v2163_v55  ;;  %v2192_v16 = vor.u32 1.1754944e-38, %v2191_v42  ;;  %vm2190_vm7 = vcmp.eq.f32.partialorder %v2189_v49, 8.507059e+37  ;;  %v7145_v60 = vld [vmem:[#allocation130_spill] sm:$0xff]  ;;  %v7155_v49 = vld [vmem:[#allocation101_spill] sm:$0xff] }
 0x31f   :  { %v7146_v55 = vld [vmem:[#allocation94_spill] sm:$0xff] }
 0x320   :  { %v5682_v47 = vadd.f32 %v2197_v38, %v2196_v35  ;;  %v7148_v38 = vld [vmem:[#allocation131_spill] sm:$0xff]  ;;  %v7149_v35 = vld [vmem:[#allocation132_spill] sm:$0xff]  ;;  %v7153_v42 = vld [vmem:[#allocation134_spill] sm:$0xff] }
 0x321   :  { %2309 = vmatpush.bf16.msra.mxu0 %v6927_v52  ;;  %2335 = vmatpush.bf16.msra.mxu2 %v6928_v33 }
 0x322   :  { %v4460_v57 = vpop.eup %4459  ;;  %4461 = vtanh.f32 %v5682_v47 }
 0x323   :  { %v2181_v62 = vmul.f32 %v4460_v57, %v2149_v7  ;;  %vm2186_vm4 = vweird.f32 %v4460_v57  ;;  %v7139_v7 = vld [vmem:[#allocation90_spill] sm:$0xff] }
 0x324   :  { %vm2187_vm6 = vmor %vm2185_vm5, %vm2186_vm4 }
 0x325   :  { %v2182_v6 = vsub.f32 1.0, %v2181_v62  ;;  %2310 = vmatpush.bf16.msra.mxu0 %v6929_v61  ;;  %2336 = vmatpush.bf16.msra.mxu2 %v6930_v0  ;;  %v7151_v62 = vld [vmem:[#allocation97_spill] sm:$0xff] }
 0x327   :  { %v2183_v8 = vmul.f32 %v4460_v57, %v2182_v6  ;;  %v7152_v6 = vld [vmem:[#allocation133_spill] sm:$0xff] }
 0x328   :  { %2263 = vmatmul.bf16.vlgmr.msrb.gmra.mxu0 %v5665_v25  ;;  %2289 = vmatmul.bf16.vlgmr.msrb.gmra.mxu2 %v5665_v25  ;;  %v4462_v22 = vpop.eup %4461 }
 0x329   :  { %v2184_v51 = vadd.f32 %v4460_v57, %v2183_v8  ;;  %2311 = vmatpush.bf16.msra.mxu0 %v6931_v11  ;;  %2337 = vmatpush.bf16.msra.mxu2 %v6932_v4  ;;  %v7154_v8 = vld [vmem:[#allocation100_spill] sm:$0xff] }
 0x32b   :  { %v2188_v13 = vsel %vm2187_vm6, %v4460_v57, %v2184_v51  ;;  %v7150_v57 = vld [vmem:[#allocation96_spill] sm:$0xff]  ;;  %v7156_v51 = vld [vmem:[#allocation135_spill] sm:$0xff] }
 0x32c   :  { %v2193_v50 = vsel %vm2190_vm7, %v2192_v16, %v2188_v13  ;;  %v7157_v16 = vld [vmem:[#allocation136_spill] sm:$0xff] }
 0x32d   :  { %v2200_v39 = vmul.f32 %v4462_v22, %v2193_v50  ;;  %2312 = vmatpush.bf16.msra.mxu0 %v6933_v29  ;;  %2338 = vmatpush.bf16.msra.mxu2 %v6934_v17  ;;  %v7158_v13 = vld [vmem:[#allocation104_spill] sm:$0xff]  ;;  %v7159_v22 = vld [vmem:[#allocation105_spill] sm:$0xff]  ;;  %v7160_v50 = vld [vmem:[#allocation15_spill] sm:$0xff] }
 0x32f   :  { %v5693_v9 = vpack.c.bf16 %v2200_v39, %v2200_v39  ;;  %v7161_v39 = vld [vmem:[#allocation16_spill] sm:$0xff] }
 0x331   :  { %2224 = vmatmul.bf16.vlgmr.msra.gmra.mxu1 %v5693_v9  ;;  %2250 = vmatmul.bf16.vlgmr.msra.gmra.mxu3 %v5693_v9 }
 0x332   :  { %2320 = vmatpush.bf16.msra.mxu1 %v6935_v41  ;;  %2346 = vmatpush.bf16.msra.mxu3 %v6936_v19 }
 0x333   :  { %2313 = vmatpush.bf16.msra.mxu0 %v5060_v15  ;;  %2339 = vmatpush.bf16.msra.mxu2 %v5062_v54 }
 0x336   :  { %2321 = vmatpush.bf16.msra.mxu1 %v6937_v24  ;;  %2347 = vmatpush.bf16.msra.mxu3 %v6938_v10 }
 0x337   :  { %2314 = vmatpush.bf16.msra.mxu0 %v5072_v32  ;;  %2340 = vmatpush.bf16.msra.mxu2 %v5074_v21 }
 0x33a   :  { %2322 = vmatpush.bf16.msra.mxu1 %v6939_v14  ;;  %2348 = vmatpush.bf16.msra.mxu3 %v6940_v43 }
 0x33b   :  { %2359 = vmatpush.bf16.msrb.mxu0 %v5076_v37  ;;  %2385 = vmatpush.bf16.msrb.mxu2 %v5078_v27 }
 0x33c   :  { %2315 = vmatmul.bf16.vlgmr.msra.gmra.mxu0 %v5665_v25  ;;  %2341 = vmatmul.bf16.vlgmr.msra.gmra.mxu2 %v5665_v25 }
 0x33e   :  { %2323 = vmatpush.bf16.msra.mxu1 %v7132_v46  ;;  %2349 = vmatpush.bf16.msra.mxu3 %v7133_v2 }
 0x33f   :  { %2360 = vmatpush.bf16.msrb.mxu0 %v7024_v31  ;;  %2386 = vmatpush.bf16.msrb.mxu2 %v5090_v23 }
 0x341   :  { %2276 = vmatmul.bf16.vlgmr.msrb.gmra.mxu1 %v5693_v9  ;;  %2302 = vmatmul.bf16.vlgmr.msrb.gmra.mxu3 %v5693_v9 }
 0x342   :  { %2324 = vmatpush.bf16.msra.mxu1 %v7134_v48  ;;  %2350 = vmatpush.bf16.msra.mxu3 %v7135_v18 }
 0x343   :  { %2361 = vmatpush.bf16.msrb.mxu0 %v7136_v58  ;;  %2387 = vmatpush.bf16.msrb.mxu2 %v7137_v30 }
 0x346   :  { %2325 = vmatpush.bf16.msra.mxu1 %v7138_v26  ;;  %2351 = vmatpush.bf16.msra.mxu3 %v7139_v7 }
 0x347   :  { %2362 = vmatpush.bf16.msrb.mxu0 %v7140_v34  ;;  %2388 = vmatpush.bf16.msrb.mxu2 %v7141_v45 }
 0x34a   :  { %2326 = vmatpush.bf16.msra.mxu1 %v7142_v36  ;;  %2352 = vmatpush.bf16.msra.mxu3 %v7143_v59 }
 0x34b   :  { %2363 = vmatpush.bf16.msrb.mxu0 %v7144_v1  ;;  %2389 = vmatpush.bf16.msrb.mxu2 %v7145_v60 }
 0x34e   :  { %2327 = vmatpush.bf16.msra.mxu1 %v7146_v55  ;;  %2353 = vmatpush.bf16.msra.mxu3 %v7147_v63 }
 0x34f   :  { %2364 = vmatpush.bf16.msrb.mxu0 %v7148_v38  ;;  %2390 = vmatpush.bf16.msrb.mxu2 %v7149_v35 }
 0x351   :  { %2328 = vmatmul.bf16.vlgmr.msra.gmra.mxu1 %v5693_v9  ;;  %2354 = vmatmul.bf16.vlgmr.msra.gmra.mxu3 %v5693_v9 }
 0x352   :  { %2372 = vmatpush.bf16.msrb.mxu1 %v7150_v57  ;;  %2398 = vmatpush.bf16.msrb.mxu3 %v7151_v62  ;;  %v7232_v62 = vld [vmem:[#allocation75_spill] sm:$0xff]  ;;  %v249_v57 = vstv %s3695_s28 }
 0x353   :  { %2365 = vmatpush.bf16.msrb.mxu0 %v7152_v6  ;;  %2391 = vmatpush.bf16.msrb.mxu2 %v7153_v42  ;;  %v7162_v42 = vld [vmem:[#allocation108_spill] sm:$0xff]  ;;  %v7171_v6 = vld [vmem:[#allocation117_spill] sm:$0xff] }
 0x356   :  { %2373 = vmatpush.bf16.msrb.mxu1 %v7154_v8  ;;  %2399 = vmatpush.bf16.msrb.mxu3 %v7155_v49  ;;  %v7163_v8 = vld [vmem:[#allocation109_spill] sm:$0xff]  ;;  %v7164_v49 = vld [vmem:[#allocation19_spill] sm:$0xff] }
 0x357   :  { %2366 = vmatpush.bf16.msrb.mxu0 %v7156_v51  ;;  %2392 = vmatpush.bf16.msrb.mxu2 %v7157_v16  ;;  %v7165_v51 = vld [vmem:[#allocation20_spill] sm:$0xff] }
 0x358   :  { %v7166_v16 = vld [vmem:[#allocation112_spill] sm:$0xff] }
 0x35a   :  { %2374 = vmatpush.bf16.msrb.mxu1 %v7158_v13  ;;  %2400 = vmatpush.bf16.msrb.mxu3 %v7159_v22  ;;  %v7167_v13 = vld [vmem:[#allocation113_spill] sm:$0xff]  ;;  %v7168_v22 = vld [vmem:[#allocation23_spill] sm:$0xff] }
 0x35b   :  { %2526 = vmatpush.bf16.msra.mxu0 %v7160_v50  ;;  %2552 = vmatpush.bf16.msra.mxu2 %v7161_v39  ;;  %v7169_v50 = vld [vmem:[#allocation24_spill] sm:$0xff] }
 0x35c   :  { %2367 = vmatmul.bf16.vlgmr.msrb.gmra.mxu0 %v5665_v25  ;;  %2393 = vmatmul.bf16.vlgmr.msrb.gmra.mxu2 %v5665_v25  ;;  %v7170_v39 = vld [vmem:[#allocation116_spill] sm:$0xff]  ;;  %v7172_v25 = vld [vmem:[#allocation27_spill] sm:$0xff] }
 0x35e   :  { %2375 = vmatpush.bf16.msrb.mxu1 %v7162_v42  ;;  %2401 = vmatpush.bf16.msrb.mxu3 %v7163_v8  ;;  %v7173_v42 = vld [vmem:[#allocation28_spill] sm:$0xff] }
 0x35f   :  { %2527 = vmatpush.bf16.msra.mxu0 %v7164_v49  ;;  %2553 = vmatpush.bf16.msra.mxu2 %v7165_v51  ;;  %v7174_v8 = vld [vmem:[#allocation120_spill] sm:$0xff]  ;;  %v7175_v49 = vld [vmem:[#allocation121_spill] sm:$0xff]  ;;  %v7176_v51 = vld [vmem:[#allocation31_spill] sm:$0xff] }
 0x362   :  { %2376 = vmatpush.bf16.msrb.mxu1 %v7166_v16  ;;  %2402 = vmatpush.bf16.msrb.mxu3 %v7167_v13  ;;  %v7177_v16 = vld [vmem:[#allocation32_spill] sm:$0xff]  ;;  %v7178_v13 = vld [vmem:[#allocation122_spill] sm:$0xff] }
 0x363   :  { %2528 = vmatpush.bf16.msra.mxu0 %v7168_v22  ;;  %2554 = vmatpush.bf16.msra.mxu2 %v7169_v50  ;;  %v7179_v22 = vld [vmem:[#allocation123_spill] sm:$0xff] }
 0x364   :  { %v7180_v50 = vld [vmem:[#allocation35_spill] sm:$0xff] }
 0x366   :  { %2377 = vmatpush.bf16.msrb.mxu1 %v7170_v39  ;;  %2403 = vmatpush.bf16.msrb.mxu3 %v7171_v6  ;;  %v7181_v39 = vld [vmem:[#allocation36_spill] sm:$0xff]  ;;  %v7182_v6 = vld [vmem:[#allocation13_spill] sm:$0xff] }
 0x367   :  { %2529 = vmatpush.bf16.msra.mxu0 %v7172_v25  ;;  %2555 = vmatpush.bf16.msra.mxu2 %v7173_v42  ;;  %v7183_v25 = vld [vmem:[#allocation14_spill] sm:$0xff] }
 0x36a   :  { %2378 = vmatpush.bf16.msrb.mxu1 %v7174_v8  ;;  %2404 = vmatpush.bf16.msrb.mxu3 %v7175_v49  ;;  %v7184_v49 = vld [vmem:[#allocation39_spill] sm:$0xff]  ;;  %v7185_v8 = vld [vmem:[#allocation40_spill] sm:$0xff] }
 0x36b   :  { %2530 = vmatpush.bf16.msra.mxu0 %v7176_v51  ;;  %2556 = vmatpush.bf16.msra.mxu2 %v7177_v16  ;;  %v7186_v16 = vld [vmem:[#allocation17_spill] sm:$0xff]  ;;  %v7193_v51 = vld [vmem:[#allocation48_spill] sm:$0xff] }
 0x36e   :  { %2379 = vmatpush.bf16.msrb.mxu1 %v7178_v13  ;;  %2405 = vmatpush.bf16.msrb.mxu3 %v7179_v22  ;;  %v7187_v13 = vld [vmem:[#allocation18_spill] sm:$0xff]  ;;  %v7188_v22 = vld [vmem:[#allocation45_spill] sm:$0xff] }
 0x36f   :  { %2531 = vmatpush.bf16.msra.mxu0 %v7180_v50  ;;  %2557 = vmatpush.bf16.msra.mxu2 %v7181_v39  ;;  %v7189_v50 = vld [vmem:[#allocation46_spill] sm:$0xff]  ;;  %v7190_v39 = vld [vmem:[#allocation21_spill] sm:$0xff] }
 0x371   :  { %2380 = vmatmul.bf16.vlgmr.msrb.gmra.mxu1 %v5693_v9  ;;  %2406 = vmatmul.bf16.vlgmr.msrb.gmra.mxu3 %v5693_v9  ;;  %v7194_v9 = vld [vmem:[#allocation25_spill] sm:$0xff] }
 0x372   :  { %2539 = vmatpush.bf16.msra.mxu1 %v7182_v6  ;;  %2565 = vmatpush.bf16.msra.mxu3 %v7183_v25  ;;  %v7191_v6 = vld [vmem:[#allocation22_spill] sm:$0xff]  ;;  %v7192_v25 = vld [vmem:[#allocation47_spill] sm:$0xff] }
 0x373   :  { %2532 = vmatpush.bf16.msra.mxu0 %v7184_v49  ;;  %2558 = vmatpush.bf16.msra.mxu2 %v7185_v8  ;;  %v7195_v49 = vld [vmem:[#allocation26_spill] sm:$0xff]  ;;  %v7196_v8 = vld [vmem:[#allocation51_spill] sm:$0xff] }
 0x376   :  { %2540 = vmatpush.bf16.msra.mxu1 %v7186_v16  ;;  %2566 = vmatpush.bf16.msra.mxu3 %v7187_v13  ;;  %v7197_v16 = vld [vmem:[#allocation52_spill] sm:$0xff]  ;;  %v7198_v13 = vld [vmem:[#allocation29_spill] sm:$0xff] }
 0x377   :  { %2533 = vmatpush.bf16.msra.mxu0 %v7188_v22  ;;  %2559 = vmatpush.bf16.msra.mxu2 %v7189_v50  ;;  %v7199_v22 = vld [vmem:[#allocation30_spill] sm:$0xff]  ;;  %v7200_v50 = vld [vmem:[#allocation55_spill] sm:$0xff] }
 0x37a   :  { %2541 = vmatpush.bf16.msra.mxu1 %v7190_v39  ;;  %2567 = vmatpush.bf16.msra.mxu3 %v7191_v6  ;;  %v7201_v39 = vld [vmem:[#allocation56_spill] sm:$0xff]  ;;  %v7202_v6 = vld [vmem:[#allocation33_spill] sm:$0xff] }
 0x37b   :  { %2578 = vmatpush.bf16.msrb.mxu0 %v7192_v25  ;;  %2604 = vmatpush.bf16.msrb.mxu2 %v7193_v51  ;;  %v7203_v25 = vld [vmem:[#allocation34_spill] sm:$0xff]  ;;  %v7204_v51 = vld [vmem:[#allocation59_spill] sm:$0xff] }
 0x37e   :  { %2542 = vmatpush.bf16.msra.mxu1 %v7194_v9  ;;  %2568 = vmatpush.bf16.msra.mxu3 %v7195_v49  ;;  %v7205_v9 = vld [vmem:[#allocation60_spill] sm:$0xff]  ;;  %v7206_v49 = vld [vmem:[#allocation37_spill] sm:$0xff] }
 0x37f   :  { %2579 = vmatpush.bf16.msrb.mxu0 %v7196_v8  ;;  %2605 = vmatpush.bf16.msrb.mxu2 %v7197_v16  ;;  %v7207_v8 = vld [vmem:[#allocation38_spill] sm:$0xff]  ;;  %v7208_v16 = vld [vmem:[#allocation63_spill] sm:$0xff] }
 0x382   :  { %2543 = vmatpush.bf16.msra.mxu1 %v7198_v13  ;;  %2569 = vmatpush.bf16.msra.mxu3 %v7199_v22  ;;  %v7209_v13 = vld [vmem:[#allocation64_spill] sm:$0xff]  ;;  %v7210_v22 = vld [vmem:[#allocation41_spill] sm:$0xff] }
 0x383   :  { %2580 = vmatpush.bf16.msrb.mxu0 %v7200_v50  ;;  %2606 = vmatpush.bf16.msrb.mxu2 %v7201_v39  ;;  %v7211_v50 = vld [vmem:[#allocation42_spill] sm:$0xff]  ;;  %v7212_v39 = vld [vmem:[#allocation68_spill] sm:$0xff] }
 0x386   :  { %2544 = vmatpush.bf16.msra.mxu1 %v7202_v6  ;;  %2570 = vmatpush.bf16.msra.mxu3 %v7203_v25  ;;  %v7213_v6 = vld [vmem:[#allocation69_spill] sm:$0xff]  ;;  %v7214_v25 = vld [vmem:[#allocation43_spill] sm:$0xff] }
 0x387   :  { %2581 = vmatpush.bf16.msrb.mxu0 %v7204_v51  ;;  %2607 = vmatpush.bf16.msrb.mxu2 %v7205_v9  ;;  %v7215_v51 = vld [vmem:[#allocation44_spill] sm:$0xff]  ;;  %v7216_v9 = vld [vmem:[#allocation73_spill] sm:$0xff] }
 0x38a   :  { %2545 = vmatpush.bf16.msra.mxu1 %v7206_v49  ;;  %2571 = vmatpush.bf16.msra.mxu3 %v7207_v8  ;;  %v7217_v49 = vld [vmem:[#allocation74_spill] sm:$0xff]  ;;  %v7218_v8 = vld [vmem:[#allocation49_spill] sm:$0xff] }
 0x38b   :  { %2582 = vmatpush.bf16.msrb.mxu0 %v7208_v16  ;;  %2608 = vmatpush.bf16.msrb.mxu2 %v7209_v13  ;;  %v7219_v16 = vld [vmem:[#allocation50_spill] sm:$0xff]  ;;  %v7220_v13 = vld [vmem:[#allocation79_spill] sm:$0xff] }
 0x38e   :  { %2546 = vmatpush.bf16.msra.mxu1 %v7210_v22  ;;  %2572 = vmatpush.bf16.msra.mxu3 %v7211_v50  ;;  %v7221_v22 = vld [vmem:[#allocation80_spill] sm:$0xff]  ;;  %v7222_v50 = vld [vmem:[#allocation53_spill] sm:$0xff] }
 0x38f   :  { %2583 = vmatpush.bf16.msrb.mxu0 %v7212_v39  ;;  %2609 = vmatpush.bf16.msrb.mxu2 %v7213_v6  ;;  %v7223_v39 = vld [vmem:[#allocation54_spill] sm:$0xff] }
 0x392   :  { %2591 = vmatpush.bf16.msrb.mxu1 %v7214_v25  ;;  %2617 = vmatpush.bf16.msrb.mxu3 %v7215_v51  ;;  %v7224_v25 = vld [vmem:[#allocation57_spill] sm:$0xff]  ;;  %v7225_v51 = vld [vmem:[#allocation58_spill] sm:$0xff] }
 0x393   :  { %2584 = vmatpush.bf16.msrb.mxu0 %v7216_v9  ;;  %2610 = vmatpush.bf16.msrb.mxu2 %v7217_v49  ;;  %v7226_v9 = vld [vmem:[#allocation61_spill] sm:$0xff]  ;;  %v7227_v49 = vld [vmem:[#allocation62_spill] sm:$0xff] }
 0x395   :  { %v2212_v6 = vpop.f32.mrf.mxu0 }
 0x396   :  { %2592 = vmatpush.bf16.msrb.mxu1 %v7218_v8  ;;  %2618 = vmatpush.bf16.msrb.mxu3 %v7219_v16  ;;  %v7228_v16 = vld [vmem:[#allocation65_spill] sm:$0xff] }
 0x397   :  { %2585 = vmatpush.bf16.msrb.mxu0 %v7220_v13  ;;  %2611 = vmatpush.bf16.msrb.mxu2 %v7221_v22  ;;  %v7229_v13 = vld [vmem:[#allocation66_spill] sm:$0xff]  ;;  %v7230_v22 = vld [vmem:[#allocation71_spill] sm:$0xff] }
 0x39a   :  { %2593 = vmatpush.bf16.msrb.mxu1 %v7222_v50  ;;  %2619 = vmatpush.bf16.msrb.mxu3 %v7223_v39  ;;  %v7231_v50 = vld [vmem:[#allocation72_spill] sm:$0xff] }
 0x39b   :  { %v2238_v8 = vpop.f32.mrf.mxu2 }
 0x39d   :  { %v2214_v42 = vpop.f32.mrf.mxu0 }
 0x39e   :  { %2594 = vmatpush.bf16.msrb.mxu1 %v7224_v25  ;;  %2620 = vmatpush.bf16.msrb.mxu3 %v7225_v51  ;;  %v7233_v51 = vld [vmem:[#allocation76_spill] sm:$0xff]  ;;  %v253_v42 = vstv %s3696_s29 }
 0x3a2   :  { %2595 = vmatpush.bf16.msrb.mxu1 %v7226_v9  ;;  %2621 = vmatpush.bf16.msrb.mxu3 %v7227_v49 }
 0x3a3   :  { %v2240_v39 = vpop.f32.mrf.mxu2 }
 0x3a4   :  { %v5832_v39 = vld [vmem:[%s6502_s2] sm:$0xf] }
 0x3a5   :  { %v2264_v25 = vpop.f32.mrf.mxu0  ;;  %7235 = vst [vmem:[#allocation98_spill] sm:$0xff] %v5832_v39 }
 0x3a6   :  { %2596 = vmatpush.bf16.msrb.mxu1 %v7228_v16  ;;  %2622 = vmatpush.bf16.msrb.mxu3 %v7229_v13  ;;  %v5825_v16 = vld [vmem:[#allocation7] sm:$0xf] }
 0x3a7   :  { %7234 = vst [vmem:[#allocation91_spill] sm:$0xff] %v5825_v16  ;;  %v250_v13 = vmul.f32 %v5825_v16, %v249_v57 }
 0x3aa   :  { %2597 = vmatpush.bf16.msrb.mxu1 %v7230_v22  ;;  %2623 = vmatpush.bf16.msrb.mxu3 %v7231_v50  ;;  %v254_v22 = vmul.f32 %v5825_v16, %v253_v42 }
 0x3ab   :  { %v2290_v49 = vpop.f32.mrf.mxu2 }
 0x3ac   :  { %v255_v35 = vadd.f32 %v5832_v39, %v254_v22 }
 0x3ad   :  { %v2266_v63 = vpop.f32.mrf.mxu0 }
 0x3ae   :  { %2598 = vmatpush.bf16.msrb.mxu1 %v7232_v62  ;;  %2624 = vmatpush.bf16.msrb.mxu3 %v7233_v51  ;;  %v2225_v9 = vpop.f32.mrf.mxu1  ;;  %v251_v62 = vadd.f32 %v5832_v39, %v250_v13  ;;  %v267_v60 = vperm.slane %v255_v35, 1  ;;  %v268_v57 = vperm.slane %v255_v35, 2  ;;  %v269_v1 = vperm.slane %v255_v35, 3 }
 0x3af   :  { %v266_v45 = vperm.slane %v255_v35, 0 }
 0x3b0   :  { %v258_v63 = vperm.slane %v251_v62, 1  ;;  %v259_v59 = vperm.slane %v251_v62, 2  ;;  %v260_v36 = vperm.slane %v251_v62, 3  ;;  %v257_v16 = vperm.slane %v251_v62, 0 }
 0x3b2   :  { %v275_v34 = vsel %vm99_vm0, %v258_v63, %v267_v60  ;;  %v276_v13 = vsel %vm99_vm0, %v259_v59, %v268_v57  ;;  %v274_v30 = vsel %vm99_vm0, %v257_v16, %v266_v45  ;;  %v2226_v59 = vadd.f32 %v2225_v9, %v2212_v6 }
 0x3b3   :  { %v2292_v55 = vpop.f32.mrf.mxu2  ;;  %v282_v39 = vrot.slane %v275_v34, 6  ;;  %v283_v18 = vrot.slane %v276_v13, 4 }
 0x3b4   :  { %v2251_v50 = vpop.f32.mrf.mxu3  ;;  %v277_v55 = vsel %vm99_vm0, %v260_v36, %v269_v1 }
 0x3b5   :  { %v2252_v22 = vadd.f32 %v2251_v50, %v2238_v8  ;;  %v284_v48 = vrot.slane %v277_v55, 2  ;;  %v285_v62 = vsel %vm111_vm1, %v274_v30, %v282_v39 }
 0x3b6   :  { %v2227_v51 = vpop.f32.mrf.mxu1 }
 0x3b7   :  { %v286_v35 = vsel %vm113_vm2, %v283_v18, %v284_v48 }
 0x3b8   :  { %v287_v1 = vsel %vm115_vm3, %v285_v62, %v286_v35 }
 0x3b9   :  { %v2316_v38 = vpop.f32.mrf.mxu0 }
 0x3bc   :  { %v2253_v42 = vpop.f32.mrf.mxu3 }
 0x3bd   :  { %v2416_v42 = vrot.slane %v2252_v22, 6 }
 0x3be   :  { %v2277_v7 = vpop.f32.mrf.mxu1 }
 0x3bf   :  { %v2342_v26 = vpop.f32.mrf.mxu2  ;;  %v2278_v58 = vadd.f32 %v2277_v7, %v2264_v25  ;;  %v2419_v34 = vsel %vm111_vm1, %v2226_v59, %v2416_v42 }
 0x3c1   :  { %v2318_v51 = vpop.f32.mrf.mxu0  ;;  %v2417_v57 = vrot.slane %v2278_v58, 4 }
 0x3c4   :  { %v2303_v2 = vpop.f32.mrf.mxu3 }
 0x3c5   :  { %v2304_v46 = vadd.f32 %v2303_v2, %v2290_v49 }
 0x3c6   :  { %v2279_v60 = vpop.f32.mrf.mxu1 }
 0x3c7   :  { %v2344_v63 = vpop.f32.mrf.mxu2  ;;  %v2418_v36 = vrot.slane %v2304_v46, 2 }
 0x3c9   :  { %v2420_v8 = vsel %vm113_vm2, %v2417_v57, %v2418_v36 }
 0x3ca   :  { %v2421_v7 = vsel %vm115_vm3, %v2419_v34, %v2420_v8 }
 0x3cb   :  { %v2423_v45 = vadd.f32 %v2421_v7, %v287_v1 }
 0x3cc   :  { %v2305_v16 = vpop.f32.mrf.mxu3 }
 0x3cd   :  { %v4228_v50 = vmul.f32 -1.442695, %v2423_v45  ;;  %v2444_v35 = vrot.slane %v2423_v45, 6 }
 0x3ce   :  { %v2329_v30 = vpop.f32.mrf.mxu1 }
 0x3cf   :  { %4463 = vpow2.f32 %v4228_v50  ;;  %v2330_v48 = vadd.f32 %v2329_v30, %v2316_v38 }
 0x3d1   :  { %v2457_v2 = vadd.f32 %v2330_v48, %v5221_v12 }
 0x3d3   :  { %v4229_v18 = vmul.f32 -1.442695, %v2457_v2 }
 0x3d4   :  { %v2355_v6 = vpop.f32.mrf.mxu3 }
 0x3d5   :  { %v4464_v58 = vpop.eup %4463  ;;  %4465 = vpow2.f32 %v4229_v18  ;;  %v2356_v46 = vadd.f32 %v2355_v6, %v2342_v26 }
 0x3d6   :  { %v2427_v49 = vadd.f32 1.0, %v4464_v58  ;;  %v2331_v25 = vpop.f32.mrf.mxu1 }
 0x3d7   :  { %v2458_v9 = vadd.f32 %v2356_v46, %v5225_v56 }
 0x3d8   :  { %4467 = vrcp.f32 %v2427_v49  ;;  %v2439_v26 = vand.u32 2147483648, %v2427_v49  ;;  %v2437_v1 = vand.u32 2147483647, %v2427_v49  ;;  %vm2433_vm9 = vweird.f32 %v2427_v49 }
 0x3d9   :  { %v2368_v39 = vpop.f32.mrf.mxu0  ;;  %v4230_v13 = vmul.f32 -1.442695, %v2458_v9 }
 0x3da   :  { %v2440_v7 = vor.u32 1.1754944e-38, %v2439_v26  ;;  %vm2438_vm11 = vcmp.eq.f32.partialorder %v2437_v1, 8.507059e+37 }
 0x3db   :  { %v4466_v55 = vpop.eup %4465  ;;  %4469 = vpow2.f32 %v4230_v13 }
 0x3dc   :  { %v2357_v51 = vpop.f32.mrf.mxu3  ;;  %v5848_v22 = vadd.f32 1.0, %v4466_v55 }
 0x3de   :  { %v4468_v42 = vpop.eup %4467  ;;  %4471 = vrcp.f32 %v5848_v22  ;;  %vm2478_vm14 = vweird.f32 %v5848_v22 }
 0x3df   :  { %v2394_v38 = vpop.f32.mrf.mxu2  ;;  %v2429_v62 = vmul.f32 %v4468_v42, %v2427_v49  ;;  %vm2434_vm8 = vweird.f32 %v4468_v42  ;;  %4473 = vtanh.f32 %v2444_v35 }
 0x3e0   :  { %vm2435_vm10 = vmor %vm2433_vm9, %vm2434_vm8 }
 0x3e1   :  { %v2370_v60 = vpop.f32.mrf.mxu0  ;;  %v4470_v63 = vpop.eup %4469  ;;  %v2430_v59 = vsub.f32 1.0, %v2429_v62 }
 0x3e2   :  { %v5851_v57 = vadd.f32 1.0, %v4470_v63 }
 0x3e3   :  { %v2431_v36 = vmul.f32 %v4468_v42, %v2430_v59 }
 0x3e4   :  { %4475 = vrcp.f32 %v5851_v57  ;;  %v4472_v45 = vpop.eup %4471  ;;  %vm2493_vm15 = vweird.f32 %v5851_v57 }
 0x3e5   :  { %v2432_v34 = vadd.f32 %v4468_v42, %v2431_v36  ;;  %v4474_v30 = vpop.eup %4473  ;;  %v2474_v18 = vmul.f32 %v4472_v45, %v5848_v22  ;;  %vm2479_vm12 = vweird.f32 %v4472_v45 }
 0x3e6   :  { %vm5868_vm4 = vmor %vm2478_vm14, %vm2479_vm12 }
 0x3e7   :  { %v2396_v8 = vpop.f32.mrf.mxu2  ;;  %v2436_v16 = vsel %vm2435_vm10, %v4468_v42, %v2432_v34  ;;  %v2475_v13 = vsub.f32 1.0, %v2474_v18  ;;  %v7246_v18 = vld [vmem:[#allocation127_spill] sm:$0xff] }
 0x3e8   :  { %v2441_v50 = vsel %vm2438_vm11, %v2440_v7, %v2436_v16  ;;  %v2499_v8 = vand.u32 2147483648, %v5851_v57  ;;  %v2484_v7 = vand.u32 2147483648, %v5848_v22 }
 0x3e9   :  { %v2448_v48 = vrot.slane %v2441_v50, 2  ;;  %v2451_v58 = vmul.f32 %v4474_v30, %v2441_v50  ;;  %v2476_v60 = vmul.f32 %v4472_v45, %v2475_v13  ;;  %v2497_v30 = vand.u32 2147483647, %v5851_v57 }
 0x3ea   :  { %v4476_v2 = vpop.eup %4475 }
 0x3eb   :  { %v2450_v6 = vmul.f32 %v2448_v48, %v5650_v20  ;;  %v2489_v46 = vmul.f32 %v4476_v2, %v5851_v57  ;;  %v2454_v20 = vrot.slane %v2441_v50, 4  ;;  %vm2494_vm13 = vweird.f32 %v4476_v2 }
 0x3ec   :  { %v2482_v50 = vand.u32 2147483647, %v5848_v22  ;;  %vm5874_vm5 = vmor %vm2493_vm15, %vm2494_vm13  ;;  %v2500_v22 = vor.u32 1.1754944e-38, %v2499_v8  ;;  %vm2498_vm7 = vcmp.eq.f32.partialorder %v2497_v30, 8.507059e+37  ;;  %v7240_v8 = vld [vmem:[#allocation85_spill] sm:$0xff]  ;;  %v7244_v30 = vld [vmem:[#allocation87_spill] sm:$0xff] }
 0x3ed   :  { %v5857_v9 = vadd.f32 %v2451_v58, %v2450_v6  ;;  %v2490_v55 = vsub.f32 1.0, %v2489_v46 }
 0x3ee   :  { %v2381_v25 = vpop.f32.mrf.mxu1  ;;  %vm2483_vm6 = vcmp.eq.f32.partialorder %v2482_v50, 8.507059e+37  ;;  %v7243_v50 = vld [vmem:[#allocation126_spill] sm:$0xff] }
 0x3ef   :  { %v2382_v49 = vadd.f32 %v2381_v25, %v2368_v39  ;;  %4477 = vtanh.f32 %v5857_v9  ;;  %v2491_v62 = vmul.f32 %v4476_v2, %v2490_v55  ;;  %v2477_v39 = vadd.f32 %v4472_v45, %v2476_v60 }
 0x3f1   :  { %v2459_v51 = vadd.f32 %v2382_v49, %v5239_v40  ;;  %v2492_v34 = vadd.f32 %v4476_v2, %v2491_v62  ;;  %v2481_v58 = vsel %vm5868_vm4, %v4472_v45, %v2477_v39  ;;  %v2485_v49 = vor.u32 1.1754944e-38, %v2484_v7  ;;  %v7241_v7 = vld [vmem:[#allocation86_spill] sm:$0xff] }
 0x3f3   :  { %v4231_v42 = vmul.f32 -1.442695, %v2459_v51  ;;  %v2496_v46 = vsel %vm5874_vm5, %v4476_v2, %v2492_v34  ;;  %v2486_v13 = vsel %vm2483_vm6, %v2485_v49, %v2481_v58  ;;  %v7248_v58 = vld [vmem:[#allocation89_spill] sm:$0xff]  ;;  %v7252_v49 = vld [vmem:[#allocation92_spill] sm:$0xff] }
 0x3f4   :  { %v2407_v35 = vpop.f32.mrf.mxu3  ;;  %v2501_v45 = vsel %vm2498_vm7, %v2500_v22, %v2496_v46  ;;  %v7249_v46 = vld [vmem:[#allocation90_spill] sm:$0xff] }
 0x3f5   :  { %4479 = vpow2.f32 %v4231_v42  ;;  %v2408_v63 = vadd.f32 %v2407_v35, %v2394_v38  ;;  %v4478_v26 = vpop.eup %4477  ;;  %v2519_v2 = vmul.f32 %v2501_v45, %v5682_v47  ;;  %v7242_v38 = vld [vmem:[#allocation125_spill] sm:$0xff]  ;;  %v7251_v22 = vld [vmem:[#allocation130_spill] sm:$0xff]  ;;  %v7255_v45 = vld [vmem:[#allocation132_spill] sm:$0xff] }
 0x3f6   :  { %v2383_v59 = vpop.f32.mrf.mxu1  ;;  %v2456_v1 = vmul.f32 %v4478_v26, %v2454_v20 }
 0x3f7   :  { %v2460_v36 = vadd.f32 %v2408_v63, %v5248_v53 }
 0x3f8   :  { %v5865_v16 = vpack.c.bf16 %v2456_v1, %v2456_v1 }
 0x3f9   :  { %4481 = vtanh.f32 %v2460_v36 }
 0x3fa   :  { %2534 = vmatmul.bf16.vlgmr.msra.gmra.mxu0 %v5865_v16  ;;  %2560 = vmatmul.bf16.vlgmr.msra.gmra.mxu2 %v5865_v16 }
 0x3fb   :  { %v4480_v48 = vpop.eup %4479  ;;  %2630 = vmatpush.bf16.msra.mxu0 %v6923_v3  ;;  %2656 = vmatpush.bf16.msra.mxu2 %v6924_v44 }
 0x3fc   :  { %v2472_v6 = vadd.f32 1.0, %v4480_v48  ;;  %v2409_v25 = vpop.f32.mrf.mxu3  ;;  %v7245_v48 = vld [vmem:[#allocation88_spill] sm:$0xff] }
 0x3fd   :  { %v7250_v25 = vld [vmem:[#allocation129_spill] sm:$0xff] }
 0x3fe   :  { %4483 = vrcp.f32 %v2472_v6  ;;  %v2514_v60 = vand.u32 2147483648, %v2472_v6  ;;  %v2512_v20 = vand.u32 2147483647, %v2472_v6  ;;  %vm2508_vm9 = vweird.f32 %v2472_v6 }
 0x3ff   :  { %v4482_v57 = vpop.eup %4481  ;;  %2631 = vmatpush.bf16.msra.mxu0 %v6925_v28  ;;  %2657 = vmatpush.bf16.msra.mxu2 %v6926_v5 }
 0x400   :  { %v2520_v55 = vmul.f32 %v4482_v57, %v2486_v13  ;;  %v2515_v59 = vor.u32 1.1754944e-38, %v2514_v60  ;;  %vm2513_vm11 = vcmp.eq.f32.partialorder %v2512_v20, 8.507059e+37  ;;  %v7253_v57 = vld [vmem:[#allocation93_spill] sm:$0xff]  ;;  %v7254_v13 = vld [vmem:[#allocation131_spill] sm:$0xff]  ;;  %v7261_v60 = vld [vmem:[#allocation134_spill] sm:$0xff] }
 0x401   :  { %v7263_v20 = vld [vmem:[#allocation101_spill] sm:$0xff] }
 0x402   :  { %v5889_v42 = vadd.f32 %v2520_v55, %v2519_v2  ;;  %v7256_v55 = vld [vmem:[#allocation94_spill] sm:$0xff]  ;;  %v7257_v2 = vld [vmem:[#allocation95_spill] sm:$0xff] }
 0x403   :  { %2632 = vmatpush.bf16.msra.mxu0 %v6927_v52  ;;  %2658 = vmatpush.bf16.msra.mxu2 %v6928_v33 }
 0x404   :  { %v4484_v51 = vpop.eup %4483  ;;  %4485 = vtanh.f32 %v5889_v42 }
 0x405   :  { %v2504_v62 = vmul.f32 %v4484_v51, %v2472_v6  ;;  %vm2509_vm8 = vweird.f32 %v4484_v51  ;;  %v7247_v6 = vld [vmem:[#allocation128_spill] sm:$0xff] }
 0x406   :  { %vm2510_vm10 = vmor %vm2508_vm9, %vm2509_vm8 }
 0x407   :  { %v2505_v35 = vsub.f32 1.0, %v2504_v62  ;;  %2633 = vmatpush.bf16.msra.mxu0 %v6929_v61  ;;  %2659 = vmatpush.bf16.msra.mxu2 %v6930_v0  ;;  %v7259_v62 = vld [vmem:[#allocation97_spill] sm:$0xff] }
 0x409   :  { %v2506_v63 = vmul.f32 %v4484_v51, %v2505_v35  ;;  %v7260_v35 = vld [vmem:[#allocation133_spill] sm:$0xff] }
 0x40a   :  { %2586 = vmatmul.bf16.vlgmr.msrb.gmra.mxu0 %v5865_v16  ;;  %2612 = vmatmul.bf16.vlgmr.msrb.gmra.mxu2 %v5865_v16  ;;  %v4486_v36 = vpop.eup %4485 }
 0x40b   :  { %v2507_v47 = vadd.f32 %v4484_v51, %v2506_v63  ;;  %2634 = vmatpush.bf16.msra.mxu0 %v6931_v11  ;;  %2660 = vmatpush.bf16.msra.mxu2 %v6932_v4  ;;  %v7262_v63 = vld [vmem:[#allocation100_spill] sm:$0xff] }
 0x40d   :  { %v2511_v26 = vsel %vm2510_vm10, %v4484_v51, %v2507_v47  ;;  %v7258_v51 = vld [vmem:[#allocation96_spill] sm:$0xff]  ;;  %v7264_v47 = vld [vmem:[#allocation135_spill] sm:$0xff] }
 0x40e   :  { %v2516_v1 = vsel %vm2513_vm11, %v2515_v59, %v2511_v26  ;;  %v7265_v59 = vld [vmem:[#allocation136_spill] sm:$0xff]  ;;  %v7266_v26 = vld [vmem:[#allocation15_spill] sm:$0xff] }
 0x40f   :  { %v2523_v39 = vmul.f32 %v4486_v36, %v2516_v1  ;;  %2635 = vmatpush.bf16.msra.mxu0 %v6933_v29  ;;  %2661 = vmatpush.bf16.msra.mxu2 %v6934_v17  ;;  %v7267_v36 = vld [vmem:[#allocation16_spill] sm:$0xff] }
 0x410   :  { %v7268_v1 = vld [vmem:[#allocation104_spill] sm:$0xff] }
 0x411   :  { %v5900_v34 = vpack.c.bf16 %v2523_v39, %v2523_v39  ;;  %v7269_v39 = vld [vmem:[#allocation105_spill] sm:$0xff] }
 0x413   :  { %2547 = vmatmul.bf16.vlgmr.msra.gmra.mxu1 %v5900_v34  ;;  %2573 = vmatmul.bf16.vlgmr.msra.gmra.mxu3 %v5900_v34 }
 0x414   :  { %2643 = vmatpush.bf16.msra.mxu1 %v6935_v41  ;;  %2669 = vmatpush.bf16.msra.mxu3 %v6936_v19 }
 0x415   :  { %2636 = vmatpush.bf16.msra.mxu0 %v5060_v15  ;;  %2662 = vmatpush.bf16.msra.mxu2 %v5062_v54 }
 0x418   :  { %2644 = vmatpush.bf16.msra.mxu1 %v6937_v24  ;;  %2670 = vmatpush.bf16.msra.mxu3 %v6938_v10 }
 0x419   :  { %2637 = vmatpush.bf16.msra.mxu0 %v5072_v32  ;;  %2663 = vmatpush.bf16.msra.mxu2 %v5074_v21 }
 0x41c   :  { %2645 = vmatpush.bf16.msra.mxu1 %v6939_v14  ;;  %2671 = vmatpush.bf16.msra.mxu3 %v6940_v43 }
 0x41d   :  { %2682 = vmatpush.bf16.msrb.mxu0 %v5076_v37  ;;  %2708 = vmatpush.bf16.msrb.mxu2 %v5078_v27 }
 0x41e   :  { %2638 = vmatmul.bf16.vlgmr.msra.gmra.mxu0 %v5865_v16  ;;  %2664 = vmatmul.bf16.vlgmr.msra.gmra.mxu2 %v5865_v16 }
 0x420   :  { %2646 = vmatpush.bf16.msra.mxu1 %v7240_v8  ;;  %2672 = vmatpush.bf16.msra.mxu3 %v7241_v7 }
 0x421   :  { %2683 = vmatpush.bf16.msrb.mxu0 %v7024_v31  ;;  %2709 = vmatpush.bf16.msrb.mxu2 %v5090_v23 }
 0x423   :  { %2599 = vmatmul.bf16.vlgmr.msrb.gmra.mxu1 %v5900_v34  ;;  %2625 = vmatmul.bf16.vlgmr.msrb.gmra.mxu3 %v5900_v34 }
 0x424   :  { %2647 = vmatpush.bf16.msra.mxu1 %v7244_v30  ;;  %2673 = vmatpush.bf16.msra.mxu3 %v7245_v48 }
 0x425   :  { %2684 = vmatpush.bf16.msrb.mxu0 %v7242_v38  ;;  %2710 = vmatpush.bf16.msrb.mxu2 %v7243_v50 }
 0x428   :  { %2648 = vmatpush.bf16.msra.mxu1 %v7248_v58  ;;  %2674 = vmatpush.bf16.msra.mxu3 %v7249_v46 }
 0x429   :  { %2685 = vmatpush.bf16.msrb.mxu0 %v7246_v18  ;;  %2711 = vmatpush.bf16.msrb.mxu2 %v7247_v6 }
 0x42c   :  { %2649 = vmatpush.bf16.msra.mxu1 %v7252_v49  ;;  %2675 = vmatpush.bf16.msra.mxu3 %v7253_v57 }
 0x42d   :  { %2686 = vmatpush.bf16.msrb.mxu0 %v7250_v25  ;;  %2712 = vmatpush.bf16.msrb.mxu2 %v7251_v22 }
 0x430   :  { %2650 = vmatpush.bf16.msra.mxu1 %v7256_v55  ;;  %2676 = vmatpush.bf16.msra.mxu3 %v7257_v2 }
 0x431   :  { %2687 = vmatpush.bf16.msrb.mxu0 %v7254_v13  ;;  %2713 = vmatpush.bf16.msrb.mxu2 %v7255_v45  ;;  %v7342_v13 = vld [vmem:[#allocation91_spill] sm:$0xff] }
 0x433   :  { %2651 = vmatmul.bf16.vlgmr.msra.gmra.mxu1 %v5900_v34  ;;  %2677 = vmatmul.bf16.vlgmr.msra.gmra.mxu3 %v5900_v34 }
 0x434   :  { %2695 = vmatpush.bf16.msrb.mxu1 %v7258_v51  ;;  %2721 = vmatpush.bf16.msrb.mxu3 %v7259_v62  ;;  %v7340_v62 = vld [vmem:[#allocation75_spill] sm:$0xff]  ;;  %v292_v51 = vstv %s3697_s9 }
 0x435   :  { %2688 = vmatpush.bf16.msrb.mxu0 %v7260_v35  ;;  %2714 = vmatpush.bf16.msrb.mxu2 %v7261_v60  ;;  %v7270_v60 = vld [vmem:[#allocation19_spill] sm:$0xff]  ;;  %v7279_v35 = vld [vmem:[#allocation28_spill] sm:$0xff] }
 0x438   :  { %2696 = vmatpush.bf16.msrb.mxu1 %v7262_v63  ;;  %2722 = vmatpush.bf16.msrb.mxu3 %v7263_v20  ;;  %v7271_v63 = vld [vmem:[#allocation20_spill] sm:$0xff] }
 0x439   :  { %2689 = vmatpush.bf16.msrb.mxu0 %v7264_v47  ;;  %2715 = vmatpush.bf16.msrb.mxu2 %v7265_v59  ;;  %v7272_v20 = vld [vmem:[#allocation108_spill] sm:$0xff]  ;;  %v7273_v47 = vld [vmem:[#allocation109_spill] sm:$0xff]  ;;  %v7274_v59 = vld [vmem:[#allocation23_spill] sm:$0xff] }
 0x43c   :  { %2697 = vmatpush.bf16.msrb.mxu1 %v7268_v1  ;;  %2723 = vmatpush.bf16.msrb.mxu3 %v7269_v39  ;;  %v7277_v1 = vld [vmem:[#allocation113_spill] sm:$0xff]  ;;  %v7278_v39 = vld [vmem:[#allocation27_spill] sm:$0xff] }
 0x43d   :  { %2849 = vmatpush.bf16.msra.mxu0 %v7266_v26  ;;  %2875 = vmatpush.bf16.msra.mxu2 %v7267_v36  ;;  %v7275_v26 = vld [vmem:[#allocation24_spill] sm:$0xff] }
 0x43e   :  { %2690 = vmatmul.bf16.vlgmr.msrb.gmra.mxu0 %v5865_v16  ;;  %2716 = vmatmul.bf16.vlgmr.msrb.gmra.mxu2 %v5865_v16  ;;  %v7276_v36 = vld [vmem:[#allocation112_spill] sm:$0xff] }
 0x43f   :  { %v7280_v16 = vld [vmem:[#allocation116_spill] sm:$0xff] }
 0x440   :  { %2698 = vmatpush.bf16.msrb.mxu1 %v7272_v20  ;;  %2724 = vmatpush.bf16.msrb.mxu3 %v7273_v47  ;;  %v7283_v20 = vld [vmem:[#allocation32_spill] sm:$0xff] }
 0x441   :  { %2850 = vmatpush.bf16.msra.mxu0 %v7270_v60  ;;  %2876 = vmatpush.bf16.msra.mxu2 %v7271_v63  ;;  %v7281_v60 = vld [vmem:[#allocation117_spill] sm:$0xff]  ;;  %v7282_v63 = vld [vmem:[#allocation31_spill] sm:$0xff]  ;;  %v7284_v47 = vld [vmem:[#allocation120_spill] sm:$0xff] }
 0x444   :  { %2699 = vmatpush.bf16.msrb.mxu1 %v7276_v36  ;;  %2725 = vmatpush.bf16.msrb.mxu3 %v7277_v1  ;;  %v7287_v36 = vld [vmem:[#allocation36_spill] sm:$0xff]  ;;  %v7288_v1 = vld [vmem:[#allocation122_spill] sm:$0xff] }
 0x445   :  { %2851 = vmatpush.bf16.msra.mxu0 %v7274_v59  ;;  %2877 = vmatpush.bf16.msra.mxu2 %v7275_v26  ;;  %v7285_v59 = vld [vmem:[#allocation121_spill] sm:$0xff]  ;;  %v7286_v26 = vld [vmem:[#allocation35_spill] sm:$0xff] }
 0x448   :  { %2700 = vmatpush.bf16.msrb.mxu1 %v7280_v16  ;;  %2726 = vmatpush.bf16.msrb.mxu3 %v7281_v60  ;;  %v7291_v16 = vld [vmem:[#allocation14_spill] sm:$0xff]  ;;  %v7292_v60 = vld [vmem:[#allocation39_spill] sm:$0xff] }
 0x449   :  { %2852 = vmatpush.bf16.msra.mxu0 %v7278_v39  ;;  %2878 = vmatpush.bf16.msra.mxu2 %v7279_v35  ;;  %v7289_v39 = vld [vmem:[#allocation123_spill] sm:$0xff]  ;;  %v7290_v35 = vld [vmem:[#allocation13_spill] sm:$0xff] }
 0x44c   :  { %2701 = vmatpush.bf16.msrb.mxu1 %v7284_v47  ;;  %2727 = vmatpush.bf16.msrb.mxu3 %v7285_v59  ;;  %v7303_v59 = vld [vmem:[#allocation52_spill] sm:$0xff]  ;;  %v7336_v47 = vld [vmem:[#allocation65_spill] sm:$0xff] }
 0x44d   :  { %2853 = vmatpush.bf16.msra.mxu0 %v7282_v63  ;;  %2879 = vmatpush.bf16.msra.mxu2 %v7283_v20  ;;  %v7293_v63 = vld [vmem:[#allocation40_spill] sm:$0xff]  ;;  %v7294_v20 = vld [vmem:[#allocation17_spill] sm:$0xff] }
 0x450   :  { %2702 = vmatpush.bf16.msrb.mxu1 %v7288_v1  ;;  %2728 = vmatpush.bf16.msrb.mxu3 %v7289_v39  ;;  %v7297_v1 = vld [vmem:[#allocation46_spill] sm:$0xff]  ;;  %v7298_v39 = vld [vmem:[#allocation47_spill] sm:$0xff] }
 0x451   :  { %2854 = vmatpush.bf16.msra.mxu0 %v7286_v26  ;;  %2880 = vmatpush.bf16.msra.mxu2 %v7287_v36  ;;  %v7295_v26 = vld [vmem:[#allocation18_spill] sm:$0xff]  ;;  %v7296_v36 = vld [vmem:[#allocation45_spill] sm:$0xff] }
 0x453   :  { %2703 = vmatmul.bf16.vlgmr.msrb.gmra.mxu1 %v5900_v34  ;;  %2729 = vmatmul.bf16.vlgmr.msrb.gmra.mxu3 %v5900_v34  ;;  %v7304_v34 = vld [vmem:[#allocation25_spill] sm:$0xff] }
 0x454   :  { %2862 = vmatpush.bf16.msra.mxu1 %v7290_v35  ;;  %2888 = vmatpush.bf16.msra.mxu3 %v7291_v16  ;;  %v7299_v35 = vld [vmem:[#allocation48_spill] sm:$0xff]  ;;  %v7300_v16 = vld [vmem:[#allocation21_spill] sm:$0xff] }
 0x455   :  { %2855 = vmatpush.bf16.msra.mxu0 %v7292_v60  ;;  %2881 = vmatpush.bf16.msra.mxu2 %v7293_v63  ;;  %v7301_v60 = vld [vmem:[#allocation22_spill] sm:$0xff]  ;;  %v7302_v63 = vld [vmem:[#allocation51_spill] sm:$0xff] }
 0x458   :  { %2863 = vmatpush.bf16.msra.mxu1 %v7294_v20  ;;  %2889 = vmatpush.bf16.msra.mxu3 %v7295_v26  ;;  %v7305_v20 = vld [vmem:[#allocation26_spill] sm:$0xff]  ;;  %v7306_v26 = vld [vmem:[#allocation55_spill] sm:$0xff] }
 0x459   :  { %2856 = vmatpush.bf16.msra.mxu0 %v7296_v36  ;;  %2882 = vmatpush.bf16.msra.mxu2 %v7297_v1  ;;  %v7307_v36 = vld [vmem:[#allocation56_spill] sm:$0xff]  ;;  %v7308_v1 = vld [vmem:[#allocation29_spill] sm:$0xff] }
 0x45c   :  { %2864 = vmatpush.bf16.msra.mxu1 %v7300_v16  ;;  %2890 = vmatpush.bf16.msra.mxu3 %v7301_v60  ;;  %v7311_v16 = vld [vmem:[#allocation60_spill] sm:$0xff]  ;;  %v7312_v60 = vld [vmem:[#allocation33_spill] sm:$0xff] }
 0x45d   :  { %2901 = vmatpush.bf16.msrb.mxu0 %v7298_v39  ;;  %2927 = vmatpush.bf16.msrb.mxu2 %v7299_v35  ;;  %v7309_v39 = vld [vmem:[#allocation30_spill] sm:$0xff]  ;;  %v7310_v35 = vld [vmem:[#allocation59_spill] sm:$0xff] }
 0x460   :  { %2865 = vmatpush.bf16.msra.mxu1 %v7304_v34  ;;  %2891 = vmatpush.bf16.msra.mxu3 %v7305_v20  ;;  %v7315_v34 = vld [vmem:[#allocation64_spill] sm:$0xff]  ;;  %v7316_v20 = vld [vmem:[#allocation37_spill] sm:$0xff] }
 0x461   :  { %2902 = vmatpush.bf16.msrb.mxu0 %v7302_v63  ;;  %2928 = vmatpush.bf16.msrb.mxu2 %v7303_v59  ;;  %v7313_v63 = vld [vmem:[#allocation34_spill] sm:$0xff]  ;;  %v7314_v59 = vld [vmem:[#allocation63_spill] sm:$0xff] }
 0x464   :  { %2866 = vmatpush.bf16.msra.mxu1 %v7308_v1  ;;  %2892 = vmatpush.bf16.msra.mxu3 %v7309_v39  ;;  %v7319_v1 = vld [vmem:[#allocation69_spill] sm:$0xff] }
 0x465   :  { %2903 = vmatpush.bf16.msrb.mxu0 %v7306_v26  ;;  %2929 = vmatpush.bf16.msrb.mxu2 %v7307_v36  ;;  %v7317_v26 = vld [vmem:[#allocation38_spill] sm:$0xff]  ;;  %v7318_v36 = vld [vmem:[#allocation68_spill] sm:$0xff]  ;;  %v7320_v39 = vld [vmem:[#allocation41_spill] sm:$0xff] }
 0x468   :  { %2867 = vmatpush.bf16.msra.mxu1 %v7312_v60  ;;  %2893 = vmatpush.bf16.msra.mxu3 %v7313_v63  ;;  %v7323_v60 = vld [vmem:[#allocation44_spill] sm:$0xff]  ;;  %v7324_v63 = vld [vmem:[#allocation73_spill] sm:$0xff] }
 0x469   :  { %2904 = vmatpush.bf16.msrb.mxu0 %v7310_v35  ;;  %2930 = vmatpush.bf16.msrb.mxu2 %v7311_v16  ;;  %v7321_v35 = vld [vmem:[#allocation42_spill] sm:$0xff]  ;;  %v7322_v16 = vld [vmem:[#allocation43_spill] sm:$0xff] }
 0x46c   :  { %2868 = vmatpush.bf16.msra.mxu1 %v7316_v20  ;;  %2894 = vmatpush.bf16.msra.mxu3 %v7317_v26  ;;  %v7327_v20 = vld [vmem:[#allocation50_spill] sm:$0xff]  ;;  %v7328_v26 = vld [vmem:[#allocation79_spill] sm:$0xff] }
 0x46d   :  { %2905 = vmatpush.bf16.msrb.mxu0 %v7314_v59  ;;  %2931 = vmatpush.bf16.msrb.mxu2 %v7315_v34  ;;  %v7325_v59 = vld [vmem:[#allocation74_spill] sm:$0xff]  ;;  %v7326_v34 = vld [vmem:[#allocation49_spill] sm:$0xff] }
 0x470   :  { %2869 = vmatpush.bf16.msra.mxu1 %v7320_v39  ;;  %2895 = vmatpush.bf16.msra.mxu3 %v7321_v35  ;;  %v7331_v39 = vld [vmem:[#allocation54_spill] sm:$0xff]  ;;  %v7332_v35 = vld [vmem:[#allocation57_spill] sm:$0xff] }
 0x471   :  { %2906 = vmatpush.bf16.msrb.mxu0 %v7318_v36  ;;  %2932 = vmatpush.bf16.msrb.mxu2 %v7319_v1  ;;  %v7329_v36 = vld [vmem:[#allocation80_spill] sm:$0xff]  ;;  %v7330_v1 = vld [vmem:[#allocation53_spill] sm:$0xff] }
 0x474   :  { %2914 = vmatpush.bf16.msrb.mxu1 %v7322_v16  ;;  %2940 = vmatpush.bf16.msrb.mxu3 %v7323_v60  ;;  %v7333_v16 = vld [vmem:[#allocation58_spill] sm:$0xff] }
 0x475   :  { %2907 = vmatpush.bf16.msrb.mxu0 %v7324_v63  ;;  %2933 = vmatpush.bf16.msrb.mxu2 %v7325_v59  ;;  %v7334_v63 = vld [vmem:[#allocation61_spill] sm:$0xff]  ;;  %v7335_v59 = vld [vmem:[#allocation62_spill] sm:$0xff] }
 0x477   :  { %v2535_v60 = vpop.f32.mrf.mxu0 }
 0x478   :  { %2915 = vmatpush.bf16.msrb.mxu1 %v7326_v34  ;;  %2941 = vmatpush.bf16.msrb.mxu3 %v7327_v20  ;;  %v7337_v20 = vld [vmem:[#allocation66_spill] sm:$0xff] }
 0x479   :  { %2908 = vmatpush.bf16.msrb.mxu0 %v7328_v26  ;;  %2934 = vmatpush.bf16.msrb.mxu2 %v7329_v36  ;;  %v7338_v36 = vld [vmem:[#allocation71_spill] sm:$0xff] }
 0x47c   :  { %2916 = vmatpush.bf16.msrb.mxu1 %v7330_v1  ;;  %2942 = vmatpush.bf16.msrb.mxu3 %v7331_v39  ;;  %v7339_v1 = vld [vmem:[#allocation72_spill] sm:$0xff] }
 0x47d   :  { %v2561_v34 = vpop.f32.mrf.mxu2 }
 0x47f   :  { %v2537_v26 = vpop.f32.mrf.mxu0 }
 0x480   :  { %2917 = vmatpush.bf16.msrb.mxu1 %v7332_v35  ;;  %2943 = vmatpush.bf16.msrb.mxu3 %v7333_v16  ;;  %v7341_v35 = vld [vmem:[#allocation76_spill] sm:$0xff] }
 0x484   :  { %2918 = vmatpush.bf16.msrb.mxu1 %v7334_v63  ;;  %2944 = vmatpush.bf16.msrb.mxu3 %v7335_v59 }
 0x485   :  { %v2563_v39 = vpop.f32.mrf.mxu2 }
 0x487   :  { %v2587_v16 = vpop.f32.mrf.mxu0 }
 0x488   :  { %2919 = vmatpush.bf16.msrb.mxu1 %v7336_v47  ;;  %2945 = vmatpush.bf16.msrb.mxu3 %v7337_v20  ;;  %v296_v47 = vstv %s3698_s10  ;;  %v293_v20 = vmul.f32 %v7342_v13, %v292_v51 }
 0x489   :  { %v297_v26 = vmul.f32 %v7342_v13, %v296_v47 }
 0x48c   :  { %2920 = vmatpush.bf16.msrb.mxu1 %v7338_v36  ;;  %2946 = vmatpush.bf16.msrb.mxu3 %v7339_v1  ;;  %v7343_v1 = vld [vmem:[#allocation98_spill] sm:$0xff] }
 0x48d   :  { %v2613_v63 = vpop.f32.mrf.mxu2  ;;  %v294_v39 = vadd.f32 %v7343_v1, %v293_v20 }
 0x48f   :  { %v2589_v45 = vpop.f32.mrf.mxu0  ;;  %v301_v22 = vperm.slane %v294_v39, 1  ;;  %v302_v25 = vperm.slane %v294_v39, 2  ;;  %v303_v57 = vperm.slane %v294_v39, 3  ;;  %v300_v46 = vperm.slane %v294_v39, 0 }
 0x490   :  { %2921 = vmatpush.bf16.msrb.mxu1 %v7340_v62  ;;  %2947 = vmatpush.bf16.msrb.mxu3 %v7341_v35  ;;  %v2548_v59 = vpop.f32.mrf.mxu1  ;;  %v298_v62 = vadd.f32 %v7343_v1, %v297_v26 }
 0x492   :  { %v310_v49 = vperm.slane %v298_v62, 1  ;;  %v311_v6 = vperm.slane %v298_v62, 2  ;;  %v312_v18 = vperm.slane %v298_v62, 3  ;;  %v309_v50 = vperm.slane %v298_v62, 0 }
 0x494   :  { %v318_v13 = vsel %vm99_vm0, %v301_v22, %v310_v49  ;;  %v317_v48 = vsel %vm99_vm0, %v300_v46, %v309_v50 }
 0x495   :  { %v2615_v2 = vpop.f32.mrf.mxu2  ;;  %v325_v1 = vrot.slane %v318_v13, 6 }
 0x496   :  { %v2574_v36 = vpop.f32.mrf.mxu3  ;;  %v319_v2 = vsel %vm99_vm0, %v302_v25, %v311_v6  ;;  %v2549_v6 = vadd.f32 %v2548_v59, %v2535_v60 }
 0x497   :  { %v2575_v47 = vadd.f32 %v2574_v36, %v2561_v34  ;;  %v326_v26 = vrot.slane %v319_v2, 4  ;;  %v328_v39 = vsel %vm111_vm1, %v317_v48, %v325_v1 }
 0x498   :  { %v2550_v55 = vpop.f32.mrf.mxu1 }
 0x499   :  { %v320_v55 = vsel %vm99_vm0, %v303_v57, %v312_v18 }
 0x49a   :  { %v327_v38 = vrot.slane %v320_v55, 2 }
 0x49b   :  { %v2639_v35 = vpop.f32.mrf.mxu0 }
 0x49c   :  { %v329_v62 = vsel %vm113_vm2, %v326_v26, %v327_v38 }
 0x49d   :  { %v330_v57 = vsel %vm115_vm3, %v328_v39, %v329_v62 }
 0x49e   :  { %v2576_v45 = vpop.f32.mrf.mxu3 }
 0x49f   :  { %v2739_v45 = vrot.slane %v2575_v47, 6 }
 0x4a0   :  { %v2600_v58 = vpop.f32.mrf.mxu1 }
 0x4a1   :  { %v2665_v51 = vpop.f32.mrf.mxu2  ;;  %v2601_v30 = vadd.f32 %v2600_v58, %v2587_v16  ;;  %v2742_v36 = vsel %vm111_vm1, %v2549_v6, %v2739_v45 }
 0x4a3   :  { %v2641_v20 = vpop.f32.mrf.mxu0  ;;  %v2740_v25 = vrot.slane %v2601_v30, 4 }
 0x4a6   :  { %v2626_v7 = vpop.f32.mrf.mxu3 }
 0x4a7   :  { %v2627_v8 = vadd.f32 %v2626_v7, %v2613_v63 }
 0x4a8   :  { %v2602_v22 = vpop.f32.mrf.mxu1 }
 0x4a9   :  { %v2667_v49 = vpop.f32.mrf.mxu2  ;;  %v2741_v18 = vrot.slane %v2627_v8, 2 }
 0x4ab   :  { %v2743_v34 = vsel %vm113_vm2, %v2740_v25, %v2741_v18 }
 0x4ac   :  { %v2744_v50 = vsel %vm115_vm3, %v2742_v36, %v2743_v34 }
 0x4ad   :  { %v2746_v58 = vadd.f32 %v2744_v50, %v330_v57 }
 0x4ae   :  { %v2628_v46 = vpop.f32.mrf.mxu3 }
 0x4af   :  { %v4232_v16 = vmul.f32 -1.442695, %v2746_v58  ;;  %v2767_v22 = vrot.slane %v2746_v58, 6 }
 0x4b0   :  { %v2652_v48 = vpop.f32.mrf.mxu1 }
 0x4b1   :  { %4487 = vpow2.f32 %v4232_v16  ;;  %v2653_v38 = vadd.f32 %v2652_v48, %v2639_v35 }
 0x4b3   :  { %v2780_v7 = vadd.f32 %v2653_v38, %v5221_v12 }
 0x4b5   :  { %v4233_v63 = vmul.f32 -1.442695, %v2780_v7 }
 0x4b6   :  { %v2678_v60 = vpop.f32.mrf.mxu3 }
 0x4b7   :  { %v4488_v30 = vpop.eup %4487  ;;  %4489 = vpow2.f32 %v4233_v63  ;;  %v2679_v8 = vadd.f32 %v2678_v60, %v2665_v51 }
 0x4b8   :  { %v2750_v13 = vadd.f32 1.0, %v4488_v30  ;;  %v2654_v2 = vpop.f32.mrf.mxu1 }
 0x4b9   :  { %v2781_v55 = vadd.f32 %v2679_v8, %v5225_v56 }
 0x4ba   :  { %4491 = vrcp.f32 %v2750_v13  ;;  %v2762_v6 = vand.u32 2147483648, %v2750_v13  ;;  %v2760_v57 = vand.u32 2147483647, %v2750_v13  ;;  %vm2756_vm13 = vweird.f32 %v2750_v13 }
 0x4bb   :  { %v2691_v59 = vpop.f32.mrf.mxu0  ;;  %v4234_v20 = vmul.f32 -1.442695, %v2781_v55 }
 0x4bc   :  { %v2763_v46 = vor.u32 1.1754944e-38, %v2762_v6  ;;  %vm2761_vm15 = vcmp.eq.f32.partialorder %v2760_v57, 8.507059e+37 }
 0x4bd   :  { %v4490_v47 = vpop.eup %4489  ;;  %4493 = vpow2.f32 %v4234_v20 }
 0x4be   :  { %v6048_v26 = vadd.f32 1.0, %v4490_v47  ;;  %v2680_v35 = vpop.f32.mrf.mxu3 }
 0x4c0   :  { %v4492_v39 = vpop.eup %4491  ;;  %4495 = vrcp.f32 %v6048_v26  ;;  %vm2801_vm6 = vweird.f32 %v6048_v26 }
 0x4c1   :  { %v2717_v1 = vpop.f32.mrf.mxu2  ;;  %v2752_v62 = vmul.f32 %v4492_v39, %v2750_v13  ;;  %vm2757_vm12 = vweird.f32 %v4492_v39  ;;  %4497 = vtanh.f32 %v2767_v22 }
 0x4c2   :  { %vm2758_vm14 = vmor %vm2756_vm13, %vm2757_vm12 }
 0x4c3   :  { %v2693_v45 = vpop.f32.mrf.mxu0  ;;  %v4494_v51 = vpop.eup %4493  ;;  %v2753_v49 = vsub.f32 1.0, %v2752_v62 }
 0x4c4   :  { %v6051_v25 = vadd.f32 1.0, %v4494_v51 }
 0x4c5   :  { %v2754_v18 = vmul.f32 %v4492_v39, %v2753_v49 }
 0x4c6   :  { %4499 = vrcp.f32 %v6051_v25  ;;  %v4496_v50 = vpop.eup %4495  ;;  %vm2816_vm7 = vweird.f32 %v6051_v25 }
 0x4c7   :  { %v2755_v34 = vadd.f32 %v4492_v39, %v2754_v18  ;;  %v4498_v48 = vpop.eup %4497  ;;  %v2797_v7 = vmul.f32 %v4496_v50, %v6048_v26  ;;  %vm2802_vm4 = vweird.f32 %v4496_v50 }
 0x4c8   :  { %vm6066_vm8 = vmor %vm2801_vm6, %vm2802_vm4 }
 0x4c9   :  { %v2719_v36 = vpop.f32.mrf.mxu2  ;;  %v2759_v58 = vsel %vm2758_vm14, %v4492_v39, %v2755_v34  ;;  %v2798_v13 = vsub.f32 1.0, %v2797_v7  ;;  %v2822_v34 = vand.u32 2147483648, %v6051_v25  ;;  %v7354_v7 = vld [vmem:[#allocation89_spill] sm:$0xff] }
 0x4ca   :  { %v2764_v16 = vsel %vm2761_vm15, %v2763_v46, %v2759_v58  ;;  %v2807_v46 = vand.u32 2147483648, %v6048_v26  ;;  %v2805_v58 = vand.u32 2147483647, %v6048_v26 }
 0x4cb   :  { %v2771_v38 = vrot.slane %v2764_v16, 2  ;;  %v2774_v30 = vmul.f32 %v4498_v48, %v2764_v16  ;;  %v2799_v22 = vmul.f32 %v4496_v50, %v2798_v13  ;;  %v2777_v49 = vrot.slane %v2764_v16, 4 }
 0x4cc   :  { %v4500_v63 = vpop.eup %4499  ;;  %v2820_v16 = vand.u32 2147483647, %v6051_v25  ;;  %v2808_v13 = vor.u32 1.1754944e-38, %v2807_v46  ;;  %vm2806_vm10 = vcmp.eq.f32.partialorder %v2805_v58, 8.507059e+37  ;;  %v7349_v46 = vld [vmem:[#allocation86_spill] sm:$0xff]  ;;  %v7351_v58 = vld [vmem:[#allocation88_spill] sm:$0xff] }
 0x4cd   :  { %v2773_v60 = vmul.f32 %v2771_v38, %v5857_v9  ;;  %v2812_v8 = vmul.f32 %v4500_v63, %v6051_v25  ;;  %vm2817_vm5 = vweird.f32 %v4500_v63  ;;  %v2800_v18 = vadd.f32 %v4496_v50, %v2799_v22 }
 0x4ce   :  { %vm6074_vm9 = vmor %vm2816_vm7, %vm2817_vm5  ;;  %vm2821_vm11 = vcmp.eq.f32.partialorder %v2820_v16, 8.507059e+37  ;;  %v7352_v16 = vld [vmem:[#allocation125_spill] sm:$0xff] }
 0x4cf   :  { %v6057_v20 = vadd.f32 %v2774_v30, %v2773_v60  ;;  %v2813_v47 = vsub.f32 1.0, %v2812_v8  ;;  %v2804_v30 = vsel %vm6066_vm8, %v4496_v50, %v2800_v18 }
 0x4d0   :  { %v2704_v2 = vpop.f32.mrf.mxu1  ;;  %v2809_v25 = vsel %vm2806_vm10, %v2808_v13, %v2804_v30  ;;  %v7356_v30 = vld [vmem:[#allocation127_spill] sm:$0xff]  ;;  %v7360_v13 = vld [vmem:[#allocation129_spill] sm:$0xff] }
 0x4d1   :  { %v2705_v55 = vadd.f32 %v2704_v2, %v2691_v59  ;;  %4501 = vtanh.f32 %v6057_v20  ;;  %v2814_v39 = vmul.f32 %v4500_v63, %v2813_v47 }
 0x4d3   :  { %v2782_v35 = vadd.f32 %v2705_v55, %v5239_v40  ;;  %v2815_v57 = vadd.f32 %v4500_v63, %v2814_v39  ;;  %v2823_v55 = vor.u32 1.1754944e-38, %v2822_v34  ;;  %v7348_v34 = vld [vmem:[#allocation85_spill] sm:$0xff] }
 0x4d5   :  { %v4235_v45 = vmul.f32 -1.442695, %v2782_v35  ;;  %v2819_v8 = vsel %vm6074_vm9, %v4500_v63, %v2815_v57 }
 0x4d6   :  { %v2730_v62 = vpop.f32.mrf.mxu3  ;;  %v2824_v50 = vsel %vm2821_vm11, %v2823_v55, %v2819_v8  ;;  %v7357_v8 = vld [vmem:[#allocation128_spill] sm:$0xff]  ;;  %v7359_v55 = vld [vmem:[#allocation93_spill] sm:$0xff] }
 0x4d7   :  { %4503 = vpow2.f32 %v4235_v45  ;;  %v2731_v51 = vadd.f32 %v2730_v62, %v2717_v1  ;;  %v4502_v59 = vpop.eup %4501  ;;  %v2842_v63 = vmul.f32 %v2824_v50, %v5889_v42  ;;  %v7350_v1 = vld [vmem:[#allocation87_spill] sm:$0xff] }
 0x4d8   :  { %v2706_v9 = vpop.f32.mrf.mxu1  ;;  %v2779_v36 = vmul.f32 %v4502_v59, %v2777_v49  ;;  %v7363_v50 = vld [vmem:[#allocation95_spill] sm:$0xff] }
 0x4d9   :  { %v2783_v6 = vadd.f32 %v2731_v51, %v5248_v53 }
 0x4da   :  { %v6072_v38 = vpack.c.bf16 %v2779_v36, %v2779_v36 }
 0x4db   :  { %4505 = vtanh.f32 %v2783_v6 }
 0x4dc   :  { %2857 = vmatmul.bf16.vlgmr.msra.gmra.mxu0 %v6072_v38  ;;  %2883 = vmatmul.bf16.vlgmr.msra.gmra.mxu2 %v6072_v38 }
 0x4dd   :  { %v4504_v48 = vpop.eup %4503  ;;  %2953 = vmatpush.bf16.msra.mxu0 %v6923_v3  ;;  %2979 = vmatpush.bf16.msra.mxu2 %v6924_v44 }
 0x4de   :  { %v2795_v60 = vadd.f32 1.0, %v4504_v48  ;;  %v2732_v2 = vpop.f32.mrf.mxu3  ;;  %v7353_v48 = vld [vmem:[#allocation126_spill] sm:$0xff] }
 0x4df   :  { %v7358_v2 = vld [vmem:[#allocation92_spill] sm:$0xff] }
 0x4e0   :  { %4507 = vrcp.f32 %v2795_v60  ;;  %v2837_v22 = vand.u32 2147483648, %v2795_v60  ;;  %v2835_v9 = vand.u32 2147483647, %v2795_v60  ;;  %vm2831_vm13 = vweird.f32 %v2795_v60 }
 0x4e1   :  { %v4506_v26 = vpop.eup %4505  ;;  %2954 = vmatpush.bf16.msra.mxu0 %v6925_v28  ;;  %2980 = vmatpush.bf16.msra.mxu2 %v6926_v5 }
 0x4e2   :  { %v2843_v47 = vmul.f32 %v4506_v26, %v2809_v25  ;;  %v2838_v49 = vor.u32 1.1754944e-38, %v2837_v22  ;;  %vm2836_vm15 = vcmp.eq.f32.partialorder %v2835_v9, 8.507059e+37  ;;  %v7361_v26 = vld [vmem:[#allocation130_spill] sm:$0xff]  ;;  %v7371_v9 = vld [vmem:[#allocation101_spill] sm:$0xff] }
 0x4e3   :  { %v7362_v25 = vld [vmem:[#allocation94_spill] sm:$0xff] }
 0x4e4   :  { %v6089_v45 = vadd.f32 %v2843_v47, %v2842_v63  ;;  %v7364_v47 = vld [vmem:[#allocation131_spill] sm:$0xff]  ;;  %v7365_v63 = vld [vmem:[#allocation132_spill] sm:$0xff]  ;;  %v7369_v22 = vld [vmem:[#allocation134_spill] sm:$0xff] }
 0x4e5   :  { %2955 = vmatpush.bf16.msra.mxu0 %v6927_v52  ;;  %2981 = vmatpush.bf16.msra.mxu2 %v6928_v33 }
 0x4e6   :  { %v4508_v35 = vpop.eup %4507  ;;  %4509 = vtanh.f32 %v6089_v45 }
 0x4e7   :  { %v2827_v39 = vmul.f32 %v4508_v35, %v2795_v60  ;;  %vm2832_vm12 = vweird.f32 %v4508_v35  ;;  %v7355_v60 = vld [vmem:[#allocation90_spill] sm:$0xff] }
 0x4e8   :  { %vm2833_vm14 = vmor %vm2831_vm13, %vm2832_vm12 }
 0x4e9   :  { %v2828_v62 = vsub.f32 1.0, %v2827_v39  ;;  %2956 = vmatpush.bf16.msra.mxu0 %v6929_v61  ;;  %2982 = vmatpush.bf16.msra.mxu2 %v6930_v0  ;;  %v7367_v39 = vld [vmem:[#allocation97_spill] sm:$0xff] }
 0x4eb   :  { %v2829_v51 = vmul.f32 %v4508_v35, %v2828_v62  ;;  %v7368_v62 = vld [vmem:[#allocation133_spill] sm:$0xff] }
 0x4ec   :  { %2909 = vmatmul.bf16.vlgmr.msrb.gmra.mxu0 %v6072_v38  ;;  %2935 = vmatmul.bf16.vlgmr.msrb.gmra.mxu2 %v6072_v38  ;;  %v4510_v59 = vpop.eup %4509 }
 0x4ed   :  { %v2830_v42 = vadd.f32 %v4508_v35, %v2829_v51  ;;  %2957 = vmatpush.bf16.msra.mxu0 %v6931_v11  ;;  %2983 = vmatpush.bf16.msra.mxu2 %v6932_v4  ;;  %v7370_v51 = vld [vmem:[#allocation100_spill] sm:$0xff] }
 0x4ef   :  { %v2834_v6 = vsel %vm2833_vm14, %v4508_v35, %v2830_v42  ;;  %v7366_v35 = vld [vmem:[#allocation96_spill] sm:$0xff]  ;;  %v7372_v42 = vld [vmem:[#allocation135_spill] sm:$0xff] }
 0x4f0   :  { %v2839_v18 = vsel %vm2836_vm15, %v2838_v49, %v2834_v6  ;;  %v7373_v49 = vld [vmem:[#allocation136_spill] sm:$0xff] }
 0x4f1   :  { %v2846_v57 = vmul.f32 %v4510_v59, %v2839_v18  ;;  %2958 = vmatpush.bf16.msra.mxu0 %v6933_v29  ;;  %2984 = vmatpush.bf16.msra.mxu2 %v6934_v17  ;;  %v7374_v6 = vld [vmem:[#allocation104_spill] sm:$0xff]  ;;  %v7375_v59 = vld [vmem:[#allocation105_spill] sm:$0xff]  ;;  %v7376_v18 = vld [vmem:[#allocation15_spill] sm:$0xff] }
 0x4f3   :  { %v6100_v36 = vpack.c.bf16 %v2846_v57, %v2846_v57  ;;  %v7377_v57 = vld [vmem:[#allocation16_spill] sm:$0xff] }
 0x4f5   :  { %2870 = vmatmul.bf16.vlgmr.msra.gmra.mxu1 %v6100_v36  ;;  %2896 = vmatmul.bf16.vlgmr.msra.gmra.mxu3 %v6100_v36 }
 0x4f6   :  { %2966 = vmatpush.bf16.msra.mxu1 %v6935_v41  ;;  %2992 = vmatpush.bf16.msra.mxu3 %v6936_v19 }
 0x4f7   :  { %2959 = vmatpush.bf16.msra.mxu0 %v5060_v15  ;;  %2985 = vmatpush.bf16.msra.mxu2 %v5062_v54 }
 0x4fa   :  { %2967 = vmatpush.bf16.msra.mxu1 %v6937_v24  ;;  %2993 = vmatpush.bf16.msra.mxu3 %v6938_v10 }
 0x4fb   :  { %2960 = vmatpush.bf16.msra.mxu0 %v5072_v32  ;;  %2986 = vmatpush.bf16.msra.mxu2 %v5074_v21 }
 0x4fe   :  { %2968 = vmatpush.bf16.msra.mxu1 %v6939_v14  ;;  %2994 = vmatpush.bf16.msra.mxu3 %v6940_v43 }
 0x4ff   :  { %3005 = vmatpush.bf16.msrb.mxu0 %v5076_v37  ;;  %3031 = vmatpush.bf16.msrb.mxu2 %v5078_v27 }
 0x500   :  { %2961 = vmatmul.bf16.vlgmr.msra.gmra.mxu0 %v6072_v38  ;;  %2987 = vmatmul.bf16.vlgmr.msra.gmra.mxu2 %v6072_v38 }
 0x502   :  { %2969 = vmatpush.bf16.msra.mxu1 %v7348_v34  ;;  %2995 = vmatpush.bf16.msra.mxu3 %v7349_v46 }
 0x503   :  { %3006 = vmatpush.bf16.msrb.mxu0 %v7024_v31  ;;  %3032 = vmatpush.bf16.msrb.mxu2 %v5090_v23 }
 0x505   :  { %2922 = vmatmul.bf16.vlgmr.msrb.gmra.mxu1 %v6100_v36  ;;  %2948 = vmatmul.bf16.vlgmr.msrb.gmra.mxu3 %v6100_v36 }
 0x506   :  { %2970 = vmatpush.bf16.msra.mxu1 %v7350_v1  ;;  %2996 = vmatpush.bf16.msra.mxu3 %v7351_v58 }
 0x507   :  { %3007 = vmatpush.bf16.msrb.mxu0 %v7352_v16  ;;  %3033 = vmatpush.bf16.msrb.mxu2 %v7353_v48 }
 0x50a   :  { %2971 = vmatpush.bf16.msra.mxu1 %v7354_v7  ;;  %2997 = vmatpush.bf16.msra.mxu3 %v7355_v60 }
 0x50b   :  { %3008 = vmatpush.bf16.msrb.mxu0 %v7356_v30  ;;  %3034 = vmatpush.bf16.msrb.mxu2 %v7357_v8 }
 0x50e   :  { %2972 = vmatpush.bf16.msra.mxu1 %v7358_v2  ;;  %2998 = vmatpush.bf16.msra.mxu3 %v7359_v55 }
 0x50f   :  { %3009 = vmatpush.bf16.msrb.mxu0 %v7360_v13  ;;  %3035 = vmatpush.bf16.msrb.mxu2 %v7361_v26 }
 0x512   :  { %2973 = vmatpush.bf16.msra.mxu1 %v7362_v25  ;;  %2999 = vmatpush.bf16.msra.mxu3 %v7363_v50 }
 0x513   :  { %3010 = vmatpush.bf16.msrb.mxu0 %v7364_v47  ;;  %3036 = vmatpush.bf16.msrb.mxu2 %v7365_v63 }
 0x515   :  { %2974 = vmatmul.bf16.vlgmr.msra.gmra.mxu1 %v6100_v36  ;;  %3000 = vmatmul.bf16.vlgmr.msra.gmra.mxu3 %v6100_v36 }
 0x516   :  { %3018 = vmatpush.bf16.msrb.mxu1 %v7366_v35  ;;  %3044 = vmatpush.bf16.msrb.mxu3 %v7367_v39  ;;  %v7448_v39 = vld [vmem:[#allocation75_spill] sm:$0xff]  ;;  %v335_v35 = vstv %s3699_s11 }
 0x517   :  { %3011 = vmatpush.bf16.msrb.mxu0 %v7368_v62  ;;  %3037 = vmatpush.bf16.msrb.mxu2 %v7369_v22  ;;  %v7378_v22 = vld [vmem:[#allocation108_spill] sm:$0xff]  ;;  %v7387_v62 = vld [vmem:[#allocation117_spill] sm:$0xff] }
 0x51a   :  { %3019 = vmatpush.bf16.msrb.mxu1 %v7370_v51  ;;  %3045 = vmatpush.bf16.msrb.mxu3 %v7371_v9  ;;  %v7379_v51 = vld [vmem:[#allocation109_spill] sm:$0xff]  ;;  %v7380_v9 = vld [vmem:[#allocation19_spill] sm:$0xff] }
 0x51b   :  { %3012 = vmatpush.bf16.msrb.mxu0 %v7372_v42  ;;  %3038 = vmatpush.bf16.msrb.mxu2 %v7373_v49  ;;  %v7381_v42 = vld [vmem:[#allocation20_spill] sm:$0xff] }
 0x51c   :  { %v7382_v49 = vld [vmem:[#allocation112_spill] sm:$0xff] }
 0x51e   :  { %3020 = vmatpush.bf16.msrb.mxu1 %v7374_v6  ;;  %3046 = vmatpush.bf16.msrb.mxu3 %v7375_v59  ;;  %v7383_v6 = vld [vmem:[#allocation113_spill] sm:$0xff]  ;;  %v7384_v59 = vld [vmem:[#allocation23_spill] sm:$0xff] }
 0x51f   :  { %3172 = vmatpush.bf16.msra.mxu0 %v7376_v18  ;;  %3198 = vmatpush.bf16.msra.mxu2 %v7377_v57  ;;  %v7385_v18 = vld [vmem:[#allocation24_spill] sm:$0xff] }
 0x520   :  { %3013 = vmatmul.bf16.vlgmr.msrb.gmra.mxu0 %v6072_v38  ;;  %3039 = vmatmul.bf16.vlgmr.msrb.gmra.mxu2 %v6072_v38  ;;  %v7386_v57 = vld [vmem:[#allocation116_spill] sm:$0xff]  ;;  %v7388_v38 = vld [vmem:[#allocation27_spill] sm:$0xff] }
 0x522   :  { %3021 = vmatpush.bf16.msrb.mxu1 %v7378_v22  ;;  %3047 = vmatpush.bf16.msrb.mxu3 %v7379_v51  ;;  %v7389_v22 = vld [vmem:[#allocation28_spill] sm:$0xff] }
 0x523   :  { %3173 = vmatpush.bf16.msra.mxu0 %v7380_v9  ;;  %3199 = vmatpush.bf16.msra.mxu2 %v7381_v42  ;;  %v7390_v51 = vld [vmem:[#allocation120_spill] sm:$0xff]  ;;  %v7391_v9 = vld [vmem:[#allocation121_spill] sm:$0xff]  ;;  %v7392_v42 = vld [vmem:[#allocation31_spill] sm:$0xff] }
 0x526   :  { %3022 = vmatpush.bf16.msrb.mxu1 %v7382_v49  ;;  %3048 = vmatpush.bf16.msrb.mxu3 %v7383_v6  ;;  %v7393_v49 = vld [vmem:[#allocation32_spill] sm:$0xff]  ;;  %v7394_v6 = vld [vmem:[#allocation122_spill] sm:$0xff] }
 0x527   :  { %3174 = vmatpush.bf16.msra.mxu0 %v7384_v59  ;;  %3200 = vmatpush.bf16.msra.mxu2 %v7385_v18  ;;  %v7395_v59 = vld [vmem:[#allocation123_spill] sm:$0xff] }
 0x528   :  { %v7396_v18 = vld [vmem:[#allocation35_spill] sm:$0xff] }
 0x52a   :  { %3023 = vmatpush.bf16.msrb.mxu1 %v7386_v57  ;;  %3049 = vmatpush.bf16.msrb.mxu3 %v7387_v62  ;;  %v7397_v57 = vld [vmem:[#allocation36_spill] sm:$0xff]  ;;  %v7398_v62 = vld [vmem:[#allocation13_spill] sm:$0xff] }
 0x52b   :  { %3175 = vmatpush.bf16.msra.mxu0 %v7388_v38  ;;  %3201 = vmatpush.bf16.msra.mxu2 %v7389_v22  ;;  %v7399_v38 = vld [vmem:[#allocation14_spill] sm:$0xff]  ;;  %v7400_v22 = vld [vmem:[#allocation39_spill] sm:$0xff] }
 0x52e   :  { %3024 = vmatpush.bf16.msrb.mxu1 %v7390_v51  ;;  %3050 = vmatpush.bf16.msrb.mxu3 %v7391_v9  ;;  %v7409_v9 = vld [vmem:[#allocation48_spill] sm:$0xff] }
 0x52f   :  { %3176 = vmatpush.bf16.msra.mxu0 %v7392_v42  ;;  %3202 = vmatpush.bf16.msra.mxu2 %v7393_v49  ;;  %v7401_v42 = vld [vmem:[#allocation40_spill] sm:$0xff]  ;;  %v7402_v49 = vld [vmem:[#allocation17_spill] sm:$0xff] }
 0x532   :  { %3025 = vmatpush.bf16.msrb.mxu1 %v7394_v6  ;;  %3051 = vmatpush.bf16.msrb.mxu3 %v7395_v59  ;;  %v7403_v6 = vld [vmem:[#allocation18_spill] sm:$0xff]  ;;  %v7404_v59 = vld [vmem:[#allocation45_spill] sm:$0xff] }
 0x533   :  { %3177 = vmatpush.bf16.msra.mxu0 %v7396_v18  ;;  %3203 = vmatpush.bf16.msra.mxu2 %v7397_v57  ;;  %v7405_v18 = vld [vmem:[#allocation46_spill] sm:$0xff]  ;;  %v7406_v57 = vld [vmem:[#allocation21_spill] sm:$0xff] }
 0x535   :  { %3026 = vmatmul.bf16.vlgmr.msrb.gmra.mxu1 %v6100_v36  ;;  %3052 = vmatmul.bf16.vlgmr.msrb.gmra.mxu3 %v6100_v36  ;;  %v7410_v36 = vld [vmem:[#allocation25_spill] sm:$0xff] }
 0x536   :  { %3185 = vmatpush.bf16.msra.mxu1 %v7398_v62  ;;  %3211 = vmatpush.bf16.msra.mxu3 %v7399_v38  ;;  %v7407_v62 = vld [vmem:[#allocation22_spill] sm:$0xff]  ;;  %v7408_v38 = vld [vmem:[#allocation47_spill] sm:$0xff] }
 0x537   :  { %3178 = vmatpush.bf16.msra.mxu0 %v7400_v22  ;;  %3204 = vmatpush.bf16.msra.mxu2 %v7401_v42  ;;  %v7411_v22 = vld [vmem:[#allocation26_spill] sm:$0xff]  ;;  %v7412_v42 = vld [vmem:[#allocation51_spill] sm:$0xff] }
 0x53a   :  { %3186 = vmatpush.bf16.msra.mxu1 %v7402_v49  ;;  %3212 = vmatpush.bf16.msra.mxu3 %v7403_v6  ;;  %v7413_v49 = vld [vmem:[#allocation52_spill] sm:$0xff]  ;;  %v7414_v6 = vld [vmem:[#allocation29_spill] sm:$0xff] }
 0x53b   :  { %3179 = vmatpush.bf16.msra.mxu0 %v7404_v59  ;;  %3205 = vmatpush.bf16.msra.mxu2 %v7405_v18  ;;  %v7415_v59 = vld [vmem:[#allocation30_spill] sm:$0xff]  ;;  %v7416_v18 = vld [vmem:[#allocation55_spill] sm:$0xff] }
 0x53e   :  { %3187 = vmatpush.bf16.msra.mxu1 %v7406_v57  ;;  %3213 = vmatpush.bf16.msra.mxu3 %v7407_v62  ;;  %v7417_v57 = vld [vmem:[#allocation56_spill] sm:$0xff]  ;;  %v7418_v62 = vld [vmem:[#allocation33_spill] sm:$0xff] }
 0x53f   :  { %3224 = vmatpush.bf16.msrb.mxu0 %v7408_v38  ;;  %3250 = vmatpush.bf16.msrb.mxu2 %v7409_v9  ;;  %v7419_v38 = vld [vmem:[#allocation34_spill] sm:$0xff]  ;;  %v7420_v9 = vld [vmem:[#allocation59_spill] sm:$0xff] }
 0x542   :  { %3188 = vmatpush.bf16.msra.mxu1 %v7410_v36  ;;  %3214 = vmatpush.bf16.msra.mxu3 %v7411_v22  ;;  %v7421_v36 = vld [vmem:[#allocation60_spill] sm:$0xff]  ;;  %v7422_v22 = vld [vmem:[#allocation37_spill] sm:$0xff] }
 0x543   :  { %3225 = vmatpush.bf16.msrb.mxu0 %v7412_v42  ;;  %3251 = vmatpush.bf16.msrb.mxu2 %v7413_v49  ;;  %v7423_v42 = vld [vmem:[#allocation38_spill] sm:$0xff]  ;;  %v7424_v49 = vld [vmem:[#allocation63_spill] sm:$0xff] }
 0x546   :  { %3189 = vmatpush.bf16.msra.mxu1 %v7414_v6  ;;  %3215 = vmatpush.bf16.msra.mxu3 %v7415_v59  ;;  %v7425_v6 = vld [vmem:[#allocation64_spill] sm:$0xff]  ;;  %v7426_v59 = vld [vmem:[#allocation41_spill] sm:$0xff] }
 0x547   :  { %3226 = vmatpush.bf16.msrb.mxu0 %v7416_v18  ;;  %3252 = vmatpush.bf16.msrb.mxu2 %v7417_v57  ;;  %v7427_v18 = vld [vmem:[#allocation42_spill] sm:$0xff]  ;;  %v7428_v57 = vld [vmem:[#allocation68_spill] sm:$0xff] }
 0x54a   :  { %3190 = vmatpush.bf16.msra.mxu1 %v7418_v62  ;;  %3216 = vmatpush.bf16.msra.mxu3 %v7419_v38  ;;  %v7429_v62 = vld [vmem:[#allocation69_spill] sm:$0xff]  ;;  %v7430_v38 = vld [vmem:[#allocation43_spill] sm:$0xff] }
 0x54b   :  { %3227 = vmatpush.bf16.msrb.mxu0 %v7420_v9  ;;  %3253 = vmatpush.bf16.msrb.mxu2 %v7421_v36  ;;  %v7431_v9 = vld [vmem:[#allocation44_spill] sm:$0xff]  ;;  %v7432_v36 = vld [vmem:[#allocation73_spill] sm:$0xff] }
 0x54e   :  { %3191 = vmatpush.bf16.msra.mxu1 %v7422_v22  ;;  %3217 = vmatpush.bf16.msra.mxu3 %v7423_v42  ;;  %v7433_v22 = vld [vmem:[#allocation74_spill] sm:$0xff]  ;;  %v7434_v42 = vld [vmem:[#allocation49_spill] sm:$0xff] }
 0x54f   :  { %3228 = vmatpush.bf16.msrb.mxu0 %v7424_v49  ;;  %3254 = vmatpush.bf16.msrb.mxu2 %v7425_v6  ;;  %v7435_v49 = vld [vmem:[#allocation50_spill] sm:$0xff]  ;;  %v7436_v6 = vld [vmem:[#allocation79_spill] sm:$0xff] }
 0x552   :  { %3192 = vmatpush.bf16.msra.mxu1 %v7426_v59  ;;  %3218 = vmatpush.bf16.msra.mxu3 %v7427_v18  ;;  %v7437_v59 = vld [vmem:[#allocation80_spill] sm:$0xff]  ;;  %v7438_v18 = vld [vmem:[#allocation53_spill] sm:$0xff] }
 0x553   :  { %3229 = vmatpush.bf16.msrb.mxu0 %v7428_v57  ;;  %3255 = vmatpush.bf16.msrb.mxu2 %v7429_v62  ;;  %v7439_v57 = vld [vmem:[#allocation54_spill] sm:$0xff] }
 0x556   :  { %3237 = vmatpush.bf16.msrb.mxu1 %v7430_v38  ;;  %3263 = vmatpush.bf16.msrb.mxu3 %v7431_v9  ;;  %v7440_v38 = vld [vmem:[#allocation57_spill] sm:$0xff]  ;;  %v7441_v9 = vld [vmem:[#allocation58_spill] sm:$0xff] }
 0x557   :  { %3230 = vmatpush.bf16.msrb.mxu0 %v7432_v36  ;;  %3256 = vmatpush.bf16.msrb.mxu2 %v7433_v22  ;;  %v7442_v36 = vld [vmem:[#allocation61_spill] sm:$0xff]  ;;  %v7443_v22 = vld [vmem:[#allocation62_spill] sm:$0xff] }
 0x559   :  { %v2858_v62 = vpop.f32.mrf.mxu0 }
 0x55a   :  { %3238 = vmatpush.bf16.msrb.mxu1 %v7434_v42  ;;  %3264 = vmatpush.bf16.msrb.mxu3 %v7435_v49  ;;  %v7444_v49 = vld [vmem:[#allocation65_spill] sm:$0xff] }
 0x55b   :  { %3231 = vmatpush.bf16.msrb.mxu0 %v7436_v6  ;;  %3257 = vmatpush.bf16.msrb.mxu2 %v7437_v59  ;;  %v7445_v6 = vld [vmem:[#allocation66_spill] sm:$0xff]  ;;  %v7446_v59 = vld [vmem:[#allocation71_spill] sm:$0xff] }
 0x55e   :  { %3239 = vmatpush.bf16.msrb.mxu1 %v7438_v18  ;;  %3265 = vmatpush.bf16.msrb.mxu3 %v7439_v57  ;;  %v7447_v18 = vld [vmem:[#allocation72_spill] sm:$0xff] }
 0x55f   :  { %v2884_v42 = vpop.f32.mrf.mxu2 }
 0x561   :  { %v2860_v51 = vpop.f32.mrf.mxu0 }
 0x562   :  { %3240 = vmatpush.bf16.msrb.mxu1 %v7440_v38  ;;  %3266 = vmatpush.bf16.msrb.mxu3 %v7441_v9  ;;  %v7449_v9 = vld [vmem:[#allocation76_spill] sm:$0xff]  ;;  %v339_v51 = vstv %s3700_s12 }
 0x566   :  { %3241 = vmatpush.bf16.msrb.mxu1 %v7442_v36  ;;  %3267 = vmatpush.bf16.msrb.mxu3 %v7443_v22 }
 0x567   :  { %v2886_v57 = vpop.f32.mrf.mxu2 }
 0x568   :  { %v6239_v57 = vld [vmem:[%s6502_s2] sm:$0xf]  ;;  %s3701_s2 = sld [smem:[#allocation4 + $0x7]] }
 0x569   :  { %v2910_v38 = vpop.f32.mrf.mxu0  ;;  %7451 = vst [vmem:[#allocation102_spill] sm:$0xff] %v6239_v57 }
 0x56a   :  { %3242 = vmatpush.bf16.msrb.mxu1 %v7444_v49  ;;  %3268 = vmatpush.bf16.msrb.mxu3 %v7445_v6  ;;  %v6232_v49 = vld [vmem:[#allocation7] sm:$0xf] }
 0x56b   :  { %7450 = vst [vmem:[#allocation99_spill] sm:$0xff] %v6232_v49  ;;  %v336_v6 = vmul.f32 %v6232_v49, %v335_v35 }
 0x56e   :  { %3243 = vmatpush.bf16.msrb.mxu1 %v7446_v59  ;;  %3269 = vmatpush.bf16.msrb.mxu3 %v7447_v18  ;;  %v340_v59 = vmul.f32 %v6232_v49, %v339_v51 }
 0x56f   :  { %v2936_v22 = vpop.f32.mrf.mxu2 }
 0x570   :  { %v341_v63 = vadd.f32 %v6239_v57, %v340_v59 }
 0x571   :  { %v2912_v50 = vpop.f32.mrf.mxu0 }
 0x572   :  { %3244 = vmatpush.bf16.msrb.mxu1 %v7448_v39  ;;  %3270 = vmatpush.bf16.msrb.mxu3 %v7449_v9  ;;  %v2871_v36 = vpop.f32.mrf.mxu1  ;;  %v337_v39 = vadd.f32 %v6239_v57, %v336_v6  ;;  %v353_v26 = vperm.slane %v341_v63, 1  ;;  %v354_v35 = vperm.slane %v341_v63, 2  ;;  %v355_v13 = vperm.slane %v341_v63, 3 }
 0x573   :  { %v352_v8 = vperm.slane %v341_v63, 0 }
 0x574   :  { %v344_v50 = vperm.slane %v337_v39, 1  ;;  %v345_v55 = vperm.slane %v337_v39, 2  ;;  %v346_v2 = vperm.slane %v337_v39, 3  ;;  %v343_v49 = vperm.slane %v337_v39, 0 }
 0x576   :  { %v361_v30 = vsel %vm99_vm0, %v344_v50, %v353_v26  ;;  %v362_v6 = vsel %vm99_vm0, %v345_v55, %v354_v35  ;;  %v360_v48 = vsel %vm99_vm0, %v343_v49, %v352_v8  ;;  %v2872_v55 = vadd.f32 %v2871_v36, %v2858_v62 }
 0x577   :  { %v2938_v25 = vpop.f32.mrf.mxu2  ;;  %v368_v57 = vrot.slane %v361_v30, 6  ;;  %v369_v58 = vrot.slane %v362_v6, 4 }
 0x578   :  { %v2897_v18 = vpop.f32.mrf.mxu3  ;;  %v363_v25 = vsel %vm99_vm0, %v346_v2, %v355_v13 }
 0x579   :  { %v2898_v59 = vadd.f32 %v2897_v18, %v2884_v42  ;;  %v370_v1 = vrot.slane %v363_v25, 2  ;;  %v371_v39 = vsel %vm111_vm1, %v360_v48, %v368_v57 }
 0x57a   :  { %v2873_v9 = vpop.f32.mrf.mxu1 }
 0x57b   :  { %v372_v63 = vsel %vm113_vm2, %v369_v58, %v370_v1 }
 0x57c   :  { %v373_v13 = vsel %vm115_vm3, %v371_v39, %v372_v63 }
 0x57d   :  { %v2962_v47 = vpop.f32.mrf.mxu0 }
 0x580   :  { %v2899_v51 = vpop.f32.mrf.mxu3 }
 0x581   :  { %v3062_v51 = vrot.slane %v2898_v59, 6 }
 0x582   :  { %v2923_v60 = vpop.f32.mrf.mxu1 }
 0x583   :  { %v2988_v7 = vpop.f32.mrf.mxu2  ;;  %v2924_v16 = vadd.f32 %v2923_v60, %v2910_v38  ;;  %v3065_v30 = vsel %vm111_vm1, %v2872_v55, %v3062_v51 }
 0x585   :  { %v2964_v9 = vpop.f32.mrf.mxu0  ;;  %v3063_v35 = vrot.slane %v2924_v16, 4 }
 0x588   :  { %v2949_v46 = vpop.f32.mrf.mxu3 }
 0x589   :  { %v2950_v34 = vadd.f32 %v2949_v46, %v2936_v22 }
 0x58a   :  { %v2925_v26 = vpop.f32.mrf.mxu1 }
 0x58b   :  { %v2990_v50 = vpop.f32.mrf.mxu2  ;;  %v3064_v2 = vrot.slane %v2950_v34, 2 }
 0x58d   :  { %v3066_v42 = vsel %vm113_vm2, %v3063_v35, %v3064_v2 }
 0x58e   :  { %v3067_v60 = vsel %vm115_vm3, %v3065_v30, %v3066_v42 }
 0x58f   :  { %v3069_v8 = vadd.f32 %v3067_v60, %v373_v13 }
 0x590   :  { %v2951_v38 = vpop.f32.mrf.mxu3 }
 0x591   :  { %v4236_v49 = vmul.f32 -1.442695, %v3069_v8  ;;  %v3090_v63 = vrot.slane %v3069_v8, 6 }
 0x592   :  { %v2975_v48 = vpop.f32.mrf.mxu1 }
 0x593   :  { %4511 = vpow2.f32 %v4236_v49  ;;  %v2976_v1 = vadd.f32 %v2975_v48, %v2962_v47 }
 0x595   :  { %v3103_v46 = vadd.f32 %v2976_v1, %v5221_v12 }
 0x597   :  { %v4237_v58 = vmul.f32 -1.442695, %v3103_v46 }
 0x598   :  { %v3001_v62 = vpop.f32.mrf.mxu3 }
 0x599   :  { %v4512_v16 = vpop.eup %4511  ;;  %4513 = vpow2.f32 %v4237_v58  ;;  %v3002_v34 = vadd.f32 %v3001_v62, %v2988_v7 }
 0x59a   :  { %v3073_v36 = vadd.f32 1.0, %v4512_v16  ;;  %v2977_v22 = vpop.f32.mrf.mxu1 }
 0x59b   :  { %v3104_v18 = vadd.f32 %v3002_v34, %v5225_v56 }
 0x59c   :  { %4515 = vrcp.f32 %v3073_v36  ;;  %v3085_v7 = vand.u32 2147483648, %v3073_v36  ;;  %v3083_v13 = vand.u32 2147483647, %v3073_v36  ;;  %vm3079_vm5 = vweird.f32 %v3073_v36 }
 0x59d   :  { %v3014_v57 = vpop.f32.mrf.mxu0  ;;  %v4238_v6 = vmul.f32 -1.442695, %v3104_v18 }
 0x59e   :  { %v3086_v60 = vor.u32 1.1754944e-38, %v3085_v7  ;;  %vm3084_vm7 = vcmp.eq.f32.partialorder %v3083_v13, 8.507059e+37 }
 0x59f   :  { %v4514_v25 = vpop.eup %4513  ;;  %4517 = vpow2.f32 %v4238_v6 }
 0x5a0   :  { %v3003_v9 = vpop.f32.mrf.mxu3  ;;  %v6255_v59 = vadd.f32 1.0, %v4514_v25 }
 0x5a2   :  { %v4516_v51 = vpop.eup %4515  ;;  %4519 = vrcp.f32 %v6255_v59  ;;  %vm3124_vm10 = vweird.f32 %v6255_v59 }
 0x5a3   :  { %v3040_v47 = vpop.f32.mrf.mxu2  ;;  %v3075_v39 = vmul.f32 %v4516_v51, %v3073_v36  ;;  %vm3080_vm4 = vweird.f32 %v4516_v51  ;;  %4521 = vtanh.f32 %v3090_v63 }
 0x5a4   :  { %vm3081_vm6 = vmor %vm3079_vm5, %vm3080_vm4 }
 0x5a5   :  { %v3016_v26 = vpop.f32.mrf.mxu0  ;;  %v4518_v50 = vpop.eup %4517  ;;  %v3076_v55 = vsub.f32 1.0, %v3075_v39 }
 0x5a6   :  { %v6258_v35 = vadd.f32 1.0, %v4518_v50 }
 0x5a7   :  { %v3077_v2 = vmul.f32 %v4516_v51, %v3076_v55 }
 0x5a8   :  { %4523 = vrcp.f32 %v6258_v35  ;;  %v4520_v8 = vpop.eup %4519  ;;  %vm3139_vm11 = vweird.f32 %v6258_v35 }
 0x5a9   :  { %v3078_v30 = vadd.f32 %v4516_v51, %v3077_v2  ;;  %v4522_v48 = vpop.eup %4521  ;;  %v3120_v58 = vmul.f32 %v4520_v8, %v6255_v59  ;;  %vm3125_vm8 = vweird.f32 %v4520_v8 }
 0x5aa   :  { %vm6275_vm12 = vmor %vm3124_vm10, %vm3125_vm8 }
 0x5ab   :  { %v3042_v42 = vpop.f32.mrf.mxu2  ;;  %v3082_v38 = vsel %vm3081_vm6, %v4516_v51, %v3078_v30  ;;  %v3121_v6 = vsub.f32 1.0, %v3120_v58  ;;  %v7462_v58 = vld [vmem:[#allocation127_spill] sm:$0xff] }
 0x5ac   :  { %v3087_v49 = vsel %vm3084_vm7, %v3086_v60, %v3082_v38  ;;  %v3145_v42 = vand.u32 2147483648, %v6258_v35  ;;  %v3130_v60 = vand.u32 2147483648, %v6255_v59 }
 0x5ad   :  { %v3094_v1 = vrot.slane %v3087_v49, 2  ;;  %v3097_v16 = vmul.f32 %v4522_v48, %v3087_v49  ;;  %v3122_v26 = vmul.f32 %v4520_v8, %v3121_v6  ;;  %v3143_v48 = vand.u32 2147483647, %v6258_v35 }
 0x5ae   :  { %v4524_v46 = vpop.eup %4523 }
 0x5af   :  { %v3096_v62 = vmul.f32 %v3094_v1, %v6057_v20  ;;  %v3135_v34 = vmul.f32 %v4524_v46, %v6258_v35  ;;  %v3100_v20 = vrot.slane %v3087_v49, 4  ;;  %vm3140_vm9 = vweird.f32 %v4524_v46 }
 0x5b0   :  { %v3128_v49 = vand.u32 2147483647, %v6255_v59  ;;  %vm6281_vm13 = vmor %vm3139_vm11, %vm3140_vm9  ;;  %v3146_v59 = vor.u32 1.1754944e-38, %v3145_v42  ;;  %vm3144_vm15 = vcmp.eq.f32.partialorder %v3143_v48, 8.507059e+37  ;;  %v7456_v42 = vld [vmem:[#allocation85_spill] sm:$0xff]  ;;  %v7460_v48 = vld [vmem:[#allocation87_spill] sm:$0xff] }
 0x5b1   :  { %v6264_v18 = vadd.f32 %v3097_v16, %v3096_v62  ;;  %v3136_v25 = vsub.f32 1.0, %v3135_v34 }
 0x5b2   :  { %v3027_v22 = vpop.f32.mrf.mxu1  ;;  %vm3129_vm14 = vcmp.eq.f32.partialorder %v3128_v49, 8.507059e+37  ;;  %v7459_v49 = vld [vmem:[#allocation126_spill] sm:$0xff] }
 0x5b3   :  { %v3028_v36 = vadd.f32 %v3027_v22, %v3014_v57  ;;  %4525 = vtanh.f32 %v6264_v18  ;;  %v3137_v39 = vmul.f32 %v4524_v46, %v3136_v25  ;;  %v3123_v57 = vadd.f32 %v4520_v8, %v3122_v26 }
 0x5b5   :  { %v3105_v9 = vadd.f32 %v3028_v36, %v5239_v40  ;;  %v3138_v30 = vadd.f32 %v4524_v46, %v3137_v39  ;;  %v3127_v16 = vsel %vm6275_vm12, %v4520_v8, %v3123_v57  ;;  %v3131_v36 = vor.u32 1.1754944e-38, %v3130_v60  ;;  %v7457_v60 = vld [vmem:[#allocation86_spill] sm:$0xff] }
 0x5b7   :  { %v4239_v51 = vmul.f32 -1.442695, %v3105_v9  ;;  %v3142_v34 = vsel %vm6281_vm13, %v4524_v46, %v3138_v30  ;;  %v3132_v6 = vsel %vm3129_vm14, %v3131_v36, %v3127_v16  ;;  %v7464_v16 = vld [vmem:[#allocation89_spill] sm:$0xff]  ;;  %v7468_v36 = vld [vmem:[#allocation92_spill] sm:$0xff] }
 0x5b8   :  { %v3053_v63 = vpop.f32.mrf.mxu3  ;;  %v3147_v8 = vsel %vm3144_vm15, %v3146_v59, %v3142_v34  ;;  %v7465_v34 = vld [vmem:[#allocation90_spill] sm:$0xff] }
 0x5b9   :  { %4527 = vpow2.f32 %v4239_v51  ;;  %v3054_v50 = vadd.f32 %v3053_v63, %v3040_v47  ;;  %v4526_v7 = vpop.eup %4525  ;;  %v3165_v46 = vmul.f32 %v3147_v8, %v6089_v45  ;;  %v7458_v47 = vld [vmem:[#allocation125_spill] sm:$0xff]  ;;  %v7467_v59 = vld [vmem:[#allocation130_spill] sm:$0xff]  ;;  %v7471_v8 = vld [vmem:[#allocation132_spill] sm:$0xff] }
 0x5ba   :  { %v3029_v55 = vpop.f32.mrf.mxu1  ;;  %v3102_v13 = vmul.f32 %v4526_v7, %v3100_v20 }
 0x5bb   :  { %v3106_v2 = vadd.f32 %v3054_v50, %v5248_v53 }
 0x5bc   :  { %v6272_v38 = vpack.c.bf16 %v3102_v13, %v3102_v13 }
 0x5bd   :  { %4529 = vtanh.f32 %v3106_v2 }
 0x5be   :  { %3180 = vmatmul.bf16.vlgmr.msra.gmra.mxu0 %v6272_v38  ;;  %3206 = vmatmul.bf16.vlgmr.msra.gmra.mxu2 %v6272_v38 }
 0x5bf   :  { %v4528_v1 = vpop.eup %4527  ;;  %3276 = vmatpush.bf16.msra.mxu0 %v6923_v3  ;;  %3302 = vmatpush.bf16.msra.mxu2 %v6924_v44 }
 0x5c0   :  { %v3118_v62 = vadd.f32 1.0, %v4528_v1  ;;  %v3055_v22 = vpop.f32.mrf.mxu3  ;;  %v7461_v1 = vld [vmem:[#allocation88_spill] sm:$0xff] }
 0x5c1   :  { %v7466_v22 = vld [vmem:[#allocation129_spill] sm:$0xff] }
 0x5c2   :  { %4531 = vrcp.f32 %v3118_v62  ;;  %v3160_v26 = vand.u32 2147483648, %v3118_v62  ;;  %v3158_v20 = vand.u32 2147483647, %v3118_v62  ;;  %vm3154_vm5 = vweird.f32 %v3118_v62 }
 0x5c3   :  { %v4530_v35 = vpop.eup %4529  ;;  %3277 = vmatpush.bf16.msra.mxu0 %v6925_v28  ;;  %3303 = vmatpush.bf16.msra.mxu2 %v6926_v5 }
 0x5c4   :  { %v3166_v25 = vmul.f32 %v4530_v35, %v3132_v6  ;;  %v3161_v55 = vor.u32 1.1754944e-38, %v3160_v26  ;;  %vm3159_vm7 = vcmp.eq.f32.partialorder %v3158_v20, 8.507059e+37  ;;  %v7469_v35 = vld [vmem:[#allocation93_spill] sm:$0xff]  ;;  %v7470_v6 = vld [vmem:[#allocation131_spill] sm:$0xff]  ;;  %v7477_v26 = vld [vmem:[#allocation134_spill] sm:$0xff] }
 0x5c5   :  { %v7479_v20 = vld [vmem:[#allocation101_spill] sm:$0xff] }
 0x5c6   :  { %v6296_v51 = vadd.f32 %v3166_v25, %v3165_v46  ;;  %v7472_v25 = vld [vmem:[#allocation94_spill] sm:$0xff]  ;;  %v7473_v46 = vld [vmem:[#allocation95_spill] sm:$0xff] }
 0x5c7   :  { %3278 = vmatpush.bf16.msra.mxu0 %v6927_v52  ;;  %3304 = vmatpush.bf16.msra.mxu2 %v6928_v33 }
 0x5c8   :  { %v4532_v9 = vpop.eup %4531  ;;  %4533 = vtanh.f32 %v6296_v51 }
 0x5c9   :  { %v3150_v39 = vmul.f32 %v4532_v9, %v3118_v62  ;;  %vm3155_vm4 = vweird.f32 %v4532_v9  ;;  %v7463_v62 = vld [vmem:[#allocation128_spill] sm:$0xff] }
 0x5ca   :  { %vm3156_vm6 = vmor %vm3154_vm5, %vm3155_vm4 }
 0x5cb   :  { %v3151_v63 = vsub.f32 1.0, %v3150_v39  ;;  %3279 = vmatpush.bf16.msra.mxu0 %v6929_v61  ;;  %3305 = vmatpush.bf16.msra.mxu2 %v6930_v0  ;;  %v7475_v39 = vld [vmem:[#allocation97_spill] sm:$0xff] }
 0x5cd   :  { %v3152_v50 = vmul.f32 %v4532_v9, %v3151_v63  ;;  %v7476_v63 = vld [vmem:[#allocation133_spill] sm:$0xff] }
 0x5ce   :  { %3232 = vmatmul.bf16.vlgmr.msrb.gmra.mxu0 %v6272_v38  ;;  %3258 = vmatmul.bf16.vlgmr.msrb.gmra.mxu2 %v6272_v38  ;;  %v4534_v2 = vpop.eup %4533 }
 0x5cf   :  { %v3153_v45 = vadd.f32 %v4532_v9, %v3152_v50  ;;  %3280 = vmatpush.bf16.msra.mxu0 %v6931_v11  ;;  %3306 = vmatpush.bf16.msra.mxu2 %v6932_v4  ;;  %v7478_v50 = vld [vmem:[#allocation100_spill] sm:$0xff] }
 0x5d1   :  { %v3157_v7 = vsel %vm3156_vm6, %v4532_v9, %v3153_v45  ;;  %v7474_v9 = vld [vmem:[#allocation96_spill] sm:$0xff]  ;;  %v7480_v45 = vld [vmem:[#allocation135_spill] sm:$0xff] }
 0x5d2   :  { %v3162_v13 = vsel %vm3159_vm7, %v3161_v55, %v3157_v7  ;;  %v7481_v55 = vld [vmem:[#allocation136_spill] sm:$0xff] }
 0x5d3   :  { %v3169_v57 = vmul.f32 %v4534_v2, %v3162_v13  ;;  %3281 = vmatpush.bf16.msra.mxu0 %v6933_v29  ;;  %3307 = vmatpush.bf16.msra.mxu2 %v6934_v17  ;;  %v7482_v7 = vld [vmem:[#allocation104_spill] sm:$0xff]  ;;  %v7483_v2 = vld [vmem:[#allocation105_spill] sm:$0xff] }
 0x5d4   :  { %v7484_v13 = vld [vmem:[#allocation108_spill] sm:$0xff] }
 0x5d5   :  { %v6307_v30 = vpack.c.bf16 %v3169_v57, %v3169_v57  ;;  %v7485_v57 = vld [vmem:[#allocation109_spill] sm:$0xff] }
 0x5d7   :  { %3193 = vmatmul.bf16.vlgmr.msra.gmra.mxu1 %v6307_v30  ;;  %3219 = vmatmul.bf16.vlgmr.msra.gmra.mxu3 %v6307_v30 }
 0x5d8   :  { %3289 = vmatpush.bf16.msra.mxu1 %v6935_v41  ;;  %3315 = vmatpush.bf16.msra.mxu3 %v6936_v19 }
 0x5d9   :  { %3282 = vmatpush.bf16.msra.mxu0 %v5060_v15  ;;  %3308 = vmatpush.bf16.msra.mxu2 %v5062_v54 }
 0x5dc   :  { %3290 = vmatpush.bf16.msra.mxu1 %v6937_v24  ;;  %3316 = vmatpush.bf16.msra.mxu3 %v6938_v10 }
 0x5dd   :  { %3283 = vmatpush.bf16.msra.mxu0 %v5072_v32  ;;  %3309 = vmatpush.bf16.msra.mxu2 %v5074_v21 }
 0x5e0   :  { %3291 = vmatpush.bf16.msra.mxu1 %v6939_v14  ;;  %3317 = vmatpush.bf16.msra.mxu3 %v6940_v43 }
 0x5e1   :  { %3328 = vmatpush.bf16.msrb.mxu0 %v5076_v37  ;;  %3354 = vmatpush.bf16.msrb.mxu2 %v5078_v27 }
 0x5e2   :  { %3284 = vmatmul.bf16.vlgmr.msra.gmra.mxu0 %v6272_v38  ;;  %3310 = vmatmul.bf16.vlgmr.msra.gmra.mxu2 %v6272_v38 }
 0x5e4   :  { %3292 = vmatpush.bf16.msra.mxu1 %v7456_v42  ;;  %3318 = vmatpush.bf16.msra.mxu3 %v7457_v60 }
 0x5e5   :  { %3329 = vmatpush.bf16.msrb.mxu0 %v7024_v31  ;;  %3355 = vmatpush.bf16.msrb.mxu2 %v5090_v23 }
 0x5e7   :  { %3245 = vmatmul.bf16.vlgmr.msrb.gmra.mxu1 %v6307_v30  ;;  %3271 = vmatmul.bf16.vlgmr.msrb.gmra.mxu3 %v6307_v30 }
 0x5e8   :  { %3293 = vmatpush.bf16.msra.mxu1 %v7460_v48  ;;  %3319 = vmatpush.bf16.msra.mxu3 %v7461_v1 }
 0x5e9   :  { %3330 = vmatpush.bf16.msrb.mxu0 %v7458_v47  ;;  %3356 = vmatpush.bf16.msrb.mxu2 %v7459_v49 }
 0x5ec   :  { %3294 = vmatpush.bf16.msra.mxu1 %v7464_v16  ;;  %3320 = vmatpush.bf16.msra.mxu3 %v7465_v34 }
 0x5ed   :  { %3331 = vmatpush.bf16.msrb.mxu0 %v7462_v58  ;;  %3357 = vmatpush.bf16.msrb.mxu2 %v7463_v62 }
 0x5f0   :  { %3295 = vmatpush.bf16.msra.mxu1 %v7468_v36  ;;  %3321 = vmatpush.bf16.msra.mxu3 %v7469_v35 }
 0x5f1   :  { %3332 = vmatpush.bf16.msrb.mxu0 %v7466_v22  ;;  %3358 = vmatpush.bf16.msrb.mxu2 %v7467_v59 }
 0x5f4   :  { %3296 = vmatpush.bf16.msra.mxu1 %v7472_v25  ;;  %3322 = vmatpush.bf16.msra.mxu3 %v7473_v46 }
 0x5f5   :  { %3333 = vmatpush.bf16.msrb.mxu0 %v7470_v6  ;;  %3359 = vmatpush.bf16.msrb.mxu2 %v7471_v8 }
 0x5f7   :  { %3297 = vmatmul.bf16.vlgmr.msra.gmra.mxu1 %v6307_v30  ;;  %3323 = vmatmul.bf16.vlgmr.msra.gmra.mxu3 %v6307_v30 }
 0x5f8   :  { %3341 = vmatpush.bf16.msrb.mxu1 %v7474_v9  ;;  %3367 = vmatpush.bf16.msrb.mxu3 %v7475_v39 }
 0x5f9   :  { %3334 = vmatpush.bf16.msrb.mxu0 %v7476_v63  ;;  %3360 = vmatpush.bf16.msrb.mxu2 %v7477_v26 }
 0x5fc   :  { %3342 = vmatpush.bf16.msrb.mxu1 %v7478_v50  ;;  %3368 = vmatpush.bf16.msrb.mxu3 %v7479_v20 }
 0x5fd   :  { %3335 = vmatpush.bf16.msrb.mxu0 %v7480_v45  ;;  %3361 = vmatpush.bf16.msrb.mxu2 %v7481_v55 }
 0x600   :  { %3343 = vmatpush.bf16.msrb.mxu1 %v7482_v7  ;;  %3369 = vmatpush.bf16.msrb.mxu3 %v7483_v2 }
 0x601   :  { %3495 = vmatpush.bf16.msra.mxu0 %v6923_v3  ;;  %3521 = vmatpush.bf16.msra.mxu2 %v6924_v44  ;;  %v7486_v3 = vld [vmem:[#allocation112_spill] sm:$0xff]  ;;  %v7487_v44 = vld [vmem:[#allocation113_spill] sm:$0xff] }
 0x602   :  { %3336 = vmatmul.bf16.vlgmr.msrb.gmra.mxu0 %v6272_v38  ;;  %3362 = vmatmul.bf16.vlgmr.msrb.gmra.mxu2 %v6272_v38  ;;  %v7488_v38 = vld [vmem:[#allocation116_spill] sm:$0xff] }
 0x604   :  { %3344 = vmatpush.bf16.msrb.mxu1 %v7484_v13  ;;  %3370 = vmatpush.bf16.msrb.mxu3 %v7485_v57 }
 0x605   :  { %3496 = vmatpush.bf16.msra.mxu0 %v6925_v28  ;;  %3522 = vmatpush.bf16.msra.mxu2 %v6926_v5  ;;  %v7489_v28 = vld [vmem:[#allocation117_spill] sm:$0xff]  ;;  %v7490_v5 = vld [vmem:[#allocation120_spill] sm:$0xff] }
 0x608   :  { %3345 = vmatpush.bf16.msrb.mxu1 %v7486_v3  ;;  %3371 = vmatpush.bf16.msrb.mxu3 %v7487_v44 }
 0x609   :  { %3497 = vmatpush.bf16.msra.mxu0 %v6927_v52  ;;  %3523 = vmatpush.bf16.msra.mxu2 %v6928_v33  ;;  %v7491_v52 = vld [vmem:[#allocation121_spill] sm:$0xff]  ;;  %v7492_v33 = vld [vmem:[#allocation122_spill] sm:$0xff] }
 0x60c   :  { %3346 = vmatpush.bf16.msrb.mxu1 %v7488_v38  ;;  %3372 = vmatpush.bf16.msrb.mxu3 %v7489_v28 }
 0x60d   :  { %3498 = vmatpush.bf16.msra.mxu0 %v6929_v61  ;;  %3524 = vmatpush.bf16.msra.mxu2 %v6930_v0  ;;  %v7493_v61 = vld [vmem:[#allocation123_spill] sm:$0xff]  ;;  %v378_v0 = vstv %s3701_s2 }
 0x610   :  { %3347 = vmatpush.bf16.msrb.mxu1 %v7490_v5  ;;  %3373 = vmatpush.bf16.msrb.mxu3 %v7491_v52 }
 0x611   :  { %3499 = vmatpush.bf16.msra.mxu0 %v6931_v11  ;;  %3525 = vmatpush.bf16.msra.mxu2 %v6932_v4  ;;  %v382_v4 = vstv %s3702_s14 }
 0x614   :  { %3348 = vmatpush.bf16.msrb.mxu1 %v7492_v33  ;;  %3374 = vmatpush.bf16.msrb.mxu3 %v7493_v61 }
 0x615   :  { %3500 = vmatpush.bf16.msra.mxu0 %v6933_v29  ;;  %3526 = vmatpush.bf16.msra.mxu2 %v6934_v17  ;;  %v7494_v29 = vld [vmem:[#allocation99_spill] sm:$0xff] }
 0x616   :  { %v379_v17 = vmul.f32 %v7494_v29, %v378_v0 }
 0x617   :  { %3349 = vmatmul.bf16.vlgmr.msrb.gmra.mxu1 %v6307_v30  ;;  %3375 = vmatmul.bf16.vlgmr.msrb.gmra.mxu3 %v6307_v30 }
 0x618   :  { %3508 = vmatpush.bf16.msra.mxu1 %v6935_v41  ;;  %3534 = vmatpush.bf16.msra.mxu3 %v6936_v19  ;;  %v383_v41 = vmul.f32 %v7494_v29, %v382_v4 }
 0x619   :  { %3501 = vmatpush.bf16.msra.mxu0 %v5060_v15  ;;  %3527 = vmatpush.bf16.msra.mxu2 %v5062_v54 }
 0x61c   :  { %3509 = vmatpush.bf16.msra.mxu1 %v6937_v24  ;;  %3535 = vmatpush.bf16.msra.mxu3 %v6938_v10  ;;  %v7495_v10 = vld [vmem:[#allocation102_spill] sm:$0xff] }
 0x61d   :  { %3502 = vmatpush.bf16.msra.mxu0 %v5072_v32  ;;  %3528 = vmatpush.bf16.msra.mxu2 %v5074_v21 }
 0x620   :  { %3510 = vmatpush.bf16.msra.mxu1 %v6939_v14  ;;  %3536 = vmatpush.bf16.msra.mxu3 %v6940_v43  ;;  %v380_v14 = vadd.f32 %v7495_v10, %v379_v17 }
 0x621   :  { %3547 = vmatpush.bf16.msrb.mxu0 %v5076_v37  ;;  %3573 = vmatpush.bf16.msrb.mxu2 %v5078_v27 }
 0x624   :  { %3511 = vmatpush.bf16.msra.mxu1 %v7456_v42  ;;  %3537 = vmatpush.bf16.msra.mxu3 %v7457_v60  ;;  %v387_v42 = vperm.slane %v380_v14, 1  ;;  %v388_v60 = vperm.slane %v380_v14, 2 }
 0x625   :  { %3548 = vmatpush.bf16.msrb.mxu0 %v7024_v31  ;;  %3574 = vmatpush.bf16.msrb.mxu2 %v5090_v23  ;;  %v384_v31 = vadd.f32 %v7495_v10, %v383_v41 }
 0x628   :  { %3512 = vmatpush.bf16.msra.mxu1 %v7460_v48  ;;  %3538 = vmatpush.bf16.msra.mxu3 %v7461_v1  ;;  %v397_v48 = vperm.slane %v384_v31, 2  ;;  %v398_v1 = vperm.slane %v384_v31, 3 }
 0x629   :  { %3549 = vmatpush.bf16.msrb.mxu0 %v7458_v47  ;;  %3575 = vmatpush.bf16.msrb.mxu2 %v7459_v49  ;;  %v389_v47 = vperm.slane %v380_v14, 3  ;;  %v396_v49 = vperm.slane %v384_v31, 1 }
 0x62c   :  { %3513 = vmatpush.bf16.msra.mxu1 %v7464_v16  ;;  %3539 = vmatpush.bf16.msra.mxu3 %v7465_v34 }
 0x62d   :  { %3550 = vmatpush.bf16.msrb.mxu0 %v7462_v58  ;;  %3576 = vmatpush.bf16.msrb.mxu2 %v7463_v62  ;;  %v386_v62 = vperm.slane %v380_v14, 0 }
 0x630   :  { %3514 = vmatpush.bf16.msra.mxu1 %v7468_v36  ;;  %3540 = vmatpush.bf16.msra.mxu3 %v7469_v35  ;;  %v405_v36 = vsel %vm99_vm0, %v388_v60, %v397_v48  ;;  %v406_v35 = vsel %vm99_vm0, %v389_v47, %v398_v1 }
 0x631   :  { %3551 = vmatpush.bf16.msrb.mxu0 %v7466_v22  ;;  %3577 = vmatpush.bf16.msrb.mxu2 %v7467_v59  ;;  %v395_v22 = vperm.slane %v384_v31, 0  ;;  %v404_v59 = vsel %vm99_vm0, %v387_v42, %v396_v49 }
 0x634   :  { %3515 = vmatpush.bf16.msra.mxu1 %v7472_v25  ;;  %3541 = vmatpush.bf16.msra.mxu3 %v7473_v46  ;;  %v411_v25 = vrot.slane %v404_v59, 6  ;;  %v412_v46 = vrot.slane %v405_v36, 4 }
 0x635   :  { %3552 = vmatpush.bf16.msrb.mxu0 %v7470_v6  ;;  %3578 = vmatpush.bf16.msrb.mxu2 %v7471_v8 }
 0x638   :  { %3560 = vmatpush.bf16.msrb.mxu1 %v7474_v9  ;;  %3586 = vmatpush.bf16.msrb.mxu3 %v7475_v39  ;;  %v413_v9 = vrot.slane %v406_v35, 2  ;;  %v403_v39 = vsel %vm99_vm0, %v386_v62, %v395_v22 }
 0x639   :  { %3553 = vmatpush.bf16.msrb.mxu0 %v7476_v63  ;;  %3579 = vmatpush.bf16.msrb.mxu2 %v7477_v26 }
 0x63b   :  { %v3181_v15 = vpop.f32.mrf.mxu0 }
 0x63c   :  { %3561 = vmatpush.bf16.msrb.mxu1 %v7478_v50  ;;  %3587 = vmatpush.bf16.msrb.mxu3 %v7479_v20  ;;  %v414_v20 = vsel %vm111_vm1, %v403_v39, %v411_v25 }
 0x63d   :  { %3554 = vmatpush.bf16.msrb.mxu0 %v7480_v45  ;;  %3580 = vmatpush.bf16.msrb.mxu2 %v7481_v55  ;;  %v415_v45 = vsel %vm113_vm2, %v412_v46, %v413_v9 }
 0x640   :  { %3562 = vmatpush.bf16.msrb.mxu1 %v7482_v7  ;;  %3588 = vmatpush.bf16.msrb.mxu3 %v7483_v2 }
 0x641   :  { %v3207_v54 = vpop.f32.mrf.mxu2 }
 0x643   :  { %v3183_v32 = vpop.f32.mrf.mxu0 }
 0x644   :  { %3563 = vmatpush.bf16.msrb.mxu1 %v7484_v13  ;;  %3589 = vmatpush.bf16.msrb.mxu3 %v7485_v57 }
 0x648   :  { %3564 = vmatpush.bf16.msrb.mxu1 %v7486_v3  ;;  %3590 = vmatpush.bf16.msrb.mxu3 %v7487_v44  ;;  %v416_v44 = vsel %vm115_vm3, %v414_v20, %v415_v45 }
 0x649   :  { %v3209_v21 = vpop.f32.mrf.mxu2 }
 0x64b   :  { %v3233_v37 = vpop.f32.mrf.mxu0 }
 0x64c   :  { %3565 = vmatpush.bf16.msrb.mxu1 %v7488_v38  ;;  %3591 = vmatpush.bf16.msrb.mxu3 %v7489_v28 }
 0x650   :  { %3566 = vmatpush.bf16.msrb.mxu1 %v7490_v5  ;;  %3592 = vmatpush.bf16.msrb.mxu3 %v7491_v52 }
 0x651   :  { %v3259_v27 = vpop.f32.mrf.mxu2 }
 0x653   :  { %v3235_v11 = vpop.f32.mrf.mxu0 }
 0x654   :  { %3567 = vmatpush.bf16.msrb.mxu1 %v7492_v33  ;;  %3593 = vmatpush.bf16.msrb.mxu3 %v7493_v61  ;;  %v3194_v23 = vpop.f32.mrf.mxu1 }
 0x655   :  { %v3195_v13 = vadd.f32 %v3194_v23, %v3181_v15 }
 0x659   :  { %v3261_v24 = vpop.f32.mrf.mxu2 }
 0x65a   :  { %v3220_v19 = vpop.f32.mrf.mxu3 }
 0x65b   :  { %v3221_v8 = vadd.f32 %v3220_v19, %v3207_v54 }
 0x65c   :  { %v3196_v43 = vpop.f32.mrf.mxu1 }
 0x65d   :  { %v3385_v50 = vrot.slane %v3221_v8, 6 }
 0x65f   :  { %v3285_v30 = vpop.f32.mrf.mxu0  ;;  %v3388_v38 = vsel %vm111_vm1, %v3195_v13, %v3385_v50 }
 0x662   :  { %v3222_v58 = vpop.f32.mrf.mxu3 }
 0x664   :  { %v3246_v16 = vpop.f32.mrf.mxu1 }
 0x665   :  { %v3311_v34 = vpop.f32.mrf.mxu2  ;;  %v3247_v63 = vadd.f32 %v3246_v16, %v3233_v37 }
 0x667   :  { %v3287_v6 = vpop.f32.mrf.mxu0  ;;  %v3386_v57 = vrot.slane %v3247_v63, 4 }
 0x66a   :  { %v3272_v26 = vpop.f32.mrf.mxu3 }
 0x66b   :  { %v3273_v55 = vadd.f32 %v3272_v26, %v3259_v27 }
 0x66c   :  { %v3248_v7 = vpop.f32.mrf.mxu1 }
 0x66d   :  { %v3313_v2 = vpop.f32.mrf.mxu2  ;;  %v3387_v3 = vrot.slane %v3273_v55, 2 }
 0x66f   :  { %v3389_v28 = vsel %vm113_vm2, %v3386_v57, %v3387_v3 }
 0x670   :  { %v3390_v5 = vsel %vm115_vm3, %v3388_v38, %v3389_v28 }
 0x671   :  { %v3392_v52 = vadd.f32 %v3390_v5, %v416_v44 }
 0x672   :  { %v3274_v33 = vpop.f32.mrf.mxu3 }
 0x673   :  { %v4240_v61 = vmul.f32 -1.442695, %v3392_v52 }
 0x674   :  { %v3298_v54 = vpop.f32.mrf.mxu1 }
 0x675   :  { %4535 = vpow2.f32 %v4240_v61  ;;  %v3299_v32 = vadd.f32 %v3298_v54, %v3285_v30  ;;  %v3413_v30 = vrot.slane %v3392_v52, 6 }
 0x677   :  { %v3426_v21 = vadd.f32 %v3299_v32, %v5221_v12 }
 0x679   :  { %v4241_v37 = vmul.f32 -1.442695, %v3426_v21 }
 0x67a   :  { %v3324_v15 = vpop.f32.mrf.mxu3 }
 0x67b   :  { %v4536_v27 = vpop.eup %4535  ;;  %4537 = vpow2.f32 %v4241_v37  ;;  %v3325_v23 = vadd.f32 %v3324_v15, %v3311_v34 }
 0x67c   :  { %v3396_v11 = vadd.f32 1.0, %v4536_v27  ;;  %v3300_v4 = vpop.f32.mrf.mxu1 }
 0x67d   :  { %v3427_v29 = vadd.f32 %v3325_v23, %v5225_v56 }
 0x67e   :  { %4539 = vrcp.f32 %v3396_v11  ;;  %v3408_v49 = vand.u32 2147483648, %v3396_v11  ;;  %v3406_v58 = vand.u32 2147483647, %v3396_v11  ;;  %vm3402_vm2 = vweird.f32 %v3396_v11 }
 0x67f   :  { %v3337_v0 = vpop.f32.mrf.mxu0  ;;  %v4242_v17 = vmul.f32 -1.442695, %v3427_v29 }
 0x680   :  { %v3409_v34 = vor.u32 1.1754944e-38, %v3408_v49  ;;  %vm3407_vm8 = vcmp.eq.f32.partialorder %v3406_v58, 8.507059e+37 }
 0x681   :  { %v4538_v41 = vpop.eup %4537  ;;  %4541 = vpow2.f32 %v4242_v17 }
 0x682   :  { %v6455_v24 = vadd.f32 1.0, %v4538_v41  ;;  %v3326_v10 = vpop.f32.mrf.mxu3 }
 0x684   :  { %v4540_v43 = vpop.eup %4539  ;;  %4543 = vrcp.f32 %v6455_v24  ;;  %vm3447_vm11 = vweird.f32 %v6455_v24  ;;  %v3453_v33 = vand.u32 2147483648, %v6455_v24  ;;  %v3451_v32 = vand.u32 2147483647, %v6455_v24 }
 0x685   :  { %v3363_v19 = vpop.f32.mrf.mxu2  ;;  %v3398_v31 = vmul.f32 %v4540_v43, %v3396_v11  ;;  %4545 = vtanh.f32 %v3413_v30  ;;  %vm3403_vm0 = vweird.f32 %v4540_v43 }
 0x686   :  { %vm3404_vm3 = vmor %vm3402_vm2, %vm3403_vm0  ;;  %v3454_v17 = vor.u32 1.1754944e-38, %v3453_v33  ;;  %vm3452_vm15 = vcmp.eq.f32.partialorder %v3451_v32, 8.507059e+37 }
 0x687   :  { %v3339_v14 = vpop.f32.mrf.mxu0  ;;  %v4542_v42 = vpop.eup %4541  ;;  %v3399_v60 = vsub.f32 1.0, %v3398_v31 }
 0x688   :  { %v6458_v47 = vadd.f32 1.0, %v4542_v42 }
 0x689   :  { %v3400_v1 = vmul.f32 %v4540_v43, %v3399_v60 }
 0x68a   :  { %4547 = vrcp.f32 %v6458_v47  ;;  %v4544_v16 = vpop.eup %4543  ;;  %v3468_v52 = vand.u32 2147483648, %v6458_v47  ;;  %vm3462_vm12 = vweird.f32 %v6458_v47  ;;  %v3466_v21 = vand.u32 2147483647, %v6458_v47 }
 0x68b   :  { %v3401_v62 = vadd.f32 %v4540_v43, %v3400_v1  ;;  %v4546_v36 = vpop.eup %4545  ;;  %v3443_v35 = vmul.f32 %v4544_v16, %v6455_v24  ;;  %vm3448_vm9 = vweird.f32 %v4544_v16 }
 0x68c   :  { %vm6470_vm13 = vmor %vm3447_vm11, %vm3448_vm9  ;;  %v3469_v29 = vor.u32 1.1754944e-38, %v3468_v52  ;;  %vm3467_vm4 = vcmp.eq.f32.partialorder %v3466_v21, 8.507059e+37 }
 0x68d   :  { %v3365_v48 = vpop.f32.mrf.mxu2  ;;  %v3405_v22 = vsel %vm3404_vm3, %v4540_v43, %v3401_v62  ;;  %v3444_v26 = vsub.f32 1.0, %v3443_v35 }
 0x68e   :  { %v3410_v59 = vsel %vm3407_vm8, %v3409_v34, %v3405_v22 }
 0x68f   :  { %v3417_v6 = vrot.slane %v3410_v59, 2  ;;  %v3420_v39 = vmul.f32 %v4546_v36, %v3410_v59  ;;  %v3445_v13 = vmul.f32 %v4544_v16, %v3444_v26  ;;  %v3423_v38 = vrot.slane %v3410_v59, 4 }
 0x690   :  { %v4548_v8 = vpop.eup %4547 }
 0x691   :  { %v3458_v25 = vmul.f32 %v4548_v8, %v6458_v47  ;;  %v3419_v9 = vmul.f32 %v3417_v6, %v6264_v18  ;;  %vm3463_vm10 = vweird.f32 %v4548_v8  ;;  %v3446_v28 = vadd.f32 %v4544_v16, %v3445_v13 }
 0x692   :  { %vm6476_vm14 = vmor %vm3462_vm12, %vm3463_vm10 }
 0x693   :  { %v3459_v50 = vsub.f32 1.0, %v3458_v25  ;;  %v3421_v20 = vadd.f32 %v3420_v39, %v3419_v9 }
 0x694   :  { %v3350_v46 = vpop.f32.mrf.mxu1 }
 0x695   :  { %v3351_v63 = vadd.f32 %v3350_v46, %v3337_v0  ;;  %4549 = vtanh.f32 %v3421_v20  ;;  %v3460_v7 = vmul.f32 %v4548_v8, %v3459_v50  ;;  %v3450_v0 = vsel %vm6470_vm13, %v4544_v16, %v3446_v28 }
 0x697   :  { %v3428_v45 = vadd.f32 %v3351_v63, %v5239_v40  ;;  %v3461_v5 = vadd.f32 %v4548_v8, %v3460_v7 }
 0x699   :  { %v4243_v55 = vmul.f32 -1.442695, %v3428_v45  ;;  %v3465_v11 = vsel %vm6476_vm14, %v4548_v8, %v3461_v5 }
 0x69a   :  { %v3376_v2 = vpop.f32.mrf.mxu3  ;;  %v3470_v24 = vsel %vm3467_vm4, %v3469_v29, %v3465_v11 }
 0x69b   :  { %4551 = vpow2.f32 %v4243_v55  ;;  %v3377_v57 = vadd.f32 %v3376_v2, %v3363_v19  ;;  %v4550_v18 = vpop.eup %4549  ;;  %v3455_v19 = vsel %vm3452_vm15, %v3454_v17, %v3450_v0  ;;  %v3488_v14 = vmul.f32 %v3470_v24, %v6296_v51 }
 0x69c   :  { %v3352_v3 = vpop.f32.mrf.mxu1  ;;  %v3425_v61 = vmul.f32 %v4550_v18, %v3423_v38 }
 0x69d   :  { %v3429_v44 = vadd.f32 %v3377_v57, %v5248_v53 }
 0x69e   :  { %v3493_v27 = vpack.c.bf16 %v3425_v61, %v3425_v61 }
 0x69f   :  { %4553 = vtanh.f32 %v3429_v44 }
 0x6a0   :  { %3503 = vmatmul.bf16.vlgmr.msra.gmra.mxu0 %v3493_v27  ;;  %3529 = vmatmul.bf16.vlgmr.msra.gmra.mxu2 %v3493_v27 }
 0x6a1   :  { %v4552_v37 = vpop.eup %4551 }
 0x6a2   :  { %v3441_v23 = vadd.f32 1.0, %v4552_v37  ;;  %v3378_v4 = vpop.f32.mrf.mxu3 }
 0x6a4   :  { %4555 = vrcp.f32 %v3441_v23  ;;  %v3483_v60 = vand.u32 2147483648, %v3441_v23  ;;  %v3481_v49 = vand.u32 2147483647, %v3441_v23  ;;  %vm3477_vm6 = vweird.f32 %v3441_v23 }
 0x6a5   :  { %v4554_v41 = vpop.eup %4553 }
 0x6a6   :  { %v3489_v10 = vmul.f32 %v4554_v41, %v3455_v19  ;;  %v3484_v1 = vor.u32 1.1754944e-38, %v3483_v60  ;;  %vm3482_vm0 = vcmp.eq.f32.partialorder %v3481_v49, 8.507059e+37 }
 0x6a8   :  { %v6485_v31 = vadd.f32 %v3489_v10, %v3488_v14 }
 0x6aa   :  { %v4556_v43 = vpop.eup %4555  ;;  %4557 = vtanh.f32 %v6485_v31 }
 0x6ab   :  { %v3473_v30 = vmul.f32 %v4556_v43, %v3441_v23  ;;  %vm3478_vm5 = vweird.f32 %v4556_v43 }
 0x6ac   :  { %vm3479_vm7 = vmor %vm3477_vm6, %vm3478_vm5  ;;  %vm3679_vm6 = vcmask 1024  }
 0x6ad   :  { %v3474_v42 = vsub.f32 1.0, %v3473_v30 }
 0x6af   :  { %v3475_v47 = vmul.f32 %v4556_v43, %v3474_v42 }
 0x6b0   :  { %3555 = vmatmul.bf16.vlgmr.msrb.gmra.mxu0 %v3493_v27  ;;  %3581 = vmatmul.bf16.vlgmr.msrb.gmra.mxu2 %v3493_v27  ;;  %v4558_v51 = vpop.eup %4557 }
 0x6b1   :  { %v3476_v48 = vadd.f32 %v4556_v43, %v3475_v47 }
 0x6b3   :  { %v3480_v58 = vsel %vm3479_vm7, %v4556_v43, %v3476_v48 }
 0x6b4   :  { %v3485_v62 = vsel %vm3482_vm0, %v3484_v1, %v3480_v58 }
 0x6b5   :  { %v3492_v16 = vmul.f32 %v4558_v51, %v3485_v62 }
 0x6b7   :  { %v3494_v34 = vpack.c.bf16 %v3492_v16, %v3492_v16 }
 0x6b9   :  { %3516 = vmatmul.bf16.vlgmr.msra.gmra.mxu1 %v3494_v34  ;;  %3542 = vmatmul.bf16.vlgmr.msra.gmra.mxu3 %v3494_v34 }
 0x6c9   :  { %3568 = vmatmul.bf16.vlgmr.msrb.gmra.mxu1 %v3494_v34  ;;  %3594 = vmatmul.bf16.vlgmr.msrb.gmra.mxu3 %v3494_v34 }
 0x71d   :  { %v3504_v22 = vpop.f32.mrf.mxu0 }
 0x723   :  { %v3530_v59 = vpop.f32.mrf.mxu2 }
 0x725   :  { %v3506_v36 = vpop.f32.mrf.mxu0 }
 0x72b   :  { %v3532_v35 = vpop.f32.mrf.mxu2 }
 0x72d   :  { %v3556_v6 = vpop.f32.mrf.mxu0 }
 0x733   :  { %v3582_v25 = vpop.f32.mrf.mxu2 }
 0x735   :  { %v3558_v9 = vpop.f32.mrf.mxu0 }
 0x736   :  { %v3517_v8 = vpop.f32.mrf.mxu1  ;;  %v4382_v9 = vld [vmem:[#allocation3] ss:$0 sm:$0xff] }
 0x737   :  { %v3518_v46 = vadd.f32 %v3517_v8, %v3504_v22 }
 0x739   :  { %v3599_v39 = vadd.f32 %v3518_v46, %v5221_v12 }
 0x73b   :  { %v4244_v63 = vmul.f32 -1.442695, %v3599_v39  ;;  %v3584_v45 = vpop.f32.mrf.mxu2 }
 0x73c   :  { %v3543_v26 = vpop.f32.mrf.mxu3 }
 0x73d   :  { %4559 = vpow2.f32 %v4244_v63  ;;  %v3544_v50 = vadd.f32 %v3543_v26, %v3530_v59 }
 0x73e   :  { %v3519_v20 = vpop.f32.mrf.mxu1 }
 0x73f   :  { %v3600_v55 = vadd.f32 %v3544_v50, %v5225_v56 }
 0x741   :  { %v4245_v7 = vmul.f32 -1.442695, %v3600_v55 }
 0x743   :  { %v4560_v2 = vpop.eup %4559  ;;  %4561 = vpow2.f32 %v4245_v7 }
 0x744   :  { %v3612_v13 = vadd.f32 1.0, %v4560_v2  ;;  %v3545_v57 = vpop.f32.mrf.mxu3 }
 0x746   :  { %4563 = vrcp.f32 %v3612_v13  ;;  %v3569_v3 = vpop.f32.mrf.mxu1  ;;  %vm3620_vm3 = vweird.f32 %v3612_v13  ;;  %v3624_v29 = vand.u32 2147483647, %v3612_v13 }
 0x747   :  { %v3570_v44 = vadd.f32 %v3569_v3, %v3556_v6  ;;  %v4381_v6 = vld [vmem:[%s6505_s5] ss:$0 sm:$0xff] }
 0x748   :  { %vm3625_vm11 = vcmp.eq.f32.partialorder %v3624_v29, 8.507059e+37 }
 0x749   :  { %v4562_v38 = vpop.eup %4561  ;;  %v3601_v18 = vadd.f32 %v3570_v44, %v5239_v40  ;;  %v3626_v40 = vand.u32 2147483648, %v3612_v13 }
 0x74a   :  { %v3613_v12 = vadd.f32 1.0, %v4562_v38 }
 0x74b   :  { %v4246_v28 = vmul.f32 -1.442695, %v3601_v18  ;;  %v3627_v24 = vor.u32 1.1754944e-38, %v3626_v40 }
 0x74c   :  { %v4564_v5 = vpop.eup %4563  ;;  %4565 = vrcp.f32 %v3613_v12  ;;  %v3595_v52 = vpop.f32.mrf.mxu3  ;;  %v3641_v17 = vand.u32 2147483648, %v3613_v12  ;;  %vm3635_vm10 = vweird.f32 %v3613_v12 }
 0x74d   :  { %v3616_v33 = vmul.f32 %v4564_v5, %v3612_v13  ;;  %4567 = vpow2.f32 %v4246_v28  ;;  %v3596_v61 = vadd.f32 %v3595_v52, %v3582_v25  ;;  %vm3621_vm2 = vweird.f32 %v4564_v5 }
 0x74e   :  { %v3571_v56 = vpop.f32.mrf.mxu1  ;;  %vm3622_vm8 = vmor %vm3620_vm3, %vm3621_vm2  ;;  %v3642_v43 = vor.u32 1.1754944e-38, %v3641_v17 }
 0x74f   :  { %v3617_v54 = vsub.f32 1.0, %v3616_v33  ;;  %v3602_v32 = vadd.f32 %v3596_v61, %v5248_v53  ;;  %v3639_v53 = vand.u32 2147483647, %v3613_v12 }
 0x751   :  { %v3618_v21 = vmul.f32 %v4564_v5, %v3617_v54  ;;  %4569 = vtanh.f32 %v3602_v32  ;;  %vm3640_vm13 = vcmp.eq.f32.partialorder %v3639_v53, 8.507059e+37 }
 0x752   :  { %v4566_v37 = vpop.eup %4565 }
 0x753   :  { %v4568_v15 = vpop.eup %4567  ;;  %v3631_v27 = vmul.f32 %v4566_v37, %v3613_v12  ;;  %v3619_v23 = vadd.f32 %v4564_v5, %v3618_v21  ;;  %vm3636_vm9 = vweird.f32 %v4566_v37 }
 0x754   :  { %v3614_v0 = vadd.f32 1.0, %v4568_v15  ;;  %v3597_v11 = vpop.f32.mrf.mxu3  ;;  %vm3637_vm12 = vmor %vm3635_vm10, %vm3636_vm9 }
 0x755   :  { %v3632_v4 = vsub.f32 1.0, %v3631_v27  ;;  %v3623_v19 = vsel %vm3622_vm8, %v4564_v5, %v3619_v23 }
 0x756   :  { %4571 = vrcp.f32 %v3614_v0  ;;  %v3628_v30 = vsel %vm3625_vm11, %v3627_v24, %v3623_v19  ;;  %v3656_v62 = vand.u32 2147483648, %v3614_v0  ;;  %v3654_v34 = vand.u32 2147483647, %v3614_v0 }
 0x757   :  { %v3633_v41 = vmul.f32 %v4566_v37, %v3632_v4  ;;  %v4570_v14 = vpop.eup %4569  ;;  %vm3650_vm15 = vweird.f32 %v3614_v0 }
 0x758   :  { %v3662_v49 = vmul.f32 %v4570_v14, %v3628_v30  ;;  %v3657_v59 = vor.u32 1.1754944e-38, %v3656_v62  ;;  %vm3655_vm5 = vcmp.eq.f32.partialorder %v3654_v34, 8.507059e+37 }
 0x759   :  { %v3634_v10 = vadd.f32 %v4566_v37, %v3633_v41 }
 0x75b   :  { %v3638_v42 = vsel %vm3637_vm12, %v4566_v37, %v3634_v10 }
 0x75c   :  { %v4572_v60 = vpop.eup %4571  ;;  %v3643_v47 = vsel %vm3640_vm13, %v3642_v43, %v3638_v42 }
 0x75d   :  { %v3646_v48 = vmul.f32 %v4572_v60, %v3614_v0  ;;  %v3661_v1 = vmul.f32 %v3643_v47, %v6485_v31  ;;  %vm3651_vm14 = vweird.f32 %v4572_v60 }
 0x75e   :  { %vm3652_vm4 = vmor %vm3650_vm15, %vm3651_vm14 }
 0x75f   :  { %v3647_v58 = vsub.f32 1.0, %v3646_v48  ;;  %v3663_v51 = vadd.f32 %v3662_v49, %v3661_v1 }
 0x761   :  { %v3648_v16 = vmul.f32 %v4572_v60, %v3647_v58  ;;  %4573 = vtanh.f32 %v3663_v51 }
 0x763   :  { %v3649_v22 = vadd.f32 %v4572_v60, %v3648_v16 }
 0x765   :  { %v3653_v36 = vsel %vm3652_vm4, %v4572_v60, %v3649_v22 }
 0x766   :  { %v3658_v35 = vsel %vm3655_vm5, %v3657_v59, %v3653_v36 }
 0x767   :  { %v4574_v8 = vpop.eup %4573 }
 0x768   :  { %v3665_v31 = vmul.f32 %v4574_v8, %v3658_v35 }
 0x76a   :  { %v3670_v25 = vmul.f32 %v4381_v6, %v3665_v31 }
 0x76c   :  { %v3671_v46 = vsel %vm111_vm1, %v3670_v25, 0.0 }
 0x76d   :  { %3672 = vadd.xlane.f32.xlu0 %v3671_v46 }
 0x7e0   :  { %v3673_v39 = vpop.xlane.xlu0 %3672 }
 0x7e1   :  { %v3678_v63 = vadd.f32 %v4382_v9, %v3673_v39 }
 0x7e3   :  { %3680 = vst.msk [vmem:[%s6507_s7] sm:$0x3] %vm3679_vm6, %v3678_v63 }
 0x7e4   :  { %3685 = vsyncpa [#allocation5], 1 }
 0x7e5   :  { %3686 = vsyncpa [#allocation9], 1 }
 0x7e6   :  { %3687 = vsyncpa [#allocation6], 1 }

</bundles_post_ra>
